<compile_context>
chip_gen: v6e
topology: v6e:2x2x1
jax: 0.10.0
libtpu: 0.0.40
codegen_flags: <defaults>
</compile_context>

<pallas_src>
import functools

import jax
import jax.numpy as jnp
from jax.experimental import pallas as pl
from jax.experimental.pallas import tpu as pltpu


def _round_up(a, b):
    return (a + b - 1) // b * b


def _cdiv(a, b):
    return (a + b - 1) // b


def _divisor_tile(total, target, step=128):
    """Largest multiple of `step` that divides `total` and is <= target (falls back to total)."""
    t = (min(target, total) // step) * step
    while t >= step:
        if total % t == 0:
            return t
        t -= step
    return total


def _ffn_resident_kernel(x_ref, w1_ref, b1_ref, w2_ref, b2_ref, o_ref, *, negative_slope):
    # Weights fully resident in VMEM (constant index maps); single pass per row tile.
    x = x_ref[...].astype(w1_ref.dtype)                       # f32 -> bf16 in-kernel
    h = jnp.dot(x, w1_ref[...], preferred_element_type=jnp.float32)
    h = h + b1_ref[...]
    h = jnp.where(h > 0, h, negative_slope * h)               # LeakyReLU in f32
    h = h.astype(w2_ref.dtype)                                # bf16 into the second matmul
    out = jnp.dot(h, w2_ref[...], preferred_element_type=jnp.float32) + b2_ref[...]
    # TODO(synk): nn.Dropout(p=0.25) is identity in eval mode; training-mode stochastic
    # dropout (pltpu.prng_seed / prng_random_bits) is not applied here.
    o_ref[...] = out.astype(o_ref.dtype)


def _ffn_stream_kernel(x_ref, w1t_ref, b1_ref, w2_ref, b2_ref, o_ref, acc_ref, *, negative_slope):
    # Hidden dim streamed on the trailing ("arbitrary") grid axis; f32 accumulator scratch.
    k = pl.program_id(1)

    @pl.when(k == 0)
    def _():
        acc_ref[...] = jnp.zeros_like(acc_ref)

    x = x_ref[...].astype(w1t_ref.dtype)                      # f32 -> bf16 in-kernel
    # W1 is stored transposed as (H, C); contract the last dims of both operands (MXU).
    h = jax.lax.dot_general(x, w1t_ref[...], (((1,), (1,)), ((), ())),
                            preferred_element_type=jnp.float32)
    h = h + b1_ref[...]                                       # (tile_m, tile_h) + (1, tile_h)
    h = jnp.where(h > 0, h, negative_slope * h)               # LeakyReLU in f32
    h = h.astype(w2_ref.dtype)                                # bf16 into the second matmul
    acc_ref[...] += jnp.dot(h, w2_ref[...], preferred_element_type=jnp.float32)

    @pl.when(k == pl.num_programs(1) - 1)
    def _():
        # TODO(synk): dropout (p=0.25) omitted here as well (eval-mode identity).
        o_ref[...] = (acc_ref[...] + b2_ref[...]).astype(o_ref.dtype)


def feed_forward(x, w1, b1, w2, b2, *, negative_slope=0.01, tile_m=512, tile_h=512,
                 force_weight_streaming=False):
    """x: (B, T, C). Weights stored as (in_features, out_features). Returns (B, T, C)."""
    B, T, C = x.shape
    H = w1.shape[1]
    assert C % 128 == 0 and H % 128 == 0, "pad C/H to multiples of 128 (lane-dense tiles)"
    M = B * T

    compute_dtype = jnp.bfloat16
    out_dtype = x.dtype
    out_itemsize = jnp.dtype(out_dtype).itemsize
    weight_bytes = 2 * C * H * jnp.dtype(compute_dtype).itemsize      # W1 + W2 in bf16

    # Per-generation VMEM budget: leave headroom below physical capacity; the fallback
    # (64 MiB - 16 MiB = 48 MiB) is safe even on v7x's 64 MiB-per-TensorCore parts, while
    # real v5e/v6e parts report 128 MiB and get a ~112 MiB budget.
    try:
        vmem_cap = int(pltpu.get_tpu_info().vmem_capacity_bytes)
    except Exception:  # older jax without get_tpu_info
        vmem_cap = 64 * 1024 * 1024
    budget = max(32 * 1024 * 1024, vmem_cap - 16 * 1024 * 1024)

    # Row tiling: multiples of 16 (bf16 sublane packing) and >= 2 row blocks when possible
    # so both v7x TensorCores have work on the "parallel" axis.
    tile_m = min(tile_m, _round_up(M, 16))
    if M > 16 and _cdiv(M, tile_m) < 2:
        tile_m = max(16, _round_up(_cdiv(M, 2), 16))

    resident = (not force_weight_streaming) and weight_bytes <= min(16 * 1024 * 1024, budget // 3)

    if resident:
        def vmem_est(tm):
            return (2 * tm * C * 4                    # x tile (f32), double-buffered
                    + 2 * weight_bytes                # W1 + W2 (bf16), conservatively x2
                    + 2 * (H + C) * 4                 # biases (f32)
                    + 2 * tm * C * out_itemsize       # output tile, double-buffered
                    + tm * H * 4 + tm * H * 2)        # f32 hidden + bf16 copy
        while vmem_est(tile_m) > budget and tile_m > 16:
            tile_m = max(16, _round_up(tile_m // 2, 16))
        est = vmem_est(tile_m)
    else:
        tile_h = _divisor_tile(H, tile_h)
        def vmem_est(tm, th):
            return (2 * tm * C * 4                    # x tile (f32)
                    + 2 * 2 * th * C * 2              # W1^T + W2 slabs (bf16), double-buffered
                    + 2 * (th + C) * 4                # bias slabs (f32)
                    + 2 * tm * C * out_itemsize       # output tile
                    + tm * C * 4                      # f32 accumulator scratch
                    + tm * th * 4 + tm * th * 2)      # f32 hidden + bf16 copy
        while vmem_est(tile_m, tile_h) > budget and tile_m > 16:
            tile_m = max(16, _round_up(tile_m // 2, 16))
        est = vmem_est(tile_m, tile_h)

    vmem_limit = int(min(budget, max(32 * 1024 * 1024, 2 * est)))

    # Rows: pad only when M is not a tile multiple (no extra HBM pass in the common case);
    # x is NOT cast in the wrapper — the bf16 cast happens in-kernel after the DMA.
    M_pad = _round_up(M, tile_m)
    x2d = x.reshape(M, C)
    if M_pad != M:
        x2d = jnp.pad(x2d, ((0, M_pad - M), (0, 0)))
    num_row_tiles = M_pad // tile_m

    # Weights cast to bf16 once (in production store them pre-cast / pre-transposed).
    w1c = w1.astype(compute_dtype)
    w2c = w2.astype(compute_dtype)
    b1_2d = b1.reshape(1, H).astype(jnp.float32)
    b2_2d = b2.reshape(1, C).astype(jnp.float32)

    cost = pl.CostEstimate(
        flops=4 * M_pad * C * H,
        transcendentals=0,
        bytes_accessed=(M_pad * C * 4 + weight_bytes + (H + C) * 4 + M_pad * C * out_itemsize),
    )

    if resident:
        kernel = functools.partial(_ffn_resident_kernel, negative_slope=negative_slope)
        out2d = pl.pallas_call(
            kernel,
            out_shape=jax.ShapeDtypeStruct((M_pad, C), out_dtype),
            grid_spec=pltpu.PrefetchScalarGridSpec(
                num_scalar_prefetch=0,
                grid=(num_row_tiles,),
                in_specs=[
                    pl.BlockSpec((tile_m, C), lambda i: (i, 0)),  # x rows (streamed over i)
                    pl.BlockSpec((C, H), lambda i: (0, 0)),       # W1: fetched once, stays resident
                    pl.BlockSpec((1, H), lambda i: (0, 0)),       # b1
                    pl.BlockSpec((H, C), lambda i: (0, 0)),       # W2: fetched once, stays resident
                    pl.BlockSpec((1, C), lambda i: (0, 0)),       # b2
                ],
                out_specs=pl.BlockSpec((tile_m, C), lambda i: (i, 0)),
            ),
            compiler_params=pltpu.CompilerParams(
                dimension_semantics=("parallel",),
                vmem_limit_bytes=vmem_limit,
            ),
            cost_estimate=cost,
        )(x2d, w1c, b1_2d, w2c, b2_2d)
    else:
        w1t = w1c.T  # (H, C): contiguous row slabs over the hidden axis
        kernel = functools.partial(_ffn_stream_kernel, negative_slope=negative_slope)
        out2d = pl.pallas_call(
            kernel,
            out_shape=jax.ShapeDtypeStruct((M_pad, C), out_dtype),
            grid_spec=pltpu.PrefetchScalarGridSpec(
                num_scalar_prefetch=0,
                grid=(num_row_tiles, H // tile_h),
                in_specs=[
                    pl.BlockSpec((tile_m, C), lambda i, k: (i, 0)),   # x rows (held across k)
                    pl.BlockSpec((tile_h, C), lambda i, k: (k, 0)),   # W1^T row slab (contiguous)
                    pl.BlockSpec((1, tile_h), lambda i, k: (0, k)),   # b1 slab
                    pl.BlockSpec((tile_h, C), lambda i, k: (k, 0)),   # W2 row slab (contiguous)
                    pl.BlockSpec((1, C), lambda i, k: (0, 0)),        # b2
                ],
                out_specs=pl.BlockSpec((tile_m, C), lambda i, k: (i, 0)),
                scratch_shapes=[pltpu.VMEM((tile_m, C), jnp.float32)],
            ),
            compiler_params=pltpu.CompilerParams(
                dimension_semantics=("parallel", "arbitrary"),
                vmem_limit_bytes=vmem_limit,
            ),
            cost_estimate=cost,
        )(x2d, w1t, b1_2d, w2c, b2_2d)

    if M_pad != M:
        out2d = out2d[:M]
    return out2d.reshape(B, T, C)


def init_params(key, n_embd):
    """Deterministic init mimicking nn.Linear defaults (U(-1/sqrt(fan_in), 1/sqrt(fan_in)))."""
    h = 4 * n_embd
    k1, k2, k3, k4 = jax.random.split(key, 4)
    lim1 = 1.0 / jnp.sqrt(jnp.float32(n_embd))
    lim2 = 1.0 / jnp.sqrt(jnp.float32(h))
    w1 = jax.random.uniform(k1, (n_embd, h), jnp.float32, -lim1, lim1)
    b1 = jax.random.uniform(k2, (h,), jnp.float32, -lim1, lim1)
    w2 = jax.random.uniform(k3, (h, n_embd), jnp.float32, -lim2, lim2)
    b2 = jax.random.uniform(k4, (n_embd,), jnp.float32, -lim2, lim2)
    return w1, b1, w2, b2


if __name__ == "__main__":
    # Shapes consistent with the module: (batch, seq, n_embd) with n_embd = 256 * 2.
    B, T, n_embd = 2, 8, 512
    key = jax.random.PRNGKey(0)
    kx, kp = jax.random.split(key)
    x = jax.random.normal(kx, (B, T, n_embd), jnp.float32)
    w1, b1, w2, b2 = init_params(kp, n_embd)

    # Default path: weights (4 MiB bf16) stay resident in VMEM.
    out = feed_forward(x, w1, b1, w2, b2, negative_slope=0.01)
    jax.block_until_ready(out)

    # Also exercise the weight-streaming path (used when W1/W2 don't fit in VMEM).
    out_stream = feed_forward(x, w1, b1, w2, b2, negative_slope=0.01,
                              force_weight_streaming=True)
    jax.block_until_ready(out_stream)

    # Pure-JAX reference mirroring the kernel's bf16-input / f32-accumulate math
    # (eval-mode dropout = identity).
    xb = x.reshape(-1, n_embd).astype(jnp.bfloat16).astype(jnp.float32)
    w1b = w1.astype(jnp.bfloat16).astype(jnp.float32)
    w2b = w2.astype(jnp.bfloat16).astype(jnp.float32)
    h_ref = jnp.dot(xb, w1b, precision="highest") + b1
    h_ref = jnp.where(h_ref > 0, h_ref, 0.01 * h_ref)
    h_ref = h_ref.astype(jnp.bfloat16).astype(jnp.float32)
    ref = (jnp.dot(h_ref, w2b, precision="highest") + b2).reshape(B, T, n_embd)

    assert jnp.allclose(out, ref, atol=1e-2, rtol=1e-2), "resident path mismatch vs reference"
    assert jnp.allclose(out_stream, ref, atol=1e-2, rtol=1e-2), "streaming path mismatch vs reference"
    print("KERNEL_OK")
</pallas_src>

<mosaic_0001>
module attributes {stable_mosaic.version = 11 : i64} {
  func.func @_ffn_resident_kernel(%arg0: i32, %arg1: memref<16x512xf32, #tpu.memory_space<vmem>>, %arg2: memref<512x2048xbf16, #tpu.memory_space<vmem>>, %arg3: memref<1x2048xf32, #tpu.memory_space<vmem>>, %arg4: memref<2048x512xbf16, #tpu.memory_space<vmem>>, %arg5: memref<1x512xf32, #tpu.memory_space<vmem>>, %arg6: memref<16x512xf32, #tpu.memory_space<vmem>>) attributes {dimension_semantics = [#tpu.dimension_semantics<parallel>], iteration_bounds = array<i64: 1>, scalar_prefetch = 0 : i64, scratch_operands = 0 : i64, tpu.core_type = #tpu.core_type<tc>, window_params = [{transform_indices = @transform_0, window_bounds = array<i64: 16, 512>}, {pipeline_mode = #tpu.pipeline_mode<synchronous>, transform_indices = @transform_1, window_bounds = array<i64: 512, 2048>}, {pipeline_mode = #tpu.pipeline_mode<synchronous>, transform_indices = @transform_2, window_bounds = array<i64: 1, 2048>}, {pipeline_mode = #tpu.pipeline_mode<synchronous>, transform_indices = @transform_3, window_bounds = array<i64: 2048, 512>}, {pipeline_mode = #tpu.pipeline_mode<synchronous>, transform_indices = @transform_4, window_bounds = array<i64: 1, 512>}, {transform_indices = @transform_5, window_bounds = array<i64: 16, 512>}]} {
    %c0 = arith.constant 0 : index
    %c0_0 = arith.constant 0 : index
    %0 = vector.load %arg1[%c0, %c0_0] : memref<16x512xf32, #tpu.memory_space<vmem>>, vector<16x512xf32>
    %1 = arith.truncf %0 : vector<16x512xf32> to vector<16x512xbf16>
    %c0_1 = arith.constant 0 : index
    %c0_2 = arith.constant 0 : index
    %2 = vector.load %arg2[%c0_1, %c0_2] : memref<512x2048xbf16, #tpu.memory_space<vmem>>, vector<512x2048xbf16>
    %cst = arith.constant dense<0.000000e+00> : vector<16x2048xf32>
    %3 = tpu.matmul %1, %2, %cst {dimension_numbers = #tpu.dot_dimension_numbers<[1], [0], [0], [1], [0, 0, 1, 1], [], []>} : vector<16x512xbf16>, vector<512x2048xbf16>, vector<16x2048xf32> -> vector<16x2048xf32>
    %c0_3 = arith.constant 0 : index
    %c0_4 = arith.constant 0 : index
    %4 = vector.load %arg3[%c0_3, %c0_4] : memref<1x2048xf32, #tpu.memory_space<vmem>>, vector<1x2048xf32>
    %5 = vector.broadcast %4 : vector<1x2048xf32> to vector<16x2048xf32>
    %6 = arith.addf %3, %5 : vector<16x2048xf32>
    %cst_5 = arith.constant 0.000000e+00 : f32
    %7 = vector.broadcast %cst_5 : f32 to vector<16x2048xf32>
    %8 = arith.cmpf ogt, %6, %7 : vector<16x2048xf32>
    %cst_6 = arith.constant 0.00999999977 : f32
    %9 = vector.broadcast %cst_6 : f32 to vector<16x2048xf32>
    %10 = arith.mulf %9, %6 : vector<16x2048xf32>
    %11 = arith.select %8, %6, %10 : vector<16x2048xi1>, vector<16x2048xf32>
    %12 = arith.truncf %11 : vector<16x2048xf32> to vector<16x2048xbf16>
    %c0_7 = arith.constant 0 : index
    %c0_8 = arith.constant 0 : index
    %13 = vector.load %arg4[%c0_7, %c0_8] : memref<2048x512xbf16, #tpu.memory_space<vmem>>, vector<2048x512xbf16>
    %cst_9 = arith.constant dense<0.000000e+00> : vector<16x512xf32>
    %14 = tpu.matmul %12, %13, %cst_9 {dimension_numbers = #tpu.dot_dimension_numbers<[1], [0], [0], [1], [0, 0, 1, 1], [], []>} : vector<16x2048xbf16>, vector<2048x512xbf16>, vector<16x512xf32> -> vector<16x512xf32>
    %c0_10 = arith.constant 0 : index
    %c0_11 = arith.constant 0 : index
    %15 = vector.load %arg5[%c0_10, %c0_11] : memref<1x512xf32, #tpu.memory_space<vmem>>, vector<1x512xf32>
    %16 = vector.broadcast %15 : vector<1x512xf32> to vector<16x512xf32>
    %17 = arith.addf %14, %16 : vector<16x512xf32>
    %c0_12 = arith.constant 0 : index
    %c0_13 = arith.constant 0 : index
    %18 = vector.load %arg6[%c0_12, %c0_13] : memref<16x512xf32, #tpu.memory_space<vmem>>, vector<16x512xf32>
    tpu.vector_store %arg6[%c0_12, %c0_13], %17 {strides = array<i32>} : memref<16x512xf32, #tpu.memory_space<vmem>>, vector<16x512xf32>,
    return
  }
  func.func @transform_0(%arg0: i32) -> (i32, i32) {
    %c0_i32 = arith.constant 0 : i32
    %c0_i32_0 = arith.constant 0 : i32
    return %arg0, %c0_i32 : i32, i32
  }
  func.func @transform_1(%arg0: i32) -> (i32, i32) {
    %c0_i32 = arith.constant 0 : i32
    %c0_i32_0 = arith.constant 0 : i32
    %c0_i32_1 = arith.constant 0 : i32
    return %c0_i32, %c0_i32_0 : i32, i32
  }
  func.func @transform_2(%arg0: i32) -> (i32, i32) {
    %c0_i32 = arith.constant 0 : i32
    %c0_i32_0 = arith.constant 0 : i32
    %c0_i32_1 = arith.constant 0 : i32
    return %c0_i32, %c0_i32_0 : i32, i32
  }
  func.func @transform_3(%arg0: i32) -> (i32, i32) {
    %c0_i32 = arith.constant 0 : i32
    %c0_i32_0 = arith.constant 0 : i32
    %c0_i32_1 = arith.constant 0 : i32
    return %c0_i32, %c0_i32_0 : i32, i32
  }
  func.func @transform_4(%arg0: i32) -> (i32, i32) {
    %c0_i32 = arith.constant 0 : i32
    %c0_i32_0 = arith.constant 0 : i32
    %c0_i32_1 = arith.constant 0 : i32
    return %c0_i32, %c0_i32_0 : i32, i32
  }
  func.func @transform_5(%arg0: i32) -> (i32, i32) {
    %c0_i32 = arith.constant 0 : i32
    %c0_i32_0 = arith.constant 0 : i32
    return %arg0, %c0_i32 : i32, i32
  }
}

</mosaic_0001>

<bundles_post_ra>
// kernel: tpu_custom_call.1
= control target key start
LH: loop header
LB: loop body
LE: loop exit
PB: predicated region body
PF: predicated region fallthrough
CT: control target
= control target key end

     0   :  { %10 = vsyncpa [#allocation3], 0  ;;  %s10153_s0 = inlined_call_operand.hbm [shape: f32[16,512], index: 0, kind: input, shape index: {}]   ;;  %s10154_s1 = inlined_call_operand.hbm [shape: bf16[512,2048], index: 1, kind: input, shape index: {}]   ;;  %s10155_s2 = inlined_call_operand.hbm [shape: f32[1,2048], index: 2, kind: input, shape index: {}]   ;;  %s10156_s3 = inlined_call_operand.hbm [shape: bf16[2048,512], index: 3, kind: input, shape index: {}]   ;;  %s10157_s4 = inlined_call_operand.hbm [shape: f32[1,512], index: 4, kind: input, shape index: {}]   ;;  %s10158_s5 = inlined_call_operand.hbm [shape: f32[16,512], index: 5, kind: output, shape index: {}]  }
   0x1   :  { %11 = vsyncpa [#allocation6], 0 }
   0x2   :  { %12 = vsyncpa [#allocation9], 0 }
   0x3   :  { %13 = vsyncpa [#allocation4], 0  ;;  %s9797_s18 = smov [#allocation5]  }
   0x4   :  { %s31_s19 = sshll.u32 %s9797_s18, 4  ;;  %s32_s19 = int_to_ptr.vmem [resolvable:$true] %s31_s19 }
   0x5   :  { %s9677_s20 = scalar_lea.vmem %s32_s19, 65536  ;;  %p9682_p1 = scmp.lt.s32.totalorder %s32_s19, %s32_s19 }
   0x6   :  { %p9678_p0 = scmp.ne.s32.totalorder %s32_s19, %s9677_s20  ;;  %p9683_p2 = scmp.lt.s32.totalorder %s9677_s20, %s9677_s20 }
   0x8   :  { %p9684_p3 = por %p9683_p2, %p9682_p1 }
   0xa   :  { %p9685_p4 = pnand %p9684_p3, %p9678_p0 }
   0xc   :  { %9688 = shalt.err (!%p9685_p4)
}
   0xd   :  { %s9798_s21 = smov 1024   ;;  %s9799_s22 = smov 64  }
   0xe   :  { %37 = dma.hbm_to_vmem [thread:$0]  %s10154_s1, 65536, %s32_s19, [#allocation6], %s9798_s21, %s9798_s21, %s9799_s22  }
   0xf   :  { %s9800_s25 = smov [#allocation8]  }
  0x10   :  { %s53_s26 = sshll.u32 %s9800_s25, 4  ;;  %s54_s26 = int_to_ptr.vmem [resolvable:$true] %s53_s26 }
  0x11   :  { %s9697_s27 = scalar_lea.vmem %s54_s26, 65536  ;;  %p9702_p6 = scmp.lt.s32.totalorder %s54_s26, %s54_s26 }
  0x12   :  { %p9698_p5 = scmp.ne.s32.totalorder %s54_s26, %s9697_s27  ;;  %p9703_p7 = scmp.lt.s32.totalorder %s9697_s27, %s9697_s27 }
  0x14   :  { %p9704_p8 = por %p9703_p7, %p9702_p6 }
  0x16   :  { %p9705_p9 = pnand %p9704_p8, %p9698_p5 }
  0x18   :  { %9708 = shalt.err (!%p9705_p9)
}
  0x19   :  { %s9801_s28 = smov 256   ;;  %s9802_s29 = smov 16  }
  0x1a   :  { %59 = dma.hbm_to_vmem [thread:$0]  %s10156_s3, 65536, %s54_s26, [#allocation9], %s9801_s28, %s9801_s28, %s9802_s29  }
  0x1b   :  { %s9803_s7 = smov [#allocation2]  }
  0x1c   :  { %s19_s8 = sshll.u32 %s9803_s7, 4  ;;  %s20_s8 = int_to_ptr.vmem [resolvable:$true] %s19_s8 }
  0x1d   :  { %s9717_s1 = scalar_lea.vmem %s20_s8, 1024  ;;  %p9722_p11 = scmp.lt.s32.totalorder %s20_s8, %s20_s8 }
  0x1e   :  { %p9718_p10 = scmp.ne.s32.totalorder %s20_s8, %s9717_s1  ;;  %p9723_p12 = scmp.lt.s32.totalorder %s9717_s1, %s9717_s1 }
  0x20   :  { %p9724_p13 = por %p9723_p12, %p9722_p11 }
  0x22   :  { %p9725_p0 = pnand %p9724_p13, %p9718_p10 }
  0x24   :  { %9728 = shalt.err (!%p9725_p0)
}
  0x25   :  { %s9804_s9 = smov 512   ;;  %s9805_s10 = smov 32  }
  0x26   :  { %25 = dma.hbm_to_vmem [thread:$0]  %s10153_s0, 1024, %s20_s8, [#allocation3], %s9804_s9, %s9804_s9, %s9805_s10  }
  0x27   :  { %s9806_s3 = smov [#allocation7]   ;;  %s9807_s14 = smov [#allocation10]  }
  0x28   :  { %s44_s13 = sshll.u32 %s9806_s3, 4  ;;  %s66_s15 = sshll.u32 %s9807_s14, 4  ;;  %s45_s13 = int_to_ptr.vmem [resolvable:$true] %s44_s13  ;;  %s67_s15 = int_to_ptr.vmem [resolvable:$true] %s66_s15 }
  0x29   :  { %s9737_s16 = scalar_lea.vmem %s45_s13, 256  ;;  %p9742_p2 = scmp.lt.s32.totalorder %s45_s13, %s45_s13 }
  0x2a   :  { %p9738_p1 = scmp.ne.s32.totalorder %s45_s13, %s9737_s16  ;;  %p9743_p3 = scmp.lt.s32.totalorder %s9737_s16, %s9737_s16 }
  0x2c   :  { %p9744_p4 = por %p9743_p3, %p9742_p2 }
  0x2e   :  { %p9745_p5 = pnand %p9744_p4, %p9738_p1 }
  0x30   :  { %9748 = shalt.err (!%p9745_p5)
}
  0x31   :  { %47 = dma.hbm_to_vmem [thread:$0]  %s10155_s2, 256, %s45_s13, [#allocation6]  }
  0x32   :  { %s9757_s19 = scalar_lea.vmem %s67_s15, 64  ;;  %p9762_p7 = scmp.lt.s32.totalorder %s67_s15, %s67_s15 }
  0x33   :  { %p9758_p6 = scmp.ne.s32.totalorder %s67_s15, %s9757_s19  ;;  %p9763_p8 = scmp.lt.s32.totalorder %s9757_s19, %s9757_s19 }
  0x35   :  { %p9764_p9 = por %p9763_p8, %p9762_p7 }
  0x37   :  { %p9765_p10 = pnand %p9764_p9, %p9758_p6 }
  0x39   :  { %9768 = shalt.err (!%p9765_p10)
}
  0x3a   :  { %69 = dma.hbm_to_vmem [thread:$0]  %s10157_s4, 64, %s67_s15, [#allocation9]  }
  0x3b   :  { %9789 = dma.done.wait [#allocation3], 1024  }
  0x3c   :  { %9790 = vsyncadd [#allocation3], 4294966272 }
  0x3d   :  { %9791 = dma.done.wait [#allocation6], 65792  }
  0x3e   :  { %9792 = vsyncadd [#allocation6], 4294901504 }
  0x3f   :  { %9793 = dma.done.wait [#allocation9], 65600  }
  0x40   :  { %9794 = vsyncadd [#allocation9], 4294901696  ;;  %v209_v0 = vld [vmem:[#allocation5 + $0x380] sm:$0xff]  ;;  %v86_v54 = vld [vmem:[#allocation2 + $0x8] sm:$0xff]  ;;  %s9808_s2 = smov [#allocation11]  }
  0x41   :  { %v217_v1 = vld [vmem:[#allocation5 + $0x3c0] sm:$0xff]  ;;  %v90_v55 = vld [vmem:[#allocation2 + $0x28] sm:$0xff]  ;;  %v88_v59 = vld [vmem:[#allocation2 + $0x18] sm:$0xff]  ;;  %s7848_s4 = sshll.u32 %s9808_s2, 4  ;;  %s7849_s4 = int_to_ptr.vmem [resolvable:$true] %s7848_s4 }
  0x42   :  { %v465_v2 = vld [vmem:[#allocation5 + $0xb80] sm:$0xff]  ;;  %v7975_v3 = vcombine.high %v209_v0, %v217_v1  ;;  %v7974_v5 = vcombine.low %v209_v0, %v217_v1  ;;  %v9857_v58 = vpack.c.bf16 %v90_v55, %v86_v54  ;;  %v92_v60 = vld [vmem:[#allocation2 + $0x38] sm:$0xff]  ;;  %s9769_s21 = scalar_lea.vmem %s7849_s4, 1024  ;;  %p9774_p12 = scmp.lt.s32.totalorder %s7849_s4, %s7849_s4 }
  0x43   :  { %v473_v4 = vld [vmem:[#allocation5 + $0xbc0] sm:$0xff]  ;;  %v9859_v63 = vpack.c.bf16 %v92_v60, %v88_v59  ;;  %p9770_p11 = scmp.ne.s32.totalorder %s7849_s4, %s9769_s21  ;;  %p9775_p13 = scmp.lt.s32.totalorder %s9769_s21, %s9769_s21 }
  0x44   :  { %v193_v6 = vld [vmem:[#allocation5 + $0x300] sm:$0xff]  ;;  %v8231_v8 = vcombine.high %v465_v2, %v473_v4  ;;  %v8230_v9 = vcombine.low %v465_v2, %v473_v4  ;;  %3253 = vmatprep.subr.bf16.mxu0 %v7975_v3  ;;  %3285 = vmatprep.mubr.bf16.mxu0 %v9857_v58 }
  0x45   :  { %v201_v7 = vld [vmem:[#allocation5 + $0x340] sm:$0xff]  ;;  %3254 = vmatpush1.bf16.msra.mxu0 %v7974_v5  ;;  %3328 = vmatprep.mubr.bf16.mxu1 %v9859_v63  ;;  %p9776_p0 = por %p9775_p13, %p9774_p12 }
  0x46   :  { %v7959_v10 = vcombine.high %v193_v6, %v201_v7  ;;  %v449_v11 = vld [vmem:[#allocation5 + $0xb00] sm:$0xff]  ;;  %3296 = vmatprep.subr.bf16.mxu1 %v8231_v8  ;;  %v7958_v18 = vcombine.low %v193_v6, %v201_v7 }
  0x47   :  { %v457_v12 = vld [vmem:[#allocation5 + $0xb40] sm:$0xff]  ;;  %3297 = vmatpush1.bf16.msra.mxu1 %v8230_v9  ;;  %p9777_p1 = pnand %p9776_p0, %p9770_p11 }
  0x48   :  { %v177_v13 = vld [vmem:[#allocation5 + $0x280] sm:$0xff]  ;;  %v8215_v14 = vcombine.high %v449_v11, %v457_v12  ;;  %3255 = vmatprep.subr.bf16.mxu0 %v7959_v10  ;;  %v8214_v19 = vcombine.low %v449_v11, %v457_v12 }
  0x49   :  { %v185_v15 = vld [vmem:[#allocation5 + $0x2c0] sm:$0xff]  ;;  %3256 = vmatpush1.bf16.msra.mxu0 %v7958_v18 }
  0x4a   :  { %v433_v16 = vld [vmem:[#allocation5 + $0xa80] sm:$0xff]  ;;  %v7943_v20 = vcombine.high %v177_v13, %v185_v15  ;;  %3298 = vmatprep.subr.bf16.mxu1 %v8215_v14  ;;  %v7942_v26 = vcombine.low %v177_v13, %v185_v15 }
  0x4b   :  { %v441_v17 = vld [vmem:[#allocation5 + $0xac0] sm:$0xff]  ;;  %3299 = vmatpush1.bf16.msra.mxu1 %v8214_v19 }
  0x4c   :  { %v8199_v21 = vcombine.high %v433_v16, %v441_v17  ;;  %v161_v22 = vld [vmem:[#allocation5 + $0x200] sm:$0xff]  ;;  %3257 = vmatprep.subr.bf16.mxu0 %v7943_v20  ;;  %v8198_v27 = vcombine.low %v433_v16, %v441_v17 }
  0x4d   :  { %v169_v23 = vld [vmem:[#allocation5 + $0x240] sm:$0xff]  ;;  %3258 = vmatpush1.bf16.msra.mxu0 %v7942_v26 }
  0x4e   :  { %v417_v24 = vld [vmem:[#allocation5 + $0xa00] sm:$0xff]  ;;  %v7927_v28 = vcombine.high %v161_v22, %v169_v23  ;;  %3300 = vmatprep.subr.bf16.mxu1 %v8199_v21  ;;  %v7926_v34 = vcombine.low %v161_v22, %v169_v23 }
  0x4f   :  { %v425_v25 = vld [vmem:[#allocation5 + $0xa40] sm:$0xff]  ;;  %3301 = vmatpush1.bf16.msra.mxu1 %v8198_v27 }
  0x50   :  { %v8183_v29 = vcombine.high %v417_v24, %v425_v25  ;;  %v145_v30 = vld [vmem:[#allocation5 + $0x180] sm:$0xff]  ;;  %3259 = vmatprep.subr.bf16.mxu0 %v7927_v28  ;;  %v8182_v35 = vcombine.low %v417_v24, %v425_v25 }
  0x51   :  { %v153_v31 = vld [vmem:[#allocation5 + $0x1c0] sm:$0xff]  ;;  %3260 = vmatpush1.bf16.msra.mxu0 %v7926_v34 }
  0x52   :  { %v401_v32 = vld [vmem:[#allocation5 + $0x980] sm:$0xff]  ;;  %v7911_v36 = vcombine.high %v145_v30, %v153_v31  ;;  %3302 = vmatprep.subr.bf16.mxu1 %v8183_v29  ;;  %v7910_v42 = vcombine.low %v145_v30, %v153_v31 }
  0x53   :  { %v409_v33 = vld [vmem:[#allocation5 + $0x9c0] sm:$0xff]  ;;  %3303 = vmatpush1.bf16.msra.mxu1 %v8182_v35 }
  0x54   :  { %v8167_v37 = vcombine.high %v401_v32, %v409_v33  ;;  %v129_v38 = vld [vmem:[#allocation5 + $0x100] sm:$0xff]  ;;  %3261 = vmatprep.subr.bf16.mxu0 %v7911_v36  ;;  %v8166_v43 = vcombine.low %v401_v32, %v409_v33 }
  0x55   :  { %v137_v39 = vld [vmem:[#allocation5 + $0x140] sm:$0xff]  ;;  %3262 = vmatpush1.bf16.msra.mxu0 %v7910_v42 }
  0x56   :  { %v385_v40 = vld [vmem:[#allocation5 + $0x900] sm:$0xff]  ;;  %v7895_v44 = vcombine.high %v129_v38, %v137_v39  ;;  %3304 = vmatprep.subr.bf16.mxu1 %v8167_v37  ;;  %v7894_v50 = vcombine.low %v129_v38, %v137_v39 }
  0x57   :  { %v393_v41 = vld [vmem:[#allocation5 + $0x940] sm:$0xff]  ;;  %3305 = vmatpush1.bf16.msra.mxu1 %v8166_v43 }
  0x58   :  { %v8151_v45 = vcombine.high %v385_v40, %v393_v41  ;;  %v113_v46 = vld [vmem:[#allocation5 + $0x80] sm:$0xff]  ;;  %3263 = vmatprep.subr.bf16.mxu0 %v7895_v44  ;;  %v8150_v51 = vcombine.low %v385_v40, %v393_v41 }
  0x59   :  { %v121_v47 = vld [vmem:[#allocation5 + $0xc0] sm:$0xff]  ;;  %3264 = vmatpush1.bf16.msra.mxu0 %v7894_v50 }
  0x5a   :  { %v369_v48 = vld [vmem:[#allocation5 + $0x880] sm:$0xff]  ;;  %v7879_v52 = vcombine.high %v113_v46, %v121_v47  ;;  %3306 = vmatprep.subr.bf16.mxu1 %v8151_v45  ;;  %v7878_v0 = vcombine.low %v113_v46, %v121_v47 }
  0x5b   :  { %v377_v49 = vld [vmem:[#allocation5 + $0x8c0] sm:$0xff]  ;;  %3307 = vmatpush1.bf16.msra.mxu1 %v8150_v51 }
  0x5c   :  { %v97_v53 = vld [vmem:[#allocation5] sm:$0xff]  ;;  %v8135_v56 = vcombine.high %v369_v48, %v377_v49  ;;  %3265 = vmatprep.subr.bf16.mxu0 %v7879_v52  ;;  %v8134_v1 = vcombine.low %v369_v48, %v377_v49 }
  0x5d   :  { %v105_v57 = vld [vmem:[#allocation5 + $0x40] sm:$0xff]  ;;  %3266 = vmatpush1.bf16.msra.mxu0 %v7878_v0 }
  0x5e   :  { %v353_v61 = vld [vmem:[#allocation5 + $0x800] sm:$0xff]  ;;  %v7863_v2 = vcombine.high %v97_v53, %v105_v57  ;;  %3308 = vmatprep.subr.bf16.mxu1 %v8135_v56  ;;  %v7862_v8 = vcombine.low %v97_v53, %v105_v57 }
  0x5f   :  { %v361_v62 = vld [vmem:[#allocation5 + $0x840] sm:$0xff]  ;;  %3309 = vmatpush1.bf16.msra.mxu1 %v8134_v1 }
  0x60   :  { %v8119_v3 = vcombine.high %v353_v61, %v361_v62  ;;  %v337_v4 = vld [vmem:[#allocation5 + $0x780] sm:$0xff]  ;;  %3267 = vmatprep.subr.bf16.mxu0 %v7863_v2  ;;  %v8118_v9 = vcombine.low %v353_v61, %v361_v62 }
  0x61   :  { %v345_v5 = vld [vmem:[#allocation5 + $0x7c0] sm:$0xff]  ;;  %3268 = vmatpush1.bf16.msra.mxu0 %v7862_v8  ;;  %v466_v8 = vld [vmem:[#allocation5 + $0xb88] sm:$0xff] }
  0x62   :  { %v593_v6 = vld [vmem:[#allocation5 + $0xf80] sm:$0xff]  ;;  %v8103_v10 = vcombine.high %v337_v4, %v345_v5  ;;  %3310 = vmatprep.subr.bf16.mxu1 %v8119_v3  ;;  %v8102_v16 = vcombine.low %v337_v4, %v345_v5 }
  0x63   :  { %v601_v7 = vld [vmem:[#allocation5 + $0xfc0] sm:$0xff]  ;;  %3311 = vmatpush1.bf16.msra.mxu1 %v8118_v9  ;;  %v474_v9 = vld [vmem:[#allocation5 + $0xbc8] sm:$0xff] }
  0x64   :  { %v8359_v11 = vcombine.high %v593_v6, %v601_v7  ;;  %v321_v12 = vld [vmem:[#allocation5 + $0x700] sm:$0xff]  ;;  %3269 = vmatprep.subr.bf16.mxu0 %v8103_v10  ;;  %v8358_v17 = vcombine.low %v593_v6, %v601_v7  ;;  %v210_v6 = vld [vmem:[#allocation5 + $0x388] sm:$0xff] }
  0x65   :  { %v329_v13 = vld [vmem:[#allocation5 + $0x740] sm:$0xff]  ;;  %3270 = vmatpush2.bf16.msra.mxu0 %v8102_v16  ;;  %v218_v7 = vld [vmem:[#allocation5 + $0x3c8] sm:$0xff] }
  0x66   :  { %v577_v14 = vld [vmem:[#allocation5 + $0xf00] sm:$0xff]  ;;  %v8087_v18 = vcombine.high %v321_v12, %v329_v13  ;;  %3312 = vmatprep.subr.bf16.mxu1 %v8359_v11  ;;  %v8086_v24 = vcombine.low %v321_v12, %v329_v13  ;;  %v7977_v16 = vcombine.high %v210_v6, %v218_v7 }
  0x67   :  { %v585_v15 = vld [vmem:[#allocation5 + $0xf40] sm:$0xff]  ;;  %3313 = vmatpush2.bf16.msra.mxu1 %v8358_v17  ;;  %v8233_v17 = vcombine.high %v466_v8, %v474_v9 }
  0x68   :  { %v8343_v19 = vcombine.high %v577_v14, %v585_v15  ;;  %v305_v20 = vld [vmem:[#allocation5 + $0x680] sm:$0xff]  ;;  %3271 = vmatprep.subr.bf16.mxu0 %v8087_v18  ;;  %v8342_v25 = vcombine.low %v577_v14, %v585_v15  ;;  %v87_v14 = vld [vmem:[#allocation2 + $0x10] sm:$0xff]  ;;  %v194_v18 = vld [vmem:[#allocation5 + $0x308] sm:$0xff] }
  0x69   :  { %v313_v21 = vld [vmem:[#allocation5 + $0x6c0] sm:$0xff]  ;;  %3272 = vmatpush2.bf16.msra.mxu0 %v8086_v24  ;;  %v91_v15 = vld [vmem:[#allocation2 + $0x30] sm:$0xff]  ;;  %v7976_v24 = vcombine.low %v210_v6, %v218_v7  ;;  %v106_v6 = vld [vmem:[#allocation5 + $0x48] sm:$0xff] }
  0x6a   :  { %v561_v22 = vld [vmem:[#allocation5 + $0xe80] sm:$0xff]  ;;  %v8071_v26 = vcombine.high %v305_v20, %v313_v21  ;;  %3314 = vmatprep.subr.bf16.mxu1 %v8343_v19  ;;  %v8070_v32 = vcombine.low %v305_v20, %v313_v21  ;;  %v202_v19 = vld [vmem:[#allocation5 + $0x348] sm:$0xff] }
  0x6b   :  { %v569_v23 = vld [vmem:[#allocation5 + $0xec0] sm:$0xff]  ;;  %3315 = vmatpush2.bf16.msra.mxu1 %v8342_v25  ;;  %v450_v21 = vld [vmem:[#allocation5 + $0xb08] sm:$0xff]  ;;  %v8232_v25 = vcombine.low %v466_v8, %v474_v9 }
  0x6c   :  { %v8327_v27 = vcombine.high %v561_v22, %v569_v23  ;;  %v289_v28 = vld [vmem:[#allocation5 + $0x600] sm:$0xff]  ;;  %3273 = vmatprep.subr.bf16.mxu0 %v8071_v26  ;;  %v8326_v33 = vcombine.low %v561_v22, %v569_v23  ;;  %v458_v22 = vld [vmem:[#allocation5 + $0xb48] sm:$0xff]  ;;  %v9865_v23 = vpack.c.bf16 %v91_v15, %v87_v14  ;;  %v7961_v26 = vcombine.high %v194_v18, %v202_v19 }
  0x6d   :  { %v297_v29 = vld [vmem:[#allocation5 + $0x640] sm:$0xff]  ;;  %3274 = vmatpush2.bf16.msra.mxu0 %v8070_v32  ;;  %v7960_v32 = vcombine.low %v194_v18, %v202_v19  ;;  %v354_v7 = vld [vmem:[#allocation5 + $0x808] sm:$0xff] }
  0x6e   :  { %v545_v30 = vld [vmem:[#allocation5 + $0xe00] sm:$0xff]  ;;  %v8055_v34 = vcombine.high %v289_v28, %v297_v29  ;;  %3316 = vmatprep.subr.bf16.mxu1 %v8327_v27  ;;  %v8054_v40 = vcombine.low %v289_v28, %v297_v29  ;;  %v8217_v27 = vcombine.high %v450_v21, %v458_v22  ;;  %v178_v28 = vld [vmem:[#allocation5 + $0x288] sm:$0xff] }
  0x6f   :  { %v553_v31 = vld [vmem:[#allocation5 + $0xe40] sm:$0xff]  ;;  %3317 = vmatpush2.bf16.msra.mxu1 %v8326_v33  ;;  %v186_v29 = vld [vmem:[#allocation5 + $0x2c8] sm:$0xff]  ;;  %v8216_v33 = vcombine.low %v450_v21, %v458_v22 }
  0x70   :  { %v8311_v35 = vcombine.high %v545_v30, %v553_v31  ;;  %v273_v36 = vld [vmem:[#allocation5 + $0x580] sm:$0xff]  ;;  %3275 = vmatprep.subr.bf16.mxu0 %v8055_v34  ;;  %v8310_v41 = vcombine.low %v545_v30, %v553_v31  ;;  %v434_v30 = vld [vmem:[#allocation5 + $0xa88] sm:$0xff]  ;;  %v7945_v34 = vcombine.high %v178_v28, %v186_v29 }
  0x71   :  { %v281_v37 = vld [vmem:[#allocation5 + $0x5c0] sm:$0xff]  ;;  %3276 = vmatpush2.bf16.msra.mxu0 %v8054_v40  ;;  %v442_v31 = vld [vmem:[#allocation5 + $0xac8] sm:$0xff]  ;;  %v7944_v40 = vcombine.low %v178_v28, %v186_v29 }
  0x72   :  { %v529_v38 = vld [vmem:[#allocation5 + $0xd80] sm:$0xff]  ;;  %v8039_v42 = vcombine.high %v273_v36, %v281_v37  ;;  %3318 = vmatprep.subr.bf16.mxu1 %v8311_v35  ;;  %v8038_v48 = vcombine.low %v273_v36, %v281_v37  ;;  %v162_v35 = vld [vmem:[#allocation5 + $0x208] sm:$0xff] }
  0x73   :  { %v537_v39 = vld [vmem:[#allocation5 + $0xdc0] sm:$0xff]  ;;  %3319 = vmatpush2.bf16.msra.mxu1 %v8310_v41  ;;  %v170_v36 = vld [vmem:[#allocation5 + $0x248] sm:$0xff]  ;;  %v8200_v41 = vcombine.low %v434_v30, %v442_v31 }
  0x74   :  { %v8295_v43 = vcombine.high %v529_v38, %v537_v39  ;;  %v257_v44 = vld [vmem:[#allocation5 + $0x500] sm:$0xff]  ;;  %3277 = vmatprep.subr.bf16.mxu0 %v8039_v42  ;;  %v8294_v49 = vcombine.low %v529_v38, %v537_v39  ;;  %v418_v37 = vld [vmem:[#allocation5 + $0xa08] sm:$0xff]  ;;  %v8201_v38 = vcombine.high %v434_v30, %v442_v31  ;;  %v7929_v42 = vcombine.high %v162_v35, %v170_v36 }
  0x75   :  { %v265_v45 = vld [vmem:[#allocation5 + $0x540] sm:$0xff]  ;;  %3278 = vmatpush2.bf16.msra.mxu0 %v8038_v48  ;;  %v426_v39 = vld [vmem:[#allocation5 + $0xa48] sm:$0xff]  ;;  %v7928_v48 = vcombine.low %v162_v35, %v170_v36 }
  0x76   :  { %v513_v46 = vld [vmem:[#allocation5 + $0xd00] sm:$0xff]  ;;  %v8023_v50 = vcombine.high %v257_v44, %v265_v45  ;;  %3320 = vmatprep.subr.bf16.mxu1 %v8295_v43  ;;  %v8022_v56 = vcombine.low %v257_v44, %v265_v45  ;;  %v146_v43 = vld [vmem:[#allocation5 + $0x188] sm:$0xff] }
  0x77   :  { %v521_v47 = vld [vmem:[#allocation5 + $0xd40] sm:$0xff]  ;;  %3321 = vmatpush2.bf16.msra.mxu1 %v8294_v49  ;;  %v154_v44 = vld [vmem:[#allocation5 + $0x1c8] sm:$0xff]  ;;  %v8184_v49 = vcombine.low %v418_v37, %v426_v39 }
  0x78   :  { %v8279_v51 = vcombine.high %v513_v46, %v521_v47  ;;  %v241_v52 = vld [vmem:[#allocation5 + $0x480] sm:$0xff]  ;;  %3279 = vmatprep.subr.bf16.mxu0 %v8023_v50  ;;  %v8278_v57 = vcombine.low %v513_v46, %v521_v47  ;;  %v402_v45 = vld [vmem:[#allocation5 + $0x988] sm:$0xff]  ;;  %v8185_v46 = vcombine.high %v418_v37, %v426_v39  ;;  %v7913_v50 = vcombine.high %v146_v43, %v154_v44 }
  0x79   :  { %v249_v53 = vld [vmem:[#allocation5 + $0x4c0] sm:$0xff]  ;;  %3280 = vmatpush2.bf16.msra.mxu0 %v8022_v56  ;;  %v410_v47 = vld [vmem:[#allocation5 + $0x9c8] sm:$0xff]  ;;  %v7912_v56 = vcombine.low %v146_v43, %v154_v44 }
  0x7a   :  { %v497_v54 = vld [vmem:[#allocation5 + $0xc80] sm:$0xff]  ;;  %v8007_v59 = vcombine.high %v241_v52, %v249_v53  ;;  %3322 = vmatprep.subr.bf16.mxu1 %v8279_v51  ;;  %v8006_v2 = vcombine.low %v241_v52, %v249_v53  ;;  %v130_v51 = vld [vmem:[#allocation5 + $0x108] sm:$0xff] }
  0x7b   :  { %v505_v55 = vld [vmem:[#allocation5 + $0xcc0] sm:$0xff]  ;;  %3323 = vmatpush2.bf16.msra.mxu1 %v8278_v57  ;;  %v138_v52 = vld [vmem:[#allocation5 + $0x148] sm:$0xff]  ;;  %v8168_v57 = vcombine.low %v402_v45, %v410_v47 }
  0x7c   :  { %v8263_v60 = vcombine.high %v497_v54, %v505_v55  ;;  %v225_v61 = vld [vmem:[#allocation5 + $0x400] sm:$0xff]  ;;  %3281 = vmatprep.subr.bf16.mxu0 %v8007_v59  ;;  %v8262_v3 = vcombine.low %v497_v54, %v505_v55  ;;  %v386_v53 = vld [vmem:[#allocation5 + $0x908] sm:$0xff]  ;;  %v8169_v54 = vcombine.high %v402_v45, %v410_v47  ;;  %v7897_v59 = vcombine.high %v130_v51, %v138_v52 }
  0x7d   :  { %v233_v62 = vld [vmem:[#allocation5 + $0x440] sm:$0xff]  ;;  %3282 = vmatpush2.bf16.msra.mxu0 %v8006_v2  ;;  %v394_v55 = vld [vmem:[#allocation5 + $0x948] sm:$0xff]  ;;  %v7896_v2 = vcombine.low %v130_v51, %v138_v52 }
  0x7e   :  { %v481_v0 = vld [vmem:[#allocation5 + $0xc00] sm:$0xff]  ;;  %v7991_v4 = vcombine.high %v225_v61, %v233_v62  ;;  %3324 = vmatprep.subr.bf16.mxu1 %v8263_v60  ;;  %v7990_v10 = vcombine.low %v225_v61, %v233_v62  ;;  %v114_v60 = vld [vmem:[#allocation5 + $0x88] sm:$0xff] }
  0x7f   :  { %v489_v1 = vld [vmem:[#allocation5 + $0xc40] sm:$0xff]  ;;  %3325 = vmatpush2.bf16.msra.mxu1 %v8262_v3  ;;  %v122_v61 = vld [vmem:[#allocation5 + $0xc8] sm:$0xff]  ;;  %v8152_v3 = vcombine.low %v386_v53, %v394_v55 }
  0x80   :  { %v8247_v5 = vcombine.high %v481_v0, %v489_v1  ;;  %v85_v11 = vld [vmem:[#allocation2] sm:$0xff]  ;;  %3283 = vmatprep.subr.bf16.mxu0 %v7991_v4  ;;  %v8246_v13 = vcombine.low %v481_v0, %v489_v1  ;;  %v370_v62 = vld [vmem:[#allocation5 + $0x888] sm:$0xff]  ;;  %v8153_v0 = vcombine.high %v386_v53, %v394_v55  ;;  %v7881_v4 = vcombine.high %v114_v60, %v122_v61 }
  0x81   :  { %v89_v12 = vld [vmem:[#allocation2 + $0x20] sm:$0xff]  ;;  %3284 = vmatpush2.bf16.msra.mxu0 %v7990_v10  ;;  %v378_v1 = vld [vmem:[#allocation5 + $0x8c8] sm:$0xff]  ;;  %v7880_v10 = vcombine.low %v114_v60, %v122_v61 }
  0x82   :  { %3326 = vmatprep.subr.bf16.mxu1 %v8247_v5  ;;  %v9863_v20 = vpack.c.bf16 %v89_v12, %v85_v11  ;;  %3339 = vmatprep.subr.bf16.mxu0 %v7977_v16  ;;  %v98_v5 = vld [vmem:[#allocation5 + $0x8] sm:$0xff]  ;;  %v8137_v8 = vcombine.high %v370_v62, %v378_v1  ;;  %v8136_v11 = vcombine.low %v370_v62, %v378_v1 }
  0x83   :  { %3327 = vmatpush2.bf16.msra.mxu1 %v8246_v13  ;;  %v362_v9 = vld [vmem:[#allocation5 + $0x848] sm:$0xff]  ;;  %v7865_v12 = vcombine.high %v98_v5, %v106_v6  ;;  %v7864_v18 = vcombine.low %v98_v5, %v106_v6 }
  0x84   :  { %3382 = vmatprep.subr.bf16.mxu1 %v8233_v17  ;;  %3286 = vmatmul.mubr.bf16.vlgmr.msra.gmra.mxu0 %v9863_v20  ;;  %v338_v13 = vld [vmem:[#allocation5 + $0x788] sm:$0xff]  ;;  %v8121_v16 = vcombine.high %v354_v7, %v362_v9  ;;  %v8120_v19 = vcombine.low %v354_v7, %v362_v9 }
  0x85   :  { %3340 = vmatpush1.bf16.msra.mxu0 %v7976_v24  ;;  %3371 = vmatprep.mubr.bf16.mxu0 %v9857_v58  ;;  %v346_v14 = vld [vmem:[#allocation5 + $0x7c8] sm:$0xff] }
  0x86   :  { %3329 = vmatmul.mubr.bf16.vlgmr.msra.gmra.mxu1 %v9865_v23  ;;  %3341 = vmatprep.subr.bf16.mxu0 %v7961_v26  ;;  %v594_v15 = vld [vmem:[#allocation5 + $0xf88] sm:$0xff]  ;;  %v8105_v21 = vcombine.high %v338_v13, %v346_v14  ;;  %v8104_v28 = vcombine.low %v338_v13, %v346_v14 }
  0x87   :  { %3383 = vmatpush1.bf16.msra.mxu1 %v8232_v25  ;;  %3414 = vmatprep.mubr.bf16.mxu1 %v9859_v63  ;;  %v602_v17 = vld [vmem:[#allocation5 + $0xfc8] sm:$0xff] }
  0x88   :  { %3384 = vmatprep.subr.bf16.mxu1 %v8217_v27  ;;  %v322_v22 = vld [vmem:[#allocation5 + $0x708] sm:$0xff]  ;;  %v8361_v26 = vcombine.high %v594_v15, %v602_v17  ;;  %v8360_v29 = vcombine.low %v594_v15, %v602_v17  ;;  %v211_v17 = vld [vmem:[#allocation5 + $0x390] sm:$0xff] }
  0x89   :  { %3342 = vmatpush1.bf16.msra.mxu0 %v7960_v32  ;;  %v330_v24 = vld [vmem:[#allocation5 + $0x748] sm:$0xff] }
  0x8a   :  { %3343 = vmatprep.subr.bf16.mxu0 %v7945_v34  ;;  %v578_v25 = vld [vmem:[#allocation5 + $0xf08] sm:$0xff]  ;;  %v8089_v30 = vcombine.high %v322_v22, %v330_v24  ;;  %v8088_v36 = vcombine.low %v322_v22, %v330_v24  ;;  %v475_v22 = vld [vmem:[#allocation5 + $0xbd0] sm:$0xff] }
  0x8b   :  { %3385 = vmatpush1.bf16.msra.mxu1 %v8216_v33  ;;  %v586_v27 = vld [vmem:[#allocation5 + $0xf48] sm:$0xff] }
  0x8c   :  { %3386 = vmatprep.subr.bf16.mxu1 %v8201_v38  ;;  %v306_v31 = vld [vmem:[#allocation5 + $0x688] sm:$0xff]  ;;  %v8345_v34 = vcombine.high %v578_v25, %v586_v27  ;;  %v8344_v37 = vcombine.low %v578_v25, %v586_v27  ;;  %v195_v27 = vld [vmem:[#allocation5 + $0x310] sm:$0xff] }
  0x8d   :  { %3344 = vmatpush1.bf16.msra.mxu0 %v7944_v40  ;;  %v314_v32 = vld [vmem:[#allocation5 + $0x6c8] sm:$0xff] }
  0x8e   :  { %3345 = vmatprep.subr.bf16.mxu0 %v7929_v42  ;;  %v562_v33 = vld [vmem:[#allocation5 + $0xe88] sm:$0xff]  ;;  %v8073_v38 = vcombine.high %v306_v31, %v314_v32  ;;  %v8072_v44 = vcombine.low %v306_v31, %v314_v32  ;;  %v459_v31 = vld [vmem:[#allocation5 + $0xb50] sm:$0xff] }
  0x8f   :  { %3387 = vmatpush1.bf16.msra.mxu1 %v8200_v41  ;;  %v570_v35 = vld [vmem:[#allocation5 + $0xec8] sm:$0xff] }
  0x90   :  { %3388 = vmatprep.subr.bf16.mxu1 %v8185_v46  ;;  %v290_v39 = vld [vmem:[#allocation5 + $0x608] sm:$0xff]  ;;  %v8329_v42 = vcombine.high %v562_v33, %v570_v35  ;;  %v8328_v45 = vcombine.low %v562_v33, %v570_v35  ;;  %v179_v35 = vld [vmem:[#allocation5 + $0x290] sm:$0xff] }
  0x91   :  { %3346 = vmatpush1.bf16.msra.mxu0 %v7928_v48  ;;  %v298_v40 = vld [vmem:[#allocation5 + $0x648] sm:$0xff] }
  0x92   :  { %3347 = vmatprep.subr.bf16.mxu0 %v7913_v50  ;;  %v546_v41 = vld [vmem:[#allocation5 + $0xe08] sm:$0xff]  ;;  %v8057_v46 = vcombine.high %v290_v39, %v298_v40  ;;  %v8056_v52 = vcombine.low %v290_v39, %v298_v40  ;;  %v443_v39 = vld [vmem:[#allocation5 + $0xad0] sm:$0xff] }
  0x93   :  { %3389 = vmatpush1.bf16.msra.mxu1 %v8184_v49  ;;  %v554_v43 = vld [vmem:[#allocation5 + $0xe48] sm:$0xff] }
  0x94   :  { %3390 = vmatprep.subr.bf16.mxu1 %v8169_v54  ;;  %v274_v47 = vld [vmem:[#allocation5 + $0x588] sm:$0xff]  ;;  %v8313_v50 = vcombine.high %v546_v41, %v554_v43  ;;  %v8312_v53 = vcombine.low %v546_v41, %v554_v43  ;;  %v163_v43 = vld [vmem:[#allocation5 + $0x210] sm:$0xff] }
  0x95   :  { %3348 = vmatpush1.bf16.msra.mxu0 %v7912_v56  ;;  %v282_v48 = vld [vmem:[#allocation5 + $0x5c8] sm:$0xff] }
  0x96   :  { %3349 = vmatprep.subr.bf16.mxu0 %v7897_v59  ;;  %v530_v49 = vld [vmem:[#allocation5 + $0xd88] sm:$0xff]  ;;  %v8041_v54 = vcombine.high %v274_v47, %v282_v48  ;;  %v8040_v61 = vcombine.low %v274_v47, %v282_v48  ;;  %v427_v47 = vld [vmem:[#allocation5 + $0xa50] sm:$0xff] }
  0x97   :  { %3391 = vmatpush1.bf16.msra.mxu1 %v8168_v57  ;;  %v538_v51 = vld [vmem:[#allocation5 + $0xdc8] sm:$0xff] }
  0x98   :  { %3392 = vmatprep.subr.bf16.mxu1 %v8153_v0  ;;  %v258_v55 = vld [vmem:[#allocation5 + $0x508] sm:$0xff]  ;;  %v8297_v59 = vcombine.high %v530_v49, %v538_v51  ;;  %v8296_v62 = vcombine.low %v530_v49, %v538_v51  ;;  %v147_v51 = vld [vmem:[#allocation5 + $0x190] sm:$0xff] }
  0x99   :  { %3350 = vmatpush1.bf16.msra.mxu0 %v7896_v2  ;;  %v266_v56 = vld [vmem:[#allocation5 + $0x548] sm:$0xff] }
  0x9a   :  { %3351 = vmatprep.subr.bf16.mxu0 %v7881_v4  ;;  %v514_v57 = vld [vmem:[#allocation5 + $0xd08] sm:$0xff]  ;;  %v8025_v0 = vcombine.high %v258_v55, %v266_v56  ;;  %v8024_v6 = vcombine.low %v258_v55, %v266_v56  ;;  %v411_v55 = vld [vmem:[#allocation5 + $0x9d0] sm:$0xff] }
  0x9b   :  { %3393 = vmatpush1.bf16.msra.mxu1 %v8152_v3  ;;  %v522_v60 = vld [vmem:[#allocation5 + $0xd48] sm:$0xff] }
  0x9c   :  { %3394 = vmatprep.subr.bf16.mxu1 %v8137_v8  ;;  %v242_v1 = vld [vmem:[#allocation5 + $0x488] sm:$0xff]  ;;  %v8281_v4 = vcombine.high %v514_v57, %v522_v60  ;;  %v8280_v7 = vcombine.low %v514_v57, %v522_v60  ;;  %v131_v60 = vld [vmem:[#allocation5 + $0x110] sm:$0xff] }
  0x9d   :  { %3352 = vmatpush1.bf16.msra.mxu0 %v7880_v10  ;;  %v250_v2 = vld [vmem:[#allocation5 + $0x4c8] sm:$0xff] }
  0x9e   :  { %3353 = vmatprep.subr.bf16.mxu0 %v7865_v12  ;;  %v498_v3 = vld [vmem:[#allocation5 + $0xc88] sm:$0xff]  ;;  %v8009_v8 = vcombine.high %v242_v1, %v250_v2  ;;  %v8008_v14 = vcombine.low %v242_v1, %v250_v2  ;;  %v395_v1 = vld [vmem:[#allocation5 + $0x950] sm:$0xff] }
  0x9f   :  { %3395 = vmatpush1.bf16.msra.mxu1 %v8136_v11  ;;  %v506_v5 = vld [vmem:[#allocation5 + $0xcc8] sm:$0xff] }
  0xa0   :  { %3396 = vmatprep.subr.bf16.mxu1 %v8121_v16  ;;  %v226_v9 = vld [vmem:[#allocation5 + $0x408] sm:$0xff]  ;;  %v8265_v12 = vcombine.high %v498_v3, %v506_v5  ;;  %v8264_v15 = vcombine.low %v498_v3, %v506_v5  ;;  %v115_v5 = vld [vmem:[#allocation5 + $0x90] sm:$0xff] }
  0xa1   :  { %3354 = vmatpush1.bf16.msra.mxu0 %v7864_v18  ;;  %v234_v10 = vld [vmem:[#allocation5 + $0x448] sm:$0xff]  ;;  %v219_v18 = vld [vmem:[#allocation5 + $0x3d0] sm:$0xff] }
  0xa2   :  { %3355 = vmatprep.subr.bf16.mxu0 %v8105_v21  ;;  %v482_v11 = vld [vmem:[#allocation5 + $0xc08] sm:$0xff]  ;;  %v7993_v16 = vcombine.high %v226_v9, %v234_v10  ;;  %v7992_v24 = vcombine.low %v226_v9, %v234_v10  ;;  %v7978_v32 = vcombine.low %v211_v17, %v219_v18  ;;  %v379_v9 = vld [vmem:[#allocation5 + $0x8d0] sm:$0xff] }
  0xa3   :  { %3397 = vmatpush1.bf16.msra.mxu1 %v8120_v19  ;;  %v490_v13 = vld [vmem:[#allocation5 + $0xc48] sm:$0xff]  ;;  %v467_v19 = vld [vmem:[#allocation5 + $0xb90] sm:$0xff] }
  0xa4   :  { %3398 = vmatprep.subr.bf16.mxu1 %v8361_v26  ;;  %v8249_v21 = vcombine.high %v482_v11, %v490_v13  ;;  %v8248_v25 = vcombine.low %v482_v11, %v490_v13  ;;  %v7979_v26 = vcombine.high %v211_v17, %v219_v18  ;;  %v8234_v33 = vcombine.low %v467_v19, %v475_v22  ;;  %v99_v13 = vld [vmem:[#allocation5 + $0x10] sm:$0xff] }
  0xa5   :  { %3356 = vmatpush2.bf16.msra.mxu0 %v8104_v28  ;;  %v203_v28 = vld [vmem:[#allocation5 + $0x350] sm:$0xff] }
  0xa6   :  { %3357 = vmatprep.subr.bf16.mxu0 %v8089_v30  ;;  %v8235_v30 = vcombine.high %v467_v19, %v475_v22  ;;  %v7962_v40 = vcombine.low %v195_v27, %v203_v28  ;;  %v363_v17 = vld [vmem:[#allocation5 + $0x850] sm:$0xff] }
  0xa7   :  { %3399 = vmatpush2.bf16.msra.mxu1 %v8360_v29  ;;  %v451_v29 = vld [vmem:[#allocation5 + $0xb10] sm:$0xff] }
  0xa8   :  { %3400 = vmatprep.subr.bf16.mxu1 %v8345_v34  ;;  %v7963_v34 = vcombine.high %v195_v27, %v203_v28  ;;  %v8218_v41 = vcombine.low %v451_v29, %v459_v31  ;;  %v339_v22 = vld [vmem:[#allocation5 + $0x790] sm:$0xff] }
  0xa9   :  { %3358 = vmatpush2.bf16.msra.mxu0 %v8088_v36  ;;  %v187_v36 = vld [vmem:[#allocation5 + $0x2d0] sm:$0xff] }
  0xaa   :  { %3359 = vmatprep.subr.bf16.mxu0 %v8073_v38  ;;  %v435_v38 = vld [vmem:[#allocation5 + $0xa90] sm:$0xff]  ;;  %v7946_v48 = vcombine.low %v179_v35, %v187_v36 }
  0xab   :  { %3401 = vmatpush2.bf16.msra.mxu1 %v8344_v37  ;;  %v8219_v37 = vcombine.high %v451_v29, %v459_v31  ;;  %v8202_v49 = vcombine.low %v435_v38, %v443_v39  ;;  %v603_v27 = vld [vmem:[#allocation5 + $0xfd0] sm:$0xff] }
  0xac   :  { %3402 = vmatprep.subr.bf16.mxu1 %v8329_v42  ;;  %v7947_v42 = vcombine.high %v179_v35, %v187_v36  ;;  %v323_v31 = vld [vmem:[#allocation5 + $0x710] sm:$0xff] }
  0xad   :  { %3360 = vmatpush2.bf16.msra.mxu0 %v8072_v44  ;;  %v171_v44 = vld [vmem:[#allocation5 + $0x250] sm:$0xff] }
  0xae   :  { %3361 = vmatprep.subr.bf16.mxu0 %v8057_v46  ;;  %v8203_v46 = vcombine.high %v435_v38, %v443_v39  ;;  %v7930_v56 = vcombine.low %v163_v43, %v171_v44  ;;  %v587_v35 = vld [vmem:[#allocation5 + $0xf50] sm:$0xff] }
  0xaf   :  { %3403 = vmatpush2.bf16.msra.mxu1 %v8328_v45  ;;  %v419_v45 = vld [vmem:[#allocation5 + $0xa10] sm:$0xff] }
  0xb0   :  { %3404 = vmatprep.subr.bf16.mxu1 %v8313_v50  ;;  %v7931_v50 = vcombine.high %v163_v43, %v171_v44  ;;  %v8186_v57 = vcombine.low %v419_v45, %v427_v47  ;;  %v307_v39 = vld [vmem:[#allocation5 + $0x690] sm:$0xff] }
  0xb1   :  { %3362 = vmatpush2.bf16.msra.mxu0 %v8056_v52  ;;  %v155_v52 = vld [vmem:[#allocation5 + $0x1d0] sm:$0xff] }
  0xb2   :  { %3363 = vmatprep.subr.bf16.mxu0 %v8041_v54  ;;  %v8187_v54 = vcombine.high %v419_v45, %v427_v47  ;;  %v7914_v2 = vcombine.low %v147_v51, %v155_v52  ;;  %v571_v43 = vld [vmem:[#allocation5 + $0xed0] sm:$0xff] }
  0xb3   :  { %3405 = vmatpush2.bf16.msra.mxu1 %v8312_v53  ;;  %v403_v53 = vld [vmem:[#allocation5 + $0x990] sm:$0xff] }
  0xb4   :  { %3406 = vmatprep.subr.bf16.mxu1 %v8297_v59  ;;  %v7915_v59 = vcombine.high %v147_v51, %v155_v52  ;;  %v8170_v3 = vcombine.low %v403_v53, %v411_v55  ;;  %v291_v47 = vld [vmem:[#allocation5 + $0x610] sm:$0xff] }
  0xb5   :  { %3364 = vmatpush2.bf16.msra.mxu0 %v8040_v61  ;;  %v139_v61 = vld [vmem:[#allocation5 + $0x150] sm:$0xff] }
  0xb6   :  { %3365 = vmatprep.subr.bf16.mxu0 %v8025_v0  ;;  %v8171_v0 = vcombine.high %v403_v53, %v411_v55  ;;  %v7898_v10 = vcombine.low %v131_v60, %v139_v61  ;;  %v555_v51 = vld [vmem:[#allocation5 + $0xe50] sm:$0xff] }
  0xb7   :  { %3407 = vmatpush2.bf16.msra.mxu1 %v8296_v62  ;;  %v387_v62 = vld [vmem:[#allocation5 + $0x910] sm:$0xff] }
  0xb8   :  { %3408 = vmatprep.subr.bf16.mxu1 %v8281_v4  ;;  %v7899_v4 = vcombine.high %v131_v60, %v139_v61  ;;  %v8154_v11 = vcombine.low %v387_v62, %v395_v1  ;;  %v275_v55 = vld [vmem:[#allocation5 + $0x590] sm:$0xff] }
  0xb9   :  { %3366 = vmatpush2.bf16.msra.mxu0 %v8024_v6  ;;  %v123_v6 = vld [vmem:[#allocation5 + $0xd0] sm:$0xff] }
  0xba   :  { %3367 = vmatprep.subr.bf16.mxu0 %v8009_v8  ;;  %v8155_v8 = vcombine.high %v387_v62, %v395_v1  ;;  %v7882_v18 = vcombine.low %v115_v5, %v123_v6  ;;  %v539_v60 = vld [vmem:[#allocation5 + $0xdd0] sm:$0xff] }
  0xbb   :  { %3409 = vmatpush2.bf16.msra.mxu1 %v8280_v7  ;;  %v371_v7 = vld [vmem:[#allocation5 + $0x890] sm:$0xff] }
  0xbc   :  { %3410 = vmatprep.subr.bf16.mxu1 %v8265_v12  ;;  %v7883_v12 = vcombine.high %v115_v5, %v123_v6  ;;  %v8138_v19 = vcombine.low %v371_v7, %v379_v9  ;;  %v259_v1 = vld [vmem:[#allocation5 + $0x510] sm:$0xff] }
  0xbd   :  { %3368 = vmatpush2.bf16.msra.mxu0 %v8008_v14  ;;  %v107_v14 = vld [vmem:[#allocation5 + $0x50] sm:$0xff] }
  0xbe   :  { %3369 = vmatprep.subr.bf16.mxu0 %v7993_v16  ;;  %v8139_v16 = vcombine.high %v371_v7, %v379_v9  ;;  %v7866_v28 = vcombine.low %v99_v13, %v107_v14  ;;  %v523_v5 = vld [vmem:[#allocation5 + $0xd50] sm:$0xff] }
  0xbf   :  { %3411 = vmatpush2.bf16.msra.mxu1 %v8264_v15  ;;  %v355_v15 = vld [vmem:[#allocation5 + $0x810] sm:$0xff] }
  0xc0   :  { %3412 = vmatprep.subr.bf16.mxu1 %v8249_v21  ;;  %v7867_v21 = vcombine.high %v99_v13, %v107_v14  ;;  %v8122_v29 = vcombine.low %v355_v15, %v363_v17  ;;  %v243_v9 = vld [vmem:[#allocation5 + $0x490] sm:$0xff] }
  0xc1   :  { %3370 = vmatpush2.bf16.msra.mxu0 %v7992_v24  ;;  %v347_v24 = vld [vmem:[#allocation5 + $0x7d0] sm:$0xff] }
  0xc2   :  { %3425 = vmatprep.subr.bf16.mxu0 %v7979_v26  ;;  %v8123_v26 = vcombine.high %v355_v15, %v363_v17  ;;  %v8106_v36 = vcombine.low %v339_v22, %v347_v24  ;;  %v507_v13 = vld [vmem:[#allocation5 + $0xcd0] sm:$0xff] }
  0xc3   :  { %3413 = vmatpush2.bf16.msra.mxu1 %v8248_v25  ;;  %v595_v25 = vld [vmem:[#allocation5 + $0xf90] sm:$0xff] }
  0xc4   :  { %3468 = vmatprep.subr.bf16.mxu1 %v8235_v30  ;;  %3372 = vmatmul.mubr.bf16.vlgmr.msra.gmra.mxu0 %v9863_v20  ;;  %v8107_v30 = vcombine.high %v339_v22, %v347_v24  ;;  %v227_v17 = vld [vmem:[#allocation5 + $0x410] sm:$0xff] }
  0xc5   :  { %3426 = vmatpush1.bf16.msra.mxu0 %v7978_v32  ;;  %3457 = vmatprep.mubr.bf16.mxu0 %v9857_v58  ;;  %v331_v32 = vld [vmem:[#allocation5 + $0x750] sm:$0xff] }
  0xc6   :  { %3415 = vmatmul.mubr.bf16.vlgmr.msra.gmra.mxu1 %v9865_v23  ;;  %3427 = vmatprep.subr.bf16.mxu0 %v7963_v34  ;;  %v8363_v34 = vcombine.high %v595_v25, %v603_v27  ;;  %v8091_v38 = vcombine.high %v323_v31, %v331_v32  ;;  %v8090_v44 = vcombine.low %v323_v31, %v331_v32  ;;  %v491_v22 = vld [vmem:[#allocation5 + $0xc50] sm:$0xff]  ;;  %v476_v31 = vld [vmem:[#allocation5 + $0xbd8] sm:$0xff] }
  0xc7   :  { %3469 = vmatpush1.bf16.msra.mxu1 %v8234_v33  ;;  %3500 = vmatprep.mubr.bf16.mxu1 %v9859_v63  ;;  %v579_v33 = vld [vmem:[#allocation5 + $0xf10] sm:$0xff] }
  0xc8   :  { %3470 = vmatprep.subr.bf16.mxu1 %v8219_v37  ;;  %v8362_v37 = vcombine.low %v595_v25, %v603_v27  ;;  %v8346_v45 = vcombine.low %v579_v33, %v587_v35  ;;  %v212_v27 = vld [vmem:[#allocation5 + $0x398] sm:$0xff] }
  0xc9   :  { %3428 = vmatpush1.bf16.msra.mxu0 %v7962_v40  ;;  %v315_v40 = vld [vmem:[#allocation5 + $0x6d0] sm:$0xff] }
  0xca   :  { %3429 = vmatprep.subr.bf16.mxu0 %v7947_v42  ;;  %v8347_v42 = vcombine.high %v579_v33, %v587_v35  ;;  %v8074_v52 = vcombine.low %v307_v39, %v315_v40  ;;  %v196_v35 = vld [vmem:[#allocation5 + $0x318] sm:$0xff] }
  0xcb   :  { %3471 = vmatpush1.bf16.msra.mxu1 %v8218_v41  ;;  %v563_v41 = vld [vmem:[#allocation5 + $0xe90] sm:$0xff] }
  0xcc   :  { %3472 = vmatprep.subr.bf16.mxu1 %v8203_v46  ;;  %v8075_v46 = vcombine.high %v307_v39, %v315_v40  ;;  %v8330_v53 = vcombine.low %v563_v41, %v571_v43  ;;  %v460_v39 = vld [vmem:[#allocation5 + $0xb58] sm:$0xff] }
  0xcd   :  { %3430 = vmatpush1.bf16.msra.mxu0 %v7946_v48  ;;  %v299_v48 = vld [vmem:[#allocation5 + $0x650] sm:$0xff] }
  0xce   :  { %3431 = vmatprep.subr.bf16.mxu0 %v7931_v50  ;;  %v8331_v50 = vcombine.high %v563_v41, %v571_v43  ;;  %v8058_v61 = vcombine.low %v291_v47, %v299_v48  ;;  %v180_v43 = vld [vmem:[#allocation5 + $0x298] sm:$0xff] }
  0xcf   :  { %3473 = vmatpush1.bf16.msra.mxu1 %v8202_v49  ;;  %v547_v49 = vld [vmem:[#allocation5 + $0xe10] sm:$0xff] }
  0xd0   :  { %3474 = vmatprep.subr.bf16.mxu1 %v8187_v54  ;;  %v8059_v54 = vcombine.high %v291_v47, %v299_v48  ;;  %v8314_v62 = vcombine.low %v547_v49, %v555_v51  ;;  %v444_v47 = vld [vmem:[#allocation5 + $0xad8] sm:$0xff] }
  0xd1   :  { %3432 = vmatpush1.bf16.msra.mxu0 %v7930_v56  ;;  %v283_v56 = vld [vmem:[#allocation5 + $0x5d0] sm:$0xff] }
  0xd2   :  { %3433 = vmatprep.subr.bf16.mxu0 %v7915_v59  ;;  %v8315_v59 = vcombine.high %v547_v49, %v555_v51  ;;  %v8042_v6 = vcombine.low %v275_v55, %v283_v56  ;;  %v164_v51 = vld [vmem:[#allocation5 + $0x218] sm:$0xff] }
  0xd3   :  { %3475 = vmatpush1.bf16.msra.mxu1 %v8186_v57  ;;  %v531_v57 = vld [vmem:[#allocation5 + $0xd90] sm:$0xff] }
  0xd4   :  { %3476 = vmatprep.subr.bf16.mxu1 %v8171_v0  ;;  %v8043_v0 = vcombine.high %v275_v55, %v283_v56  ;;  %v8298_v7 = vcombine.low %v531_v57, %v539_v60  ;;  %v428_v55 = vld [vmem:[#allocation5 + $0xa58] sm:$0xff] }
  0xd5   :  { %3434 = vmatpush1.bf16.msra.mxu0 %v7914_v2  ;;  %v267_v2 = vld [vmem:[#allocation5 + $0x550] sm:$0xff] }
  0xd6   :  { %3435 = vmatprep.subr.bf16.mxu0 %v7899_v4  ;;  %v8299_v4 = vcombine.high %v531_v57, %v539_v60  ;;  %v8026_v14 = vcombine.low %v259_v1, %v267_v2  ;;  %v148_v60 = vld [vmem:[#allocation5 + $0x198] sm:$0xff] }
  0xd7   :  { %3477 = vmatpush1.bf16.msra.mxu1 %v8170_v3  ;;  %v515_v3 = vld [vmem:[#allocation5 + $0xd10] sm:$0xff] }
  0xd8   :  { %3478 = vmatprep.subr.bf16.mxu1 %v8155_v8  ;;  %v8027_v8 = vcombine.high %v259_v1, %v267_v2  ;;  %v8282_v15 = vcombine.low %v515_v3, %v523_v5  ;;  %v412_v1 = vld [vmem:[#allocation5 + $0x9d8] sm:$0xff] }
  0xd9   :  { %3436 = vmatpush1.bf16.msra.mxu0 %v7898_v10  ;;  %v251_v10 = vld [vmem:[#allocation5 + $0x4d0] sm:$0xff] }
  0xda   :  { %3437 = vmatprep.subr.bf16.mxu0 %v7883_v12  ;;  %v8283_v12 = vcombine.high %v515_v3, %v523_v5  ;;  %v8010_v24 = vcombine.low %v243_v9, %v251_v10  ;;  %v132_v5 = vld [vmem:[#allocation5 + $0x118] sm:$0xff] }
  0xdb   :  { %3479 = vmatpush1.bf16.msra.mxu1 %v8154_v11  ;;  %v499_v11 = vld [vmem:[#allocation5 + $0xc90] sm:$0xff] }
  0xdc   :  { %3480 = vmatprep.subr.bf16.mxu1 %v8139_v16  ;;  %v8011_v16 = vcombine.high %v243_v9, %v251_v10  ;;  %v8266_v25 = vcombine.low %v499_v11, %v507_v13  ;;  %v396_v9 = vld [vmem:[#allocation5 + $0x958] sm:$0xff] }
  0xdd   :  { %3438 = vmatpush1.bf16.msra.mxu0 %v7882_v18  ;;  %v235_v18 = vld [vmem:[#allocation5 + $0x450] sm:$0xff] }
  0xde   :  { %3439 = vmatprep.subr.bf16.mxu0 %v7867_v21  ;;  %v8267_v21 = vcombine.high %v499_v11, %v507_v13  ;;  %v7994_v32 = vcombine.low %v227_v17, %v235_v18  ;;  %v116_v13 = vld [vmem:[#allocation5 + $0x98] sm:$0xff] }
  0xdf   :  { %3481 = vmatpush1.bf16.msra.mxu1 %v8138_v19  ;;  %v483_v19 = vld [vmem:[#allocation5 + $0xc10] sm:$0xff] }
  0xe0   :  { %3482 = vmatprep.subr.bf16.mxu1 %v8123_v26  ;;  %v7995_v26 = vcombine.high %v227_v17, %v235_v18  ;;  %v8250_v33 = vcombine.low %v483_v19, %v491_v22  ;;  %v380_v17 = vld [vmem:[#allocation5 + $0x8d8] sm:$0xff] }
  0xe1   :  { %3440 = vmatpush1.bf16.msra.mxu0 %v7866_v28  ;;  %v220_v28 = vld [vmem:[#allocation5 + $0x3d8] sm:$0xff] }
  0xe2   :  { %3441 = vmatprep.subr.bf16.mxu0 %v8107_v30  ;;  %v8251_v30 = vcombine.high %v483_v19, %v491_v22  ;;  %v7980_v40 = vcombine.low %v212_v27, %v220_v28  ;;  %v100_v22 = vld [vmem:[#allocation5 + $0x18] sm:$0xff] }
  0xe3   :  { %3483 = vmatpush1.bf16.msra.mxu1 %v8122_v29  ;;  %v468_v29 = vld [vmem:[#allocation5 + $0xb98] sm:$0xff] }
  0xe4   :  { %3484 = vmatprep.subr.bf16.mxu1 %v8363_v34  ;;  %v7981_v34 = vcombine.high %v212_v27, %v220_v28  ;;  %v8236_v41 = vcombine.low %v468_v29, %v476_v31  ;;  %v364_v27 = vld [vmem:[#allocation5 + $0x858] sm:$0xff] }
  0xe5   :  { %3442 = vmatpush2.bf16.msra.mxu0 %v8106_v36  ;;  %v204_v36 = vld [vmem:[#allocation5 + $0x358] sm:$0xff] }
  0xe6   :  { %3443 = vmatprep.subr.bf16.mxu0 %v8091_v38  ;;  %v8237_v38 = vcombine.high %v468_v29, %v476_v31  ;;  %v7964_v48 = vcombine.low %v196_v35, %v204_v36  ;;  %v340_v31 = vld [vmem:[#allocation5 + $0x798] sm:$0xff] }
  0xe7   :  { %3485 = vmatpush2.bf16.msra.mxu1 %v8362_v37  ;;  %v452_v37 = vld [vmem:[#allocation5 + $0xb18] sm:$0xff] }
  0xe8   :  { %3486 = vmatprep.subr.bf16.mxu1 %v8347_v42  ;;  %v7965_v42 = vcombine.high %v196_v35, %v204_v36  ;;  %v8220_v49 = vcombine.low %v452_v37, %v460_v39  ;;  %v604_v35 = vld [vmem:[#allocation5 + $0xfd8] sm:$0xff] }
  0xe9   :  { %3444 = vmatpush2.bf16.msra.mxu0 %v8090_v44  ;;  %v188_v44 = vld [vmem:[#allocation5 + $0x2d8] sm:$0xff] }
  0xea   :  { %3445 = vmatprep.subr.bf16.mxu0 %v8075_v46  ;;  %v8221_v46 = vcombine.high %v452_v37, %v460_v39  ;;  %v7948_v56 = vcombine.low %v180_v43, %v188_v44  ;;  %v324_v39 = vld [vmem:[#allocation5 + $0x718] sm:$0xff] }
  0xeb   :  { %3487 = vmatpush2.bf16.msra.mxu1 %v8346_v45  ;;  %v436_v45 = vld [vmem:[#allocation5 + $0xa98] sm:$0xff] }
  0xec   :  { %3488 = vmatprep.subr.bf16.mxu1 %v8331_v50  ;;  %v7949_v50 = vcombine.high %v180_v43, %v188_v44  ;;  %v8204_v57 = vcombine.low %v436_v45, %v444_v47  ;;  %v588_v43 = vld [vmem:[#allocation5 + $0xf58] sm:$0xff] }
  0xed   :  { %3446 = vmatpush2.bf16.msra.mxu0 %v8074_v52  ;;  %v172_v52 = vld [vmem:[#allocation5 + $0x258] sm:$0xff] }
  0xee   :  { %3447 = vmatprep.subr.bf16.mxu0 %v8059_v54  ;;  %v8205_v54 = vcombine.high %v436_v45, %v444_v47  ;;  %v7932_v2 = vcombine.low %v164_v51, %v172_v52  ;;  %v308_v47 = vld [vmem:[#allocation5 + $0x698] sm:$0xff] }
  0xef   :  { %3489 = vmatpush2.bf16.msra.mxu1 %v8330_v53  ;;  %v420_v53 = vld [vmem:[#allocation5 + $0xa18] sm:$0xff] }
  0xf0   :  { %3490 = vmatprep.subr.bf16.mxu1 %v8315_v59  ;;  %v7933_v59 = vcombine.high %v164_v51, %v172_v52  ;;  %v8188_v3 = vcombine.low %v420_v53, %v428_v55  ;;  %v572_v51 = vld [vmem:[#allocation5 + $0xed8] sm:$0xff] }
  0xf1   :  { %3448 = vmatpush2.bf16.msra.mxu0 %v8058_v61  ;;  %v156_v61 = vld [vmem:[#allocation5 + $0x1d8] sm:$0xff] }
  0xf2   :  { %3449 = vmatprep.subr.bf16.mxu0 %v8043_v0  ;;  %v8189_v0 = vcombine.high %v420_v53, %v428_v55  ;;  %v7916_v10 = vcombine.low %v148_v60, %v156_v61  ;;  %v292_v55 = vld [vmem:[#allocation5 + $0x618] sm:$0xff] }
  0xf3   :  { %3491 = vmatpush2.bf16.msra.mxu1 %v8314_v62  ;;  %v404_v62 = vld [vmem:[#allocation5 + $0x998] sm:$0xff] }
  0xf4   :  { %3492 = vmatprep.subr.bf16.mxu1 %v8299_v4  ;;  %v7917_v4 = vcombine.high %v148_v60, %v156_v61  ;;  %v8172_v11 = vcombine.low %v404_v62, %v412_v1  ;;  %v556_v60 = vld [vmem:[#allocation5 + $0xe58] sm:$0xff] }
  0xf5   :  { %3450 = vmatpush2.bf16.msra.mxu0 %v8042_v6  ;;  %v140_v6 = vld [vmem:[#allocation5 + $0x158] sm:$0xff] }
  0xf6   :  { %3451 = vmatprep.subr.bf16.mxu0 %v8027_v8  ;;  %v8173_v8 = vcombine.high %v404_v62, %v412_v1  ;;  %v7900_v18 = vcombine.low %v132_v5, %v140_v6  ;;  %v276_v1 = vld [vmem:[#allocation5 + $0x598] sm:$0xff] }
  0xf7   :  { %3493 = vmatpush2.bf16.msra.mxu1 %v8298_v7  ;;  %v388_v7 = vld [vmem:[#allocation5 + $0x918] sm:$0xff] }
  0xf8   :  { %3494 = vmatprep.subr.bf16.mxu1 %v8283_v12  ;;  %v7901_v12 = vcombine.high %v132_v5, %v140_v6  ;;  %v8156_v19 = vcombine.low %v388_v7, %v396_v9  ;;  %v540_v5 = vld [vmem:[#allocation5 + $0xdd8] sm:$0xff] }
  0xf9   :  { %3452 = vmatpush2.bf16.msra.mxu0 %v8026_v14  ;;  %v124_v14 = vld [vmem:[#allocation5 + $0xd8] sm:$0xff] }
  0xfa   :  { %3453 = vmatprep.subr.bf16.mxu0 %v8011_v16  ;;  %v8157_v16 = vcombine.high %v388_v7, %v396_v9  ;;  %v7884_v28 = vcombine.low %v116_v13, %v124_v14  ;;  %v260_v9 = vld [vmem:[#allocation5 + $0x518] sm:$0xff] }
  0xfb   :  { %3495 = vmatpush2.bf16.msra.mxu1 %v8282_v15  ;;  %v372_v15 = vld [vmem:[#allocation5 + $0x898] sm:$0xff] }
  0xfc   :  { %3496 = vmatprep.subr.bf16.mxu1 %v8267_v21  ;;  %v7885_v21 = vcombine.high %v116_v13, %v124_v14  ;;  %v8140_v29 = vcombine.low %v372_v15, %v380_v17  ;;  %v524_v13 = vld [vmem:[#allocation5 + $0xd58] sm:$0xff] }
  0xfd   :  { %3454 = vmatpush2.bf16.msra.mxu0 %v8010_v24  ;;  %v108_v24 = vld [vmem:[#allocation5 + $0x58] sm:$0xff] }
  0xfe   :  { %3455 = vmatprep.subr.bf16.mxu0 %v7995_v26  ;;  %v8141_v26 = vcombine.high %v372_v15, %v380_v17  ;;  %v7868_v36 = vcombine.low %v100_v22, %v108_v24  ;;  %v244_v17 = vld [vmem:[#allocation5 + $0x498] sm:$0xff] }
  0xff   :  { %3497 = vmatpush2.bf16.msra.mxu1 %v8266_v25  ;;  %v356_v25 = vld [vmem:[#allocation5 + $0x818] sm:$0xff] }
 0x100   :  { %3498 = vmatprep.subr.bf16.mxu1 %v8251_v30  ;;  %v7869_v30 = vcombine.high %v100_v22, %v108_v24  ;;  %v8124_v37 = vcombine.low %v356_v25, %v364_v27  ;;  %v508_v22 = vld [vmem:[#allocation5 + $0xcd8] sm:$0xff] }
 0x101   :  { %3456 = vmatpush2.bf16.msra.mxu0 %v7994_v32  ;;  %v348_v32 = vld [vmem:[#allocation5 + $0x7d8] sm:$0xff] }
 0x102   :  { %3511 = vmatprep.subr.bf16.mxu0 %v7981_v34  ;;  %v8125_v34 = vcombine.high %v356_v25, %v364_v27  ;;  %v8108_v44 = vcombine.low %v340_v31, %v348_v32  ;;  %v613_v25 = vlaneseq }
 0x103   :  { %3499 = vmatpush2.bf16.msra.mxu1 %v8250_v33  ;;  %v596_v33 = vld [vmem:[#allocation5 + $0xf98] sm:$0xff] }
 0x104   :  { %3554 = vmatprep.subr.bf16.mxu1 %v8237_v38  ;;  %3458 = vmatmul.mubr.bf16.vlgmr.msra.gmra.mxu0 %v9863_v20  ;;  %v8109_v38 = vcombine.high %v340_v31, %v348_v32  ;;  %v8364_v45 = vcombine.low %v596_v33, %v604_v35  ;;  %v492_v32 = vld [vmem:[#allocation5 + $0xc58] sm:$0xff] }
 0x105   :  { %3512 = vmatpush1.bf16.msra.mxu0 %v7980_v40  ;;  %3543 = vmatprep.mubr.bf16.mxu0 %v9857_v58  ;;  %v332_v40 = vld [vmem:[#allocation5 + $0x758] sm:$0xff] }
 0x106   :  { %3501 = vmatmul.mubr.bf16.vlgmr.msra.gmra.mxu1 %v9865_v23  ;;  %3513 = vmatprep.subr.bf16.mxu0 %v7965_v42  ;;  %v8365_v42 = vcombine.high %v596_v33, %v604_v35  ;;  %v8092_v52 = vcombine.low %v324_v39, %v332_v40 }
 0x107   :  { %3555 = vmatpush1.bf16.msra.mxu1 %v8236_v41  ;;  %3586 = vmatprep.mubr.bf16.mxu1 %v9859_v63  ;;  %v580_v41 = vld [vmem:[#allocation5 + $0xf18] sm:$0xff] }
 0x108   :  { %3556 = vmatprep.subr.bf16.mxu1 %v8221_v46  ;;  %v8093_v46 = vcombine.high %v324_v39, %v332_v40  ;;  %v8348_v53 = vcombine.low %v580_v41, %v588_v43  ;;  %v469_v39 = vld [vmem:[#allocation5 + $0xba0] sm:$0xff] }
 0x109   :  { %3514 = vmatpush1.bf16.msra.mxu0 %v7964_v48  ;;  %v316_v48 = vld [vmem:[#allocation5 + $0x6d8] sm:$0xff] }
 0x10a   :  { %3515 = vmatprep.subr.bf16.mxu0 %v7949_v50  ;;  %v8349_v50 = vcombine.high %v580_v41, %v588_v43  ;;  %v8076_v61 = vcombine.low %v308_v47, %v316_v48  ;;  %v477_v41 = vld [vmem:[#allocation5 + $0xbe0] sm:$0xff] }
 0x10b   :  { %3557 = vmatpush1.bf16.msra.mxu1 %v8220_v49  ;;  %v564_v49 = vld [vmem:[#allocation5 + $0xe98] sm:$0xff] }
 0x10c   :  { %3558 = vmatprep.subr.bf16.mxu1 %v8205_v54  ;;  %v8077_v54 = vcombine.high %v308_v47, %v316_v48  ;;  %v8332_v62 = vcombine.low %v564_v49, %v572_v51  ;;  %v197_v47 = vld [vmem:[#allocation5 + $0x320] sm:$0xff] }
 0x10d   :  { %3516 = vmatpush1.bf16.msra.mxu0 %v7948_v56  ;;  %v300_v56 = vld [vmem:[#allocation5 + $0x658] sm:$0xff]  ;;  %v205_v48 = vld [vmem:[#allocation5 + $0x360] sm:$0xff] }
 0x10e   :  { %3517 = vmatprep.subr.bf16.mxu0 %v7933_v59  ;;  %v8333_v59 = vcombine.high %v564_v49, %v572_v51  ;;  %v8060_v6 = vcombine.low %v292_v55, %v300_v56  ;;  %v453_v49 = vld [vmem:[#allocation5 + $0xb20] sm:$0xff] }
 0x10f   :  { %3559 = vmatpush1.bf16.msra.mxu1 %v8204_v57  ;;  %v548_v57 = vld [vmem:[#allocation5 + $0xe18] sm:$0xff]  ;;  %v461_v51 = vld [vmem:[#allocation5 + $0xb60] sm:$0xff] }
 0x110   :  { %3560 = vmatprep.subr.bf16.mxu1 %v8189_v0  ;;  %v8061_v0 = vcombine.high %v292_v55, %v300_v56  ;;  %v8316_v7 = vcombine.low %v548_v57, %v556_v60  ;;  %v7967_v55 = vcombine.high %v197_v47, %v205_v48  ;;  %v181_v56 = vld [vmem:[#allocation5 + $0x2a0] sm:$0xff] }
 0x111   :  { %3518 = vmatpush1.bf16.msra.mxu0 %v7932_v2  ;;  %v284_v2 = vld [vmem:[#allocation5 + $0x5d8] sm:$0xff] }
 0x112   :  { %3519 = vmatprep.subr.bf16.mxu0 %v7917_v4  ;;  %v8317_v4 = vcombine.high %v548_v57, %v556_v60  ;;  %v8044_v14 = vcombine.low %v276_v1, %v284_v2  ;;  %v189_v57 = vld [vmem:[#allocation5 + $0x2e0] sm:$0xff]  ;;  %v8223_v60 = vcombine.high %v453_v49, %v461_v51 }
 0x113   :  { %3561 = vmatpush1.bf16.msra.mxu1 %v8188_v3  ;;  %v532_v3 = vld [vmem:[#allocation5 + $0xd98] sm:$0xff] }
 0x114   :  { %3562 = vmatprep.subr.bf16.mxu1 %v8173_v8  ;;  %v8045_v8 = vcombine.high %v276_v1, %v284_v2  ;;  %v8300_v15 = vcombine.low %v532_v3, %v540_v5  ;;  %v7966_v2 = vcombine.low %v197_v47, %v205_v48  ;;  %v125_v47 = vld [vmem:[#allocation5 + $0xe0] sm:$0xff] }
 0x115   :  { %3520 = vmatpush1.bf16.msra.mxu0 %v7916_v10  ;;  %v268_v10 = vld [vmem:[#allocation5 + $0x558] sm:$0xff]  ;;  %v373_v48 = vld [vmem:[#allocation5 + $0x8a0] sm:$0xff] }
 0x116   :  { %3521 = vmatprep.subr.bf16.mxu0 %v7901_v12  ;;  %v8301_v12 = vcombine.high %v532_v3, %v540_v5  ;;  %v8028_v24 = vcombine.low %v260_v9, %v268_v10  ;;  %v7951_v5 = vcombine.high %v181_v56, %v189_v57 }
 0x117   :  { %3563 = vmatpush1.bf16.msra.mxu1 %v8172_v11  ;;  %v516_v11 = vld [vmem:[#allocation5 + $0xd18] sm:$0xff] }
 0x118   :  { %3564 = vmatprep.subr.bf16.mxu1 %v8157_v16  ;;  %v8029_v16 = vcombine.high %v260_v9, %v268_v10 }
 0x119   :  { %3522 = vmatpush1.bf16.msra.mxu0 %v7900_v18  ;;  %v252_v18 = vld [vmem:[#allocation5 + $0x4d8] sm:$0xff] }
 0x11a   :  { %3523 = vmatprep.subr.bf16.mxu0 %v7885_v21  ;;  %v8285_v21 = vcombine.high %v516_v11, %v524_v13  ;;  %v8013_v27 = vcombine.high %v244_v17, %v252_v18  ;;  %v8012_v33 = vcombine.low %v244_v17, %v252_v18 }
 0x11b   :  { %3565 = vmatpush1.bf16.msra.mxu1 %v8156_v19  ;;  %v500_v19 = vld [vmem:[#allocation5 + $0xc98] sm:$0xff] }
 0x11c   :  { %3566 = vmatprep.subr.bf16.mxu1 %v8141_v26  ;;  %v8284_v26 = vcombine.low %v516_v11, %v524_v13  ;;  %v8269_v31 = vcombine.high %v500_v19, %v508_v22  ;;  %v8268_v35 = vcombine.low %v500_v19, %v508_v22  ;;  %v149_v19 = vld [vmem:[#allocation5 + $0x1a0] sm:$0xff] }
 0x11d   :  { %3524 = vmatpush1.bf16.msra.mxu0 %v7884_v28  ;;  %v228_v28 = vld [vmem:[#allocation5 + $0x418] sm:$0xff]  ;;  %v405_v22 = vld [vmem:[#allocation5 + $0x9a0] sm:$0xff] }
 0x11e   :  { %3525 = vmatprep.subr.bf16.mxu0 %v7869_v30  ;;  %v484_v30 = vld [vmem:[#allocation5 + $0xc18] sm:$0xff] }
 0x11f   :  { %3567 = vmatpush1.bf16.msra.mxu1 %v8140_v29  ;;  %v236_v29 = vld [vmem:[#allocation5 + $0x458] sm:$0xff]  ;;  %v8253_v40 = vcombine.high %v484_v30, %v492_v32 }
 0x120   :  { %3568 = vmatprep.subr.bf16.mxu1 %v8125_v34  ;;  %v9879_v34 = vshrl.u32 %v613_v25, 7  ;;  %v7996_v43 = vcombine.low %v228_v28, %v236_v29 }
 0x121   :  { %3526 = vmatpush1.bf16.msra.mxu0 %v7868_v36  ;;  %v7997_v36 = vcombine.high %v228_v28, %v236_v29 }
 0x122   :  { %3527 = vmatprep.subr.bf16.mxu0 %v8109_v38  ;;  %v221_v38 = vld [vmem:[#allocation5 + $0x3e0] sm:$0xff] }
 0x123   :  { %3569 = vmatpush1.bf16.msra.mxu1 %v8124_v37  ;;  %v213_v37 = vld [vmem:[#allocation5 + $0x3a0] sm:$0xff] }
 0x124   :  { %3570 = vmatprep.subr.bf16.mxu1 %v8365_v42  ;;  %v9881_v42 = vld [vmem:[#allocation7] sm:$0xff] }
 0x125   :  { %3528 = vmatpush2.bf16.msra.mxu0 %v8108_v44  ;;  %v9884_v44 = vsub.s32 0, %v9879_v34 }
 0x126   :  { %3529 = vmatprep.subr.bf16.mxu0 %v8093_v46  ;;  %v7983_v46 = vcombine.high %v213_v37, %v221_v38 }
 0x127   :  { %3571 = vmatpush2.bf16.msra.mxu1 %v8364_v45  ;;  %v8252_v45 = vcombine.low %v484_v30, %v492_v32  ;;  %v133_v32 = vld [vmem:[#allocation5 + $0x120] sm:$0xff] }
 0x128   :  { %3572 = vmatprep.subr.bf16.mxu1 %v8349_v50  ;;  %v8239_v50 = vcombine.high %v469_v39, %v477_v41 }
 0x129   :  { %3530 = vmatpush2.bf16.msra.mxu0 %v8092_v52  ;;  %v616_v52 = vrot.slane %v9881_v42, %v9884_v44 }
 0x12a   :  { %3531 = vmatprep.subr.bf16.mxu0 %v8077_v54  ;;  %v8238_v54 = vcombine.low %v469_v39, %v477_v41  ;;  %v397_v39 = vld [vmem:[#allocation5 + $0x960] sm:$0xff] }
 0x12b   :  { %3573 = vmatpush2.bf16.msra.mxu1 %v8348_v53  ;;  %v7982_v53 = vcombine.low %v213_v37, %v221_v38 }
 0x12c   :  { %3574 = vmatprep.subr.bf16.mxu1 %v8333_v59  ;;  %v437_v59 = vld [vmem:[#allocation5 + $0xaa0] sm:$0xff] }
 0x12d   :  { %3532 = vmatpush2.bf16.msra.mxu0 %v8076_v61  ;;  %v445_v61 = vld [vmem:[#allocation5 + $0xae0] sm:$0xff] }
 0x12e   :  { %3533 = vmatprep.subr.bf16.mxu0 %v8061_v0  ;;  %v8207_v11 = vcombine.high %v437_v59, %v445_v61  ;;  %v8206_v17 = vcombine.low %v437_v59, %v445_v61  ;;  %v365_v59 = vld [vmem:[#allocation5 + $0x860] sm:$0xff] }
 0x12f   :  { %3575 = vmatpush2.bf16.msra.mxu1 %v8332_v62 }
 0x130   :  { %3576 = vmatprep.subr.bf16.mxu1 %v8317_v4  ;;  %v8222_v4 = vcombine.low %v453_v49, %v461_v51 }
 0x131   :  { %3534 = vmatpush2.bf16.msra.mxu0 %v8060_v6  ;;  %v165_v6 = vld [vmem:[#allocation5 + $0x220] sm:$0xff] }
 0x132   :  { %3535 = vmatprep.subr.bf16.mxu0 %v8045_v8  ;;  %v421_v8 = vld [vmem:[#allocation5 + $0xa20] sm:$0xff] }
 0x133   :  { %3577 = vmatpush2.bf16.msra.mxu1 %v8316_v7  ;;  %v173_v7 = vld [vmem:[#allocation5 + $0x260] sm:$0xff] }
 0x134   :  { %3578 = vmatprep.subr.bf16.mxu1 %v8301_v12  ;;  %v429_v12 = vld [vmem:[#allocation5 + $0xa60] sm:$0xff]  ;;  %v7935_v18 = vcombine.high %v165_v6, %v173_v7  ;;  %v7934_v29 = vcombine.low %v165_v6, %v173_v7 }
 0x135   :  { %3536 = vmatpush2.bf16.msra.mxu0 %v8044_v14  ;;  %v8190_v30 = vcombine.low %v421_v8, %v429_v12 }
 0x136   :  { %3537 = vmatprep.subr.bf16.mxu0 %v8029_v16 }
 0x137   :  { %3579 = vmatpush2.bf16.msra.mxu1 %v8300_v15  ;;  %v7950_v15 = vcombine.low %v181_v56, %v189_v57  ;;  %v357_v56 = vld [vmem:[#allocation5 + $0x820] sm:$0xff] }
 0x138   :  { %3580 = vmatprep.subr.bf16.mxu1 %v8285_v21  ;;  %v157_v21 = vld [vmem:[#allocation5 + $0x1e0] sm:$0xff]  ;;  %v8126_v7 = vcombine.low %v357_v56, %v365_v59 }
 0x139   :  { %3538 = vmatpush2.bf16.msra.mxu0 %v8028_v24  ;;  %v7918_v41 = vcombine.low %v149_v19, %v157_v21 }
 0x13a   :  { %3539 = vmatprep.subr.bf16.mxu0 %v8013_v27  ;;  %v413_v27 = vld [vmem:[#allocation5 + $0x9e0] sm:$0xff] }
 0x13b   :  { %3581 = vmatpush2.bf16.msra.mxu1 %v8284_v26  ;;  %v8191_v26 = vcombine.high %v421_v8, %v429_v12  ;;  %v8175_v38 = vcombine.high %v405_v22, %v413_v27  ;;  %v581_v12 = vld [vmem:[#allocation5 + $0xf20] sm:$0xff] }
 0x13c   :  { %3582 = vmatprep.subr.bf16.mxu1 %v8269_v31  ;;  %v7919_v31 = vcombine.high %v149_v19, %v157_v21  ;;  %v317_v19 = vld [vmem:[#allocation5 + $0x6e0] sm:$0xff] }
 0x13d   :  { %3540 = vmatpush2.bf16.msra.mxu0 %v8012_v33  ;;  %v141_v33 = vld [vmem:[#allocation5 + $0x160] sm:$0xff] }
 0x13e   :  { %3541 = vmatprep.subr.bf16.mxu0 %v7997_v36  ;;  %v7902_v51 = vcombine.low %v133_v32, %v141_v33  ;;  %v565_v21 = vld [vmem:[#allocation5 + $0xea0] sm:$0xff] }
 0x13f   :  { %3583 = vmatpush2.bf16.msra.mxu1 %v8268_v35  ;;  %v389_v35 = vld [vmem:[#allocation5 + $0x920] sm:$0xff] }
 0x140   :  { %3584 = vmatprep.subr.bf16.mxu1 %v8253_v40  ;;  %v8159_v49 = vcombine.high %v389_v35, %v397_v39 }
 0x141   :  { %3542 = vmatpush2.bf16.msra.mxu0 %v7996_v43  ;;  %v8174_v43 = vcombine.low %v405_v22, %v413_v27 }
 0x142   :  { %3597 = vmatprep.subr.bf16.mxu0 %v7983_v46  ;;  %v117_v46 = vld [vmem:[#allocation5 + $0xa0] sm:$0xff] }
 0x143   :  { %3585 = vmatpush2.bf16.msra.mxu1 %v8252_v45  ;;  %v7903_v45 = vcombine.high %v133_v32, %v141_v33  ;;  %v557_v32 = vld [vmem:[#allocation5 + $0xe60] sm:$0xff] }
 0x144   :  { %3640 = vmatprep.subr.bf16.mxu1 %v8239_v50  ;;  %v3287_v62 = vpop.f32.mrf.mxu0  ;;  %3544 = vmatmul.mubr.bf16.vlgmr.msra.gmra.mxu0 %v9863_v20  ;;  %v381_v50 = vld [vmem:[#allocation5 + $0x8e0] sm:$0xff] }
 0x145   :  { %v3288_v0 = vadd.f32 %v3287_v62, %v616_v52  ;;  %3598 = vmatpush1.bf16.msra.mxu0 %v7982_v53  ;;  %3629 = vmatprep.mubr.bf16.mxu0 %v9857_v58  ;;  %v7887_v53 = vcombine.high %v117_v46, %v125_v47  ;;  %v8143_v57 = vcombine.high %v373_v48, %v381_v50 }
 0x146   :  { %v3330_v1 = vpop.f32.mrf.mxu1  ;;  %3587 = vmatmul.mubr.bf16.vlgmr.msra.gmra.mxu1 %v9865_v23  ;;  %v9890_v3 = vpop.f32.mrf.mxu0  ;;  %3599 = vmatprep.subr.bf16.mxu0 %v7967_v55  ;;  %v109_v55 = vld [vmem:[#allocation5 + $0x60] sm:$0xff]  ;;  %v8142_v61 = vcombine.low %v373_v48, %v381_v50 }
 0x147   :  { %3641 = vmatpush1.bf16.msra.mxu1 %v8238_v54  ;;  %v3331_v9 = vadd.f32 %v3330_v1, %v3288_v0  ;;  %3672 = vmatprep.mubr.bf16.mxu1 %v9859_v63  ;;  %v101_v54 = vld [vmem:[#allocation5 + $0x20] sm:$0xff] }
 0x148   :  { %v9892_v10 = vpop.f32.mrf.mxu1  ;;  %3642 = vmatprep.subr.bf16.mxu1 %v8223_v60  ;;  %v3291_v13 = vpop.f32.mrf.mxu0  ;;  %v7886_v60 = vcombine.low %v117_v46, %v125_v47  ;;  %v7871_v62 = vcombine.high %v101_v54, %v109_v55  ;;  %v341_v0 = vld [vmem:[#allocation5 + $0x7a0] sm:$0xff]  ;;  %v7870_v6 = vcombine.low %v101_v54, %v109_v55 }
 0x149   :  { %v3292_v14 = vadd.f32 %v3291_v13, %v616_v52  ;;  %3600 = vmatpush1.bf16.msra.mxu0 %v7966_v2  ;;  %v3973_v24 = vmul.f32 0.01, %v3331_v9  ;;  %vm3941_vm0 = vcmp.gt.f32.partialorder %v3331_v9, 0.0  ;;  %v8158_v52 = vcombine.low %v389_v35, %v397_v39  ;;  %v349_v1 = vld [vmem:[#allocation5 + $0x7e0] sm:$0xff] }
 0x14a   :  { %v3334_v16 = vpop.f32.mrf.mxu1  ;;  %3601 = vmatprep.subr.bf16.mxu0 %v7951_v5  ;;  %v597_v2 = vld [vmem:[#allocation5 + $0xfa0] sm:$0xff]  ;;  %v8111_v8 = vcombine.high %v341_v0, %v349_v1 }
 0x14b   :  { %3643 = vmatpush1.bf16.msra.mxu1 %v8222_v4  ;;  %v3335_v25 = vadd.f32 %v3334_v16, %v3292_v14  ;;  %v4005_v36 = vsel %vm3941_vm0, %v3331_v9, %v3973_v24  ;;  %v8127_v4 = vcombine.high %v357_v56, %v365_v59  ;;  %v605_v5 = vld [vmem:[#allocation5 + $0xfe0] sm:$0xff] }
 0x14c   :  { %3644 = vmatprep.subr.bf16.mxu1 %v8207_v11  ;;  %v325_v9 = vld [vmem:[#allocation5 + $0x720] sm:$0xff]  ;;  %v8367_v13 = vcombine.high %v597_v2, %v605_v5  ;;  %v8366_v16 = vcombine.low %v597_v2, %v605_v5 }
 0x14d   :  { %vm3957_vm1 = vcmp.gt.f32.partialorder %v3335_v25, 0.0  ;;  %v3989_v28 = vmul.f32 0.01, %v3335_v25  ;;  %3602 = vmatpush1.bf16.msra.mxu0 %v7950_v15  ;;  %v333_v11 = vld [vmem:[#allocation5 + $0x760] sm:$0xff]  ;;  %v8110_v15 = vcombine.low %v341_v0, %v349_v1 }
 0x14e   :  { %3603 = vmatprep.subr.bf16.mxu0 %v7935_v18  ;;  %v589_v14 = vld [vmem:[#allocation5 + $0xf60] sm:$0xff] }
 0x14f   :  { %3645 = vmatpush1.bf16.msra.mxu1 %v8206_v17  ;;  %v4021_v37 = vsel %vm3957_vm1, %v3335_v25, %v3989_v28  ;;  %v8095_v17 = vcombine.high %v325_v9, %v333_v11  ;;  %v309_v18 = vld [vmem:[#allocation5 + $0x6a0] sm:$0xff]  ;;  %v8351_v22 = vcombine.high %v581_v12, %v589_v14  ;;  %v8094_v25 = vcombine.low %v325_v9, %v333_v11 }
 0x150   :  { %3646 = vmatprep.subr.bf16.mxu1 %v8191_v26  ;;  %v9896_v40 = vpack.c.bf16 %v4021_v37, %v4005_v36  ;;  %v573_v24 = vld [vmem:[#allocation5 + $0xee0] sm:$0xff]  ;;  %v8350_v26 = vcombine.low %v581_v12, %v589_v14  ;;  %v8079_v27 = vcombine.high %v309_v18, %v317_v19  ;;  %v8078_v33 = vcombine.low %v309_v18, %v317_v19  ;;  %v214_v12 = vld [vmem:[#allocation5 + $0x3a8] sm:$0xff] }
 0x151   :  { %3604 = vmatpush1.bf16.msra.mxu0 %v7934_v29  ;;  %v293_v28 = vld [vmem:[#allocation5 + $0x620] sm:$0xff]  ;;  %v8334_v35 = vcombine.low %v565_v21, %v573_v24  ;;  %v470_v14 = vld [vmem:[#allocation5 + $0xba8] sm:$0xff]  ;;  %v9899_v18 = vsub.s32 2, %v9879_v34 }
 0x152   :  { %3605 = vmatprep.subr.bf16.mxu0 %v7919_v31  ;;  %v301_v29 = vld [vmem:[#allocation5 + $0x660] sm:$0xff]  ;;  %v8335_v31 = vcombine.high %v565_v21, %v573_v24  ;;  %v206_v24 = vld [vmem:[#allocation5 + $0x368] sm:$0xff] }
 0x153   :  { %3647 = vmatpush1.bf16.msra.mxu1 %v8190_v30  ;;  %v549_v30 = vld [vmem:[#allocation5 + $0xe20] sm:$0xff]  ;;  %v8063_v36 = vcombine.high %v293_v28, %v301_v29 }
 0x154   :  { %3648 = vmatprep.subr.bf16.mxu1 %v8175_v38  ;;  %v277_v37 = vld [vmem:[#allocation5 + $0x5a0] sm:$0xff]  ;;  %v8318_v46 = vcombine.low %v549_v30, %v557_v32 }
 0x155   :  { %3606 = vmatpush1.bf16.msra.mxu0 %v7918_v41  ;;  %v285_v38 = vld [vmem:[#allocation5 + $0x5e0] sm:$0xff]  ;;  %v8319_v41 = vcombine.high %v549_v30, %v557_v32  ;;  %v9903_v30 = vpop.f32.mrf.mxu0 }
 0x156   :  { %3607 = vmatprep.subr.bf16.mxu0 %v7903_v45  ;;  %v533_v39 = vld [vmem:[#allocation5 + $0xda0] sm:$0xff]  ;;  %v8062_v45 = vcombine.low %v293_v28, %v301_v29  ;;  %v8047_v47 = vcombine.high %v277_v37, %v285_v38  ;;  %v624_v28 = vrot.slane %v9881_v42, %v9899_v18 }
 0x157   :  { %3649 = vmatpush1.bf16.msra.mxu1 %v8174_v43  ;;  %v541_v43 = vld [vmem:[#allocation5 + $0xde0] sm:$0xff] }
 0x158   :  { %3650 = vmatprep.subr.bf16.mxu1 %v8159_v49  ;;  %v261_v48 = vld [vmem:[#allocation5 + $0x520] sm:$0xff]  ;;  %v8302_v54 = vcombine.low %v533_v39, %v541_v43 }
 0x159   :  { %3608 = vmatpush1.bf16.msra.mxu0 %v7902_v51  ;;  %v269_v49 = vld [vmem:[#allocation5 + $0x560] sm:$0xff]  ;;  %v8303_v51 = vcombine.high %v533_v39, %v541_v43  ;;  %v446_v39 = vld [vmem:[#allocation5 + $0xae8] sm:$0xff] }
 0x15a   :  { %3609 = vmatprep.subr.bf16.mxu0 %v7887_v53  ;;  %v517_v50 = vld [vmem:[#allocation5 + $0xd20] sm:$0xff]  ;;  %v8046_v53 = vcombine.low %v277_v37, %v285_v38  ;;  %v8031_v55 = vcombine.high %v261_v48, %v269_v49  ;;  %v9905_v37 = vpop.f32.mrf.mxu1 }
 0x15b   :  { %3651 = vmatpush1.bf16.msra.mxu1 %v8158_v52  ;;  %v525_v52 = vld [vmem:[#allocation5 + $0xd60] sm:$0xff] }
 0x15c   :  { %3652 = vmatprep.subr.bf16.mxu1 %v8143_v57  ;;  %v245_v56 = vld [vmem:[#allocation5 + $0x4a0] sm:$0xff]  ;;  %v8286_v0 = vcombine.low %v517_v50, %v525_v52 }
 0x15d   :  { %3610 = vmatpush1.bf16.msra.mxu0 %v7886_v60  ;;  %v253_v57 = vld [vmem:[#allocation5 + $0x4e0] sm:$0xff]  ;;  %v8287_v60 = vcombine.high %v517_v50, %v525_v52  ;;  %v166_v52 = vld [vmem:[#allocation5 + $0x228] sm:$0xff] }
 0x15e   :  { %3611 = vmatprep.subr.bf16.mxu0 %v7871_v62  ;;  %v501_v59 = vld [vmem:[#allocation5 + $0xca0] sm:$0xff]  ;;  %v8030_v62 = vcombine.low %v261_v48, %v269_v49  ;;  %v8015_v1 = vcombine.high %v245_v56, %v253_v57 }
 0x15f   :  { %3653 = vmatpush1.bf16.msra.mxu1 %v8142_v61  ;;  %v509_v61 = vld [vmem:[#allocation5 + $0xce0] sm:$0xff] }
 0x160   :  { %3654 = vmatprep.subr.bf16.mxu1 %v8127_v4  ;;  %v229_v2 = vld [vmem:[#allocation5 + $0x420] sm:$0xff]  ;;  %v8270_v9 = vcombine.low %v501_v59, %v509_v61 }
 0x161   :  { %3612 = vmatpush1.bf16.msra.mxu0 %v7870_v6  ;;  %v237_v4 = vld [vmem:[#allocation5 + $0x460] sm:$0xff]  ;;  %v8271_v6 = vcombine.high %v501_v59, %v509_v61 }
 0x162   :  { %3613 = vmatprep.subr.bf16.mxu0 %v8111_v8  ;;  %v485_v5 = vld [vmem:[#allocation5 + $0xc20] sm:$0xff]  ;;  %v8014_v8 = vcombine.low %v245_v56, %v253_v57  ;;  %v7999_v11 = vcombine.high %v229_v2, %v237_v4  ;;  %v430_v56 = vld [vmem:[#allocation5 + $0xa68] sm:$0xff] }
 0x163   :  { %3655 = vmatpush1.bf16.msra.mxu1 %v8126_v7  ;;  %v493_v7 = vld [vmem:[#allocation5 + $0xc60] sm:$0xff] }
 0x164   :  { %3656 = vmatprep.subr.bf16.mxu1 %v8367_v13  ;;  %v222_v13 = vld [vmem:[#allocation5 + $0x3e8] sm:$0xff]  ;;  %v8254_v19 = vcombine.low %v485_v5, %v493_v7 }
 0x165   :  { %3614 = vmatpush2.bf16.msra.mxu0 %v8110_v15  ;;  %v8255_v15 = vcombine.high %v485_v5, %v493_v7  ;;  %v7985_v21 = vcombine.high %v214_v12, %v222_v13  ;;  %v7984_v29 = vcombine.low %v214_v12, %v222_v13  ;;  %v158_v5 = vld [vmem:[#allocation5 + $0x1e8] sm:$0xff] }
 0x166   :  { %3615 = vmatprep.subr.bf16.mxu0 %v8095_v17  ;;  %v7998_v17 = vcombine.low %v229_v2, %v237_v4  ;;  %v150_v4 = vld [vmem:[#allocation5 + $0x1a8] sm:$0xff] }
 0x167   :  { %3657 = vmatpush2.bf16.msra.mxu1 %v8366_v16  ;;  %v478_v16 = vld [vmem:[#allocation5 + $0xbe8] sm:$0xff]  ;;  %v7921_v12 = vcombine.high %v150_v4, %v158_v5 }
 0x168   :  { %3658 = vmatprep.subr.bf16.mxu1 %v8351_v22  ;;  %v198_v22 = vld [vmem:[#allocation5 + $0x328] sm:$0xff] }
 0x169   :  { %3616 = vmatpush2.bf16.msra.mxu0 %v8094_v25  ;;  %v454_v25 = vld [vmem:[#allocation5 + $0xb28] sm:$0xff]  ;;  %v7969_v32 = vcombine.high %v198_v22, %v206_v24 }
 0x16a   :  { %3617 = vmatprep.subr.bf16.mxu0 %v8079_v27  ;;  %v462_v27 = vld [vmem:[#allocation5 + $0xb68] sm:$0xff] }
 0x16b   :  { %3659 = vmatpush2.bf16.msra.mxu1 %v8350_v26  ;;  %v8241_v26 = vcombine.high %v470_v14, %v478_v16  ;;  %v8225_v38 = vcombine.high %v454_v25, %v462_v27  ;;  %v414_v7 = vld [vmem:[#allocation5 + $0x9e8] sm:$0xff] }
 0x16c   :  { %3660 = vmatprep.subr.bf16.mxu1 %v8335_v31  ;;  %v8240_v31 = vcombine.low %v470_v14, %v478_v16  ;;  %v134_v16 = vld [vmem:[#allocation5 + $0x128] sm:$0xff] }
 0x16d   :  { %3618 = vmatpush2.bf16.msra.mxu0 %v8078_v33  ;;  %v182_v33 = vld [vmem:[#allocation5 + $0x2a8] sm:$0xff] }
 0x16e   :  { %3619 = vmatprep.subr.bf16.mxu0 %v8063_v36  ;;  %v438_v36 = vld [vmem:[#allocation5 + $0xaa8] sm:$0xff] }
 0x16f   :  { %3661 = vmatpush2.bf16.msra.mxu1 %v8334_v35  ;;  %v190_v35 = vld [vmem:[#allocation5 + $0x2e8] sm:$0xff]  ;;  %v8208_v61 = vcombine.low %v438_v36, %v446_v39 }
 0x170   :  { %3662 = vmatprep.subr.bf16.mxu1 %v8319_v41  ;;  %v7953_v48 = vcombine.high %v182_v33, %v190_v35  ;;  %v7952_v59 = vcombine.low %v182_v33, %v190_v35 }
 0x171   :  { %3620 = vmatpush2.bf16.msra.mxu0 %v8062_v45  ;;  %v7968_v45 = vcombine.low %v198_v22, %v206_v24  ;;  %v398_v22 = vld [vmem:[#allocation5 + $0x968] sm:$0xff]  ;;  %v7920_v24 = vcombine.low %v150_v4, %v158_v5 }
 0x172   :  { %3621 = vmatprep.subr.bf16.mxu0 %v8047_v47  ;;  %v8224_v47 = vcombine.low %v454_v25, %v462_v27 }
 0x173   :  { %3663 = vmatpush2.bf16.msra.mxu1 %v8318_v46 }
 0x174   :  { %3664 = vmatprep.subr.bf16.mxu1 %v8303_v51  ;;  %v8209_v51 = vcombine.high %v438_v36, %v446_v39  ;;  %v102_v39 = vld [vmem:[#allocation5 + $0x28] sm:$0xff] }
 0x175   :  { %3622 = vmatpush2.bf16.msra.mxu0 %v8046_v53  ;;  %v174_v53 = vld [vmem:[#allocation5 + $0x268] sm:$0xff] }
 0x176   :  { %3623 = vmatprep.subr.bf16.mxu0 %v8031_v55  ;;  %v422_v55 = vld [vmem:[#allocation5 + $0xa28] sm:$0xff] }
 0x177   :  { %3665 = vmatpush2.bf16.msra.mxu1 %v8302_v54  ;;  %v8193_v2 = vcombine.high %v422_v55, %v430_v56 }
 0x178   :  { %3666 = vmatprep.subr.bf16.mxu1 %v8287_v60 }
 0x179   :  { %3624 = vmatpush2.bf16.msra.mxu0 %v8030_v62  ;;  %v7937_v62 = vcombine.high %v166_v52, %v174_v53 }
 0x17a   :  { %3625 = vmatprep.subr.bf16.mxu0 %v8015_v1 }
 0x17b   :  { %3667 = vmatpush2.bf16.msra.mxu1 %v8286_v0 }
 0x17c   :  { %3668 = vmatprep.subr.bf16.mxu1 %v8271_v6  ;;  %v406_v6 = vld [vmem:[#allocation5 + $0x9a8] sm:$0xff] }
 0x17d   :  { %3626 = vmatpush2.bf16.msra.mxu0 %v8014_v8  ;;  %v8176_v25 = vcombine.low %v406_v6, %v414_v7 }
 0x17e   :  { %3627 = vmatprep.subr.bf16.mxu0 %v7999_v11  ;;  %v8192_v11 = vcombine.low %v422_v55, %v430_v56 }
 0x17f   :  { %3669 = vmatpush2.bf16.msra.mxu1 %v8270_v9  ;;  %v7936_v9 = vcombine.low %v166_v52, %v174_v53  ;;  %v350_v52 = vld [vmem:[#allocation5 + $0x7e8] sm:$0xff] }
 0x180   :  { %3670 = vmatprep.subr.bf16.mxu1 %v8255_v15  ;;  %v8177_v15 = vcombine.high %v406_v6, %v414_v7  ;;  %v598_v53 = vld [vmem:[#allocation5 + $0xfa8] sm:$0xff] }
 0x181   :  { %3628 = vmatpush2.bf16.msra.mxu0 %v7998_v17  ;;  %v142_v17 = vld [vmem:[#allocation5 + $0x168] sm:$0xff] }
 0x182   :  { %3683 = vmatprep.subr.bf16.mxu0 %v7985_v21  ;;  %v390_v21 = vld [vmem:[#allocation5 + $0x928] sm:$0xff]  ;;  %v7904_v33 = vcombine.low %v134_v16, %v142_v17 }
 0x183   :  { %3671 = vmatpush2.bf16.msra.mxu1 %v8254_v19  ;;  %v8161_v27 = vcombine.high %v390_v21, %v398_v22  ;;  %v8160_v35 = vcombine.low %v390_v21, %v398_v22  ;;  %v310_v6 = vld [vmem:[#allocation5 + $0x6a8] sm:$0xff] }
 0x184   :  { %3726 = vmatprep.subr.bf16.mxu1 %v8241_v26  ;;  %v3373_v41 = vpop.f32.mrf.mxu0  ;;  %3630 = vmatmul.mubr.bf16.vlgmr.msra.gmra.mxu0 %v9863_v20  ;;  %v7905_v26 = vcombine.high %v134_v16, %v142_v17  ;;  %v318_v7 = vld [vmem:[#allocation5 + $0x6e8] sm:$0xff] }
 0x185   :  { %v3374_v43 = vadd.f32 %v3373_v41, %v624_v28  ;;  %3684 = vmatpush1.bf16.msra.mxu0 %v7984_v29  ;;  %3715 = vmatprep.mubr.bf16.mxu0 %v9857_v58  ;;  %v126_v29 = vld [vmem:[#allocation5 + $0xe8] sm:$0xff]  ;;  %v8080_v22 = vcombine.low %v310_v6, %v318_v7 }
 0x186   :  { %v3416_v42 = vpop.f32.mrf.mxu1  ;;  %3673 = vmatmul.mubr.bf16.vlgmr.msra.gmra.mxu1 %v9865_v23  ;;  %v9909_v46 = vpop.f32.mrf.mxu0  ;;  %3685 = vmatprep.subr.bf16.mxu0 %v7969_v32  ;;  %v382_v32 = vld [vmem:[#allocation5 + $0x8e8] sm:$0xff] }
 0x187   :  { %3727 = vmatpush1.bf16.msra.mxu1 %v8240_v31  ;;  %v3417_v49 = vadd.f32 %v3416_v42, %v3374_v43  ;;  %3758 = vmatprep.mubr.bf16.mxu1 %v9859_v63  ;;  %v374_v31 = vld [vmem:[#allocation5 + $0x8a8] sm:$0xff] }
 0x188   :  { %v9911_v50 = vpop.f32.mrf.mxu1  ;;  %3728 = vmatprep.subr.bf16.mxu1 %v8225_v38  ;;  %v3377_v54 = vpop.f32.mrf.mxu0  ;;  %v8145_v38 = vcombine.high %v374_v31, %v382_v32  ;;  %v110_v41 = vld [vmem:[#allocation5 + $0x68] sm:$0xff] }
 0x189   :  { %v3378_v57 = vadd.f32 %v3377_v54, %v624_v28  ;;  %3686 = vmatpush1.bf16.msra.mxu0 %v7968_v45  ;;  %v3975_v0 = vmul.f32 0.01, %v3417_v49  ;;  %vm3943_vm2 = vcmp.gt.f32.partialorder %v3417_v49, 0.0  ;;  %v118_v28 = vld [vmem:[#allocation5 + $0xa8] sm:$0xff]  ;;  %v7872_v55 = vcombine.low %v102_v39, %v110_v41 }
 0x18a   :  { %v3420_v60 = vpop.f32.mrf.mxu1  ;;  %3687 = vmatprep.subr.bf16.mxu0 %v7953_v48  ;;  %v7889_v36 = vcombine.high %v118_v28, %v126_v29  ;;  %v358_v43 = vld [vmem:[#allocation5 + $0x828] sm:$0xff]  ;;  %v7888_v45 = vcombine.low %v118_v28, %v126_v29  ;;  %v7873_v48 = vcombine.high %v102_v39, %v110_v41 }
 0x18b   :  { %3729 = vmatpush1.bf16.msra.mxu1 %v8224_v47  ;;  %v3421_v1 = vadd.f32 %v3420_v60, %v3378_v57  ;;  %v4007_v13 = vsel %vm3943_vm2, %v3417_v49, %v3975_v0  ;;  %v366_v42 = vld [vmem:[#allocation5 + $0x868] sm:$0xff]  ;;  %v8144_v47 = vcombine.low %v374_v31, %v382_v32 }
 0x18c   :  { %3730 = vmatprep.subr.bf16.mxu1 %v8209_v51  ;;  %v8129_v49 = vcombine.high %v358_v43, %v366_v42  ;;  %v342_v51 = vld [vmem:[#allocation5 + $0x7a8] sm:$0xff]  ;;  %v8128_v56 = vcombine.low %v358_v43, %v366_v42 }
 0x18d   :  { %vm3959_vm3 = vcmp.gt.f32.partialorder %v3421_v1, 0.0  ;;  %v3991_v8 = vmul.f32 0.01, %v3421_v1  ;;  %3688 = vmatpush1.bf16.msra.mxu0 %v7952_v59  ;;  %v606_v54 = vld [vmem:[#allocation5 + $0xfe8] sm:$0xff]  ;;  %v8113_v57 = vcombine.high %v342_v51, %v350_v52 }
 0x18e   :  { %3689 = vmatprep.subr.bf16.mxu0 %v7937_v62  ;;  %v8369_v59 = vcombine.high %v598_v53, %v606_v54  ;;  %v326_v60 = vld [vmem:[#allocation5 + $0x728] sm:$0xff] }
 0x18f   :  { %3731 = vmatpush1.bf16.msra.mxu1 %v8208_v61  ;;  %v4023_v14 = vsel %vm3959_vm3, %v3421_v1, %v3991_v8  ;;  %v334_v61 = vld [vmem:[#allocation5 + $0x768] sm:$0xff]  ;;  %v8112_v1 = vcombine.low %v342_v51, %v350_v52 }
 0x190   :  { %3732 = vmatprep.subr.bf16.mxu1 %v8193_v2  ;;  %v9915_v19 = vpack.c.bf16 %v4023_v14, %v4007_v13  ;;  %v582_v62 = vld [vmem:[#allocation5 + $0xf28] sm:$0xff]  ;;  %v8368_v2 = vcombine.low %v598_v53, %v606_v54  ;;  %v8097_v4 = vcombine.high %v326_v60, %v334_v61  ;;  %v8081_v13 = vcombine.high %v310_v6, %v318_v7  ;;  %v223_v6 = vld [vmem:[#allocation5 + $0x3f0] sm:$0xff] }
 0x191   :  { %3690 = vmatpush1.bf16.msra.mxu0 %v7936_v9  ;;  %v590_v0 = vld [vmem:[#allocation5 + $0xf68] sm:$0xff]  ;;  %v471_v7 = vld [vmem:[#allocation5 + $0xbb0] sm:$0xff] }
 0x192   :  { %3691 = vmatprep.subr.bf16.mxu0 %v7921_v12  ;;  %v8353_v5 = vcombine.high %v582_v62, %v590_v0  ;;  %v566_v8 = vld [vmem:[#allocation5 + $0xea8] sm:$0xff]  ;;  %v8352_v12 = vcombine.low %v582_v62, %v590_v0 }
 0x193   :  { %3733 = vmatpush1.bf16.msra.mxu1 %v8192_v11  ;;  %v574_v9 = vld [vmem:[#allocation5 + $0xee8] sm:$0xff]  ;;  %v8096_v11 = vcombine.low %v326_v60, %v334_v61 }
 0x194   :  { %3734 = vmatprep.subr.bf16.mxu1 %v8177_v15  ;;  %v8337_v14 = vcombine.high %v566_v8, %v574_v9  ;;  %v294_v15 = vld [vmem:[#allocation5 + $0x628] sm:$0xff] }
 0x195   :  { %3692 = vmatpush1.bf16.msra.mxu0 %v7920_v24  ;;  %v302_v16 = vld [vmem:[#allocation5 + $0x668] sm:$0xff]  ;;  %v8336_v24 = vcombine.low %v566_v8, %v574_v9  ;;  %v479_v8 = vld [vmem:[#allocation5 + $0xbf0] sm:$0xff] }
 0x196   :  { %3693 = vmatprep.subr.bf16.mxu0 %v7905_v26  ;;  %v550_v17 = vld [vmem:[#allocation5 + $0xe28] sm:$0xff]  ;;  %v8064_v32 = vcombine.low %v294_v15, %v302_v16 }
 0x197   :  { %3735 = vmatpush1.bf16.msra.mxu1 %v8176_v25  ;;  %v558_v21 = vld [vmem:[#allocation5 + $0xe68] sm:$0xff]  ;;  %v8065_v25 = vcombine.high %v294_v15, %v302_v16  ;;  %v199_v15 = vld [vmem:[#allocation5 + $0x330] sm:$0xff] }
 0x198   :  { %3736 = vmatprep.subr.bf16.mxu1 %v8161_v27  ;;  %v8321_v26 = vcombine.high %v550_v17, %v558_v21  ;;  %v278_v27 = vld [vmem:[#allocation5 + $0x5a8] sm:$0xff]  ;;  %v207_v16 = vld [vmem:[#allocation5 + $0x370] sm:$0xff] }
 0x199   :  { %3694 = vmatpush1.bf16.msra.mxu0 %v7904_v33  ;;  %v286_v28 = vld [vmem:[#allocation5 + $0x5e8] sm:$0xff]  ;;  %v8320_v33 = vcombine.low %v550_v17, %v558_v21  ;;  %v455_v17 = vld [vmem:[#allocation5 + $0xb30] sm:$0xff] }
 0x19a   :  { %3695 = vmatprep.subr.bf16.mxu0 %v7889_v36  ;;  %v534_v29 = vld [vmem:[#allocation5 + $0xda8] sm:$0xff]  ;;  %v8048_v42 = vcombine.low %v278_v27, %v286_v28  ;;  %v463_v21 = vld [vmem:[#allocation5 + $0xb70] sm:$0xff] }
 0x19b   :  { %3737 = vmatpush1.bf16.msra.mxu1 %v8160_v35  ;;  %v542_v31 = vld [vmem:[#allocation5 + $0xde8] sm:$0xff]  ;;  %v8049_v35 = vcombine.high %v278_v27, %v286_v28  ;;  %v8242_v27 = vcombine.low %v471_v7, %v479_v8  ;;  %v7971_v28 = vcombine.high %v199_v15, %v207_v16 }
 0x19c   :  { %3738 = vmatprep.subr.bf16.mxu1 %v8145_v38  ;;  %v8305_v36 = vcombine.high %v534_v29, %v542_v31  ;;  %v262_v38 = vld [vmem:[#allocation5 + $0x528] sm:$0xff] }
 0x19d   :  { %3696 = vmatpush1.bf16.msra.mxu0 %v7888_v45  ;;  %v270_v39 = vld [vmem:[#allocation5 + $0x568] sm:$0xff]  ;;  %v8304_v45 = vcombine.low %v534_v29, %v542_v31  ;;  %v9925_v29 = vpop.f32.mrf.mxu1  ;;  %v8227_v31 = vcombine.high %v455_v17, %v463_v21 }
 0x19e   :  { %3697 = vmatprep.subr.bf16.mxu0 %v7873_v48  ;;  %v518_v41 = vld [vmem:[#allocation5 + $0xd28] sm:$0xff]  ;;  %v8032_v54 = vcombine.low %v262_v38, %v270_v39 }
 0x19f   :  { %3739 = vmatpush1.bf16.msra.mxu1 %v8144_v47  ;;  %v526_v43 = vld [vmem:[#allocation5 + $0xd68] sm:$0xff]  ;;  %v8033_v47 = vcombine.high %v262_v38, %v270_v39  ;;  %v447_v38 = vld [vmem:[#allocation5 + $0xaf0] sm:$0xff] }
 0x1a0   :  { %3740 = vmatprep.subr.bf16.mxu1 %v8129_v49  ;;  %v8289_v48 = vcombine.high %v518_v41, %v526_v43  ;;  %v246_v49 = vld [vmem:[#allocation5 + $0x4a8] sm:$0xff] }
 0x1a1   :  { %3698 = vmatpush1.bf16.msra.mxu0 %v7872_v55  ;;  %v254_v51 = vld [vmem:[#allocation5 + $0x4e8] sm:$0xff]  ;;  %v8288_v55 = vcombine.low %v518_v41, %v526_v43  ;;  %v7970_v43 = vcombine.low %v199_v15, %v207_v16 }
 0x1a2   :  { %3699 = vmatprep.subr.bf16.mxu0 %v8113_v57  ;;  %v502_v52 = vld [vmem:[#allocation5 + $0xca8] sm:$0xff]  ;;  %v8016_v0 = vcombine.low %v246_v49, %v254_v51 }
 0x1a3   :  { %3741 = vmatpush1.bf16.msra.mxu1 %v8128_v56  ;;  %v510_v53 = vld [vmem:[#allocation5 + $0xce8] sm:$0xff]  ;;  %v8017_v56 = vcombine.high %v246_v49, %v254_v51 }
 0x1a4   :  { %3742 = vmatprep.subr.bf16.mxu1 %v8369_v59  ;;  %v8273_v57 = vcombine.high %v502_v52, %v510_v53  ;;  %v230_v59 = vld [vmem:[#allocation5 + $0x428] sm:$0xff] }
 0x1a5   :  { %3700 = vmatpush2.bf16.msra.mxu0 %v8112_v1  ;;  %v238_v60 = vld [vmem:[#allocation5 + $0x468] sm:$0xff]  ;;  %v8272_v1 = vcombine.low %v502_v52, %v510_v53  ;;  %v167_v52 = vld [vmem:[#allocation5 + $0x230] sm:$0xff] }
 0x1a6   :  { %3701 = vmatprep.subr.bf16.mxu0 %v8097_v4  ;;  %v486_v61 = vld [vmem:[#allocation5 + $0xc28] sm:$0xff]  ;;  %v8000_v9 = vcombine.low %v230_v59, %v238_v60  ;;  %v175_v53 = vld [vmem:[#allocation5 + $0x270] sm:$0xff] }
 0x1a7   :  { %3743 = vmatpush2.bf16.msra.mxu1 %v8368_v2  ;;  %v494_v62 = vld [vmem:[#allocation5 + $0xc68] sm:$0xff]  ;;  %v8001_v2 = vcombine.high %v230_v59, %v238_v60 }
 0x1a8   :  { %3744 = vmatprep.subr.bf16.mxu1 %v8353_v5  ;;  %v8257_v4 = vcombine.high %v486_v61, %v494_v62  ;;  %v215_v5 = vld [vmem:[#allocation5 + $0x3b0] sm:$0xff] }
 0x1a9   :  { %3702 = vmatpush2.bf16.msra.mxu0 %v8096_v11  ;;  %v631_v11 = vsub.s32 4, %v9879_v34 }
 0x1aa   :  { %3703 = vmatprep.subr.bf16.mxu0 %v8081_v13  ;;  %v7987_v13 = vcombine.high %v215_v5, %v223_v6 }
 0x1ab   :  { %3745 = vmatpush2.bf16.msra.mxu1 %v8352_v12  ;;  %v8256_v12 = vcombine.low %v486_v61, %v494_v62  ;;  %v7939_v62 = vcombine.high %v167_v52, %v175_v53 }
 0x1ac   :  { %3746 = vmatprep.subr.bf16.mxu1 %v8337_v14  ;;  %v8243_v14 = vcombine.high %v471_v7, %v479_v8  ;;  %v415_v7 = vld [vmem:[#allocation5 + $0x9f0] sm:$0xff] }
 0x1ad   :  { %3704 = vmatpush2.bf16.msra.mxu0 %v8080_v22  ;;  %v9918_v22 = vld [vmem:[#allocation7] sm:$0xff] }
 0x1ae   :  { %3705 = vmatprep.subr.bf16.mxu0 %v8065_v25  ;;  %v7986_v25 = vcombine.low %v215_v5, %v223_v6  ;;  %v159_v5 = vld [vmem:[#allocation5 + $0x1f0] sm:$0xff] }
 0x1af   :  { %3747 = vmatpush2.bf16.msra.mxu1 %v8336_v24  ;;  %v632_v24 = vrot.slane %v9918_v22, %v631_v11  ;;  %v407_v6 = vld [vmem:[#allocation5 + $0x9b0] sm:$0xff] }
 0x1b0   :  { %3748 = vmatprep.subr.bf16.mxu1 %v8321_v26  ;;  %v9923_v26 = vpop.f32.mrf.mxu0  ;;  %v8179_v16 = vcombine.high %v407_v6, %v415_v7 }
 0x1b1   :  { %3706 = vmatpush2.bf16.msra.mxu0 %v8064_v32  ;;  %v183_v32 = vld [vmem:[#allocation5 + $0x2b0] sm:$0xff] }
 0x1b2   :  { %3707 = vmatprep.subr.bf16.mxu0 %v8049_v35 }
 0x1b3   :  { %3749 = vmatpush2.bf16.msra.mxu1 %v8320_v33  ;;  %v191_v33 = vld [vmem:[#allocation5 + $0x2f0] sm:$0xff] }
 0x1b4   :  { %3750 = vmatprep.subr.bf16.mxu1 %v8305_v36  ;;  %v439_v36 = vld [vmem:[#allocation5 + $0xab0] sm:$0xff]  ;;  %v7954_v59 = vcombine.low %v183_v32, %v191_v33 }
 0x1b5   :  { %3708 = vmatpush2.bf16.msra.mxu0 %v8048_v42  ;;  %v8211_v51 = vcombine.high %v439_v36, %v447_v38  ;;  %v8210_v61 = vcombine.low %v439_v36, %v447_v38  ;;  %v127_v36 = vld [vmem:[#allocation5 + $0xf0] sm:$0xff] }
 0x1b6   :  { %3709 = vmatprep.subr.bf16.mxu0 %v8033_v47  ;;  %v7955_v47 = vcombine.high %v183_v32, %v191_v33  ;;  %v375_v38 = vld [vmem:[#allocation5 + $0x8b0] sm:$0xff] }
 0x1b7   :  { %3751 = vmatpush2.bf16.msra.mxu1 %v8304_v45  ;;  %v8226_v45 = vcombine.low %v455_v17, %v463_v21  ;;  %v135_v17 = vld [vmem:[#allocation5 + $0x130] sm:$0xff] }
 0x1b8   :  { %3752 = vmatprep.subr.bf16.mxu1 %v8289_v48  ;;  %v143_v21 = vld [vmem:[#allocation5 + $0x170] sm:$0xff] }
 0x1b9   :  { %3710 = vmatpush2.bf16.msra.mxu0 %v8032_v54  ;;  %v7907_v32 = vcombine.high %v135_v17, %v143_v21 }
 0x1ba   :  { %3711 = vmatprep.subr.bf16.mxu0 %v8017_v56  ;;  %v431_v56 = vld [vmem:[#allocation5 + $0xa70] sm:$0xff] }
 0x1bb   :  { %3753 = vmatpush2.bf16.msra.mxu1 %v8288_v55  ;;  %v423_v55 = vld [vmem:[#allocation5 + $0xa30] sm:$0xff] }
 0x1bc   :  { %3754 = vmatprep.subr.bf16.mxu1 %v8273_v57 }
 0x1bd   :  { %3712 = vmatpush2.bf16.msra.mxu0 %v8016_v0 }
 0x1be   :  { %3713 = vmatprep.subr.bf16.mxu0 %v8001_v2  ;;  %v8195_v2 = vcombine.high %v423_v55, %v431_v56 }
 0x1bf   :  { %3755 = vmatpush2.bf16.msra.mxu1 %v8272_v1 }
 0x1c0   :  { %3756 = vmatprep.subr.bf16.mxu1 %v8257_v4  ;;  %v151_v4 = vld [vmem:[#allocation5 + $0x1b0] sm:$0xff] }
 0x1c1   :  { %3714 = vmatpush2.bf16.msra.mxu0 %v8000_v9  ;;  %v7938_v9 = vcombine.low %v167_v52, %v175_v53  ;;  %v359_v52 = vld [vmem:[#allocation5 + $0x830] sm:$0xff] }
 0x1c2   :  { %3769 = vmatprep.subr.bf16.mxu0 %v7987_v13  ;;  %v7923_v13 = vcombine.high %v151_v4, %v159_v5  ;;  %v367_v53 = vld [vmem:[#allocation5 + $0x870] sm:$0xff] }
 0x1c3   :  { %3757 = vmatpush2.bf16.msra.mxu1 %v8256_v12  ;;  %v8194_v12 = vcombine.low %v423_v55, %v431_v56 }
 0x1c4   :  { %3812 = vmatprep.subr.bf16.mxu1 %v8243_v14  ;;  %v3459_v35 = vpop.f32.mrf.mxu0  ;;  %3716 = vmatmul.mubr.bf16.vlgmr.msra.gmra.mxu0 %v9863_v20 }
 0x1c5   :  { %v3460_v39 = vadd.f32 %v3459_v35, %v632_v24  ;;  %3770 = vmatpush1.bf16.msra.mxu0 %v7986_v25  ;;  %3801 = vmatprep.mubr.bf16.mxu0 %v9857_v58  ;;  %v391_v25 = vld [vmem:[#allocation5 + $0x930] sm:$0xff] }
 0x1c6   :  { %v3502_v41 = vpop.f32.mrf.mxu1  ;;  %3759 = vmatmul.mubr.bf16.vlgmr.msra.gmra.mxu1 %v9865_v23  ;;  %v9929_v42 = vpop.f32.mrf.mxu0  ;;  %3771 = vmatprep.subr.bf16.mxu0 %v7971_v28  ;;  %v7922_v28 = vcombine.low %v151_v4, %v159_v5  ;;  %v119_v35 = vld [vmem:[#allocation5 + $0xb0] sm:$0xff] }
 0x1c7   :  { %3813 = vmatpush1.bf16.msra.mxu1 %v8242_v27  ;;  %v3503_v48 = vadd.f32 %v3502_v41, %v3460_v39  ;;  %3844 = vmatprep.mubr.bf16.mxu1 %v9859_v63  ;;  %v399_v27 = vld [vmem:[#allocation5 + $0x970] sm:$0xff]  ;;  %v7906_v41 = vcombine.low %v135_v17, %v143_v21 }
 0x1c8   :  { %v9931_v49 = vpop.f32.mrf.mxu1  ;;  %3814 = vmatprep.subr.bf16.mxu1 %v8227_v31  ;;  %v3463_v54 = vpop.f32.mrf.mxu0  ;;  %v8178_v31 = vcombine.low %v407_v6, %v415_v7  ;;  %v8163_v33 = vcombine.high %v391_v25, %v399_v27  ;;  %v383_v39 = vld [vmem:[#allocation5 + $0x8f0] sm:$0xff] }
 0x1c9   :  { %v3464_v57 = vadd.f32 %v3463_v54, %v632_v24  ;;  %3772 = vmatpush1.bf16.msra.mxu0 %v7970_v43  ;;  %v3977_v0 = vmul.f32 0.01, %v3503_v48  ;;  %vm3945_vm4 = vcmp.gt.f32.partialorder %v3503_v48, 0.0  ;;  %v8162_v43 = vcombine.low %v391_v25, %v399_v27  ;;  %v327_v5 = vld [vmem:[#allocation5 + $0x730] sm:$0xff] }
 0x1ca   :  { %v3506_v60 = vpop.f32.mrf.mxu1  ;;  %3773 = vmatprep.subr.bf16.mxu0 %v7955_v47  ;;  %v8147_v47 = vcombine.high %v375_v38, %v383_v39  ;;  %v7890_v54 = vcombine.low %v119_v35, %v127_v36  ;;  %v8146_v55 = vcombine.low %v375_v38, %v383_v39  ;;  %v335_v6 = vld [vmem:[#allocation5 + $0x770] sm:$0xff] }
 0x1cb   :  { %3815 = vmatpush1.bf16.msra.mxu1 %v8226_v45  ;;  %v3507_v1 = vadd.f32 %v3506_v60, %v3464_v57  ;;  %v4009_v14 = vsel %vm3945_vm4, %v3503_v48, %v3977_v0  ;;  %v7891_v45 = vcombine.high %v119_v35, %v127_v36  ;;  %v103_v48 = vld [vmem:[#allocation5 + $0x30] sm:$0xff]  ;;  %v8131_v57 = vcombine.high %v359_v52, %v367_v53 }
 0x1cc   :  { %3816 = vmatprep.subr.bf16.mxu1 %v8211_v51  ;;  %v111_v51 = vld [vmem:[#allocation5 + $0x70] sm:$0xff]  ;;  %v8098_v25 = vcombine.low %v327_v5, %v335_v6 }
 0x1cd   :  { %vm3961_vm5 = vcmp.gt.f32.partialorder %v3507_v1, 0.0  ;;  %v3993_v8 = vmul.f32 0.01, %v3507_v1  ;;  %3774 = vmatpush1.bf16.msra.mxu0 %v7954_v59  ;;  %v7875_v56 = vcombine.high %v103_v48, %v111_v51  ;;  %v343_v59 = vld [vmem:[#allocation5 + $0x7b0] sm:$0xff]  ;;  %v7874_v0 = vcombine.low %v103_v48, %v111_v51 }
 0x1ce   :  { %3775 = vmatprep.subr.bf16.mxu0 %v7939_v62  ;;  %v351_v60 = vld [vmem:[#allocation5 + $0x7f0] sm:$0xff] }
 0x1cf   :  { %3817 = vmatpush1.bf16.msra.mxu1 %v8210_v61  ;;  %v4025_v15 = vsel %vm3961_vm5, %v3507_v1, %v3993_v8  ;;  %v599_v61 = vld [vmem:[#allocation5 + $0xfb0] sm:$0xff]  ;;  %v8130_v1 = vcombine.low %v359_v52, %v367_v53 }
 0x1d0   :  { %3818 = vmatprep.subr.bf16.mxu1 %v8195_v2  ;;  %v9935_v24 = vpack.c.bf16 %v4025_v15, %v4009_v14  ;;  %v607_v62 = vld [vmem:[#allocation5 + $0xff0] sm:$0xff]  ;;  %v8115_v2 = vcombine.high %v343_v59, %v351_v60 }
 0x1d1   :  { %3776 = vmatpush1.bf16.msra.mxu0 %v7938_v9  ;;  %v8371_v4 = vcombine.high %v599_v61, %v607_v62  ;;  %v583_v7 = vld [vmem:[#allocation5 + $0xf30] sm:$0xff]  ;;  %v8114_v9 = vcombine.low %v343_v59, %v351_v60 }
 0x1d2   :  { %3777 = vmatprep.subr.bf16.mxu0 %v7923_v13  ;;  %v591_v8 = vld [vmem:[#allocation5 + $0xf70] sm:$0xff]  ;;  %v8099_v13 = vcombine.high %v327_v5, %v335_v6 }
 0x1d3   :  { %3819 = vmatpush1.bf16.msra.mxu1 %v8194_v12  ;;  %v8370_v12 = vcombine.low %v599_v61, %v607_v62  ;;  %v8355_v14 = vcombine.high %v583_v7, %v591_v8  ;;  %v311_v15 = vld [vmem:[#allocation5 + $0x6b0] sm:$0xff]  ;;  %v8354_v27 = vcombine.low %v583_v7, %v591_v8 }
 0x1d4   :  { %3820 = vmatprep.subr.bf16.mxu1 %v8179_v16  ;;  %v319_v16 = vld [vmem:[#allocation5 + $0x6f0] sm:$0xff] }
 0x1d5   :  { %3778 = vmatpush1.bf16.msra.mxu0 %v7922_v28  ;;  %v567_v17 = vld [vmem:[#allocation5 + $0xeb0] sm:$0xff]  ;;  %v8083_v28 = vcombine.high %v311_v15, %v319_v16  ;;  %v8082_v38 = vcombine.low %v311_v15, %v319_v16 }
 0x1d6   :  { %3779 = vmatprep.subr.bf16.mxu0 %v7907_v32  ;;  %v575_v21 = vld [vmem:[#allocation5 + $0xef0] sm:$0xff] }
 0x1d7   :  { %3821 = vmatpush1.bf16.msra.mxu1 %v8178_v31  ;;  %v8339_v31 = vcombine.high %v567_v17, %v575_v21  ;;  %v295_v32 = vld [vmem:[#allocation5 + $0x630] sm:$0xff]  ;;  %v8338_v39 = vcombine.low %v567_v17, %v575_v21 }
 0x1d8   :  { %3822 = vmatprep.subr.bf16.mxu1 %v8163_v33  ;;  %v303_v33 = vld [vmem:[#allocation5 + $0x670] sm:$0xff] }
 0x1d9   :  { %3780 = vmatpush1.bf16.msra.mxu0 %v7906_v41  ;;  %v551_v35 = vld [vmem:[#allocation5 + $0xe30] sm:$0xff]  ;;  %v8067_v41 = vcombine.high %v295_v32, %v303_v33  ;;  %v8066_v52 = vcombine.low %v295_v32, %v303_v33  ;;  %v472_v32 = vld [vmem:[#allocation5 + $0xbb8] sm:$0xff] }
 0x1da   :  { %3781 = vmatprep.subr.bf16.mxu0 %v7891_v45  ;;  %v559_v36 = vld [vmem:[#allocation5 + $0xe70] sm:$0xff]  ;;  %v480_v33 = vld [vmem:[#allocation5 + $0xbf8] sm:$0xff] }
 0x1db   :  { %3823 = vmatpush1.bf16.msra.mxu1 %v8162_v43  ;;  %v8323_v43 = vcombine.high %v551_v35, %v559_v36  ;;  %v279_v45 = vld [vmem:[#allocation5 + $0x5b0] sm:$0xff]  ;;  %v8322_v53 = vcombine.low %v551_v35, %v559_v36  ;;  %v639_v36 = vsub.s32 6, %v9879_v34 }
 0x1dc   :  { %3824 = vmatprep.subr.bf16.mxu1 %v8147_v47  ;;  %v287_v47 = vld [vmem:[#allocation5 + $0x5f0] sm:$0xff] }
 0x1dd   :  { %3782 = vmatpush1.bf16.msra.mxu0 %v7890_v54  ;;  %v535_v48 = vld [vmem:[#allocation5 + $0xdb0] sm:$0xff]  ;;  %v8051_v54 = vcombine.high %v279_v45, %v287_v47  ;;  %v8050_v61 = vcombine.low %v279_v45, %v287_v47  ;;  %v208_v45 = vld [vmem:[#allocation5 + $0x378] sm:$0xff] }
 0x1de   :  { %3783 = vmatprep.subr.bf16.mxu0 %v7875_v56  ;;  %v543_v51 = vld [vmem:[#allocation5 + $0xdf0] sm:$0xff]  ;;  %v456_v47 = vld [vmem:[#allocation5 + $0xb38] sm:$0xff] }
 0x1df   :  { %3825 = vmatpush1.bf16.msra.mxu1 %v8146_v55  ;;  %v8307_v55 = vcombine.high %v535_v48, %v543_v51  ;;  %v263_v56 = vld [vmem:[#allocation5 + $0x530] sm:$0xff]  ;;  %v8306_v62 = vcombine.low %v535_v48, %v543_v51  ;;  %v464_v48 = vld [vmem:[#allocation5 + $0xb78] sm:$0xff]  ;;  %v640_v51 = vrot.slane %v9918_v22, %v639_v36 }
 0x1e0   :  { %3826 = vmatprep.subr.bf16.mxu1 %v8131_v57  ;;  %v271_v57 = vld [vmem:[#allocation5 + $0x570] sm:$0xff] }
 0x1e1   :  { %3784 = vmatpush1.bf16.msra.mxu0 %v7874_v0  ;;  %v519_v59 = vld [vmem:[#allocation5 + $0xd30] sm:$0xff]  ;;  %v8035_v0 = vcombine.high %v263_v56, %v271_v57  ;;  %v8034_v7 = vcombine.low %v263_v56, %v271_v57  ;;  %v9943_v56 = vpop.f32.mrf.mxu1  ;;  %v8229_v57 = vcombine.high %v456_v47, %v464_v48 }
 0x1e2   :  { %3785 = vmatprep.subr.bf16.mxu0 %v8115_v2  ;;  %v527_v60 = vld [vmem:[#allocation5 + $0xd70] sm:$0xff] }
 0x1e3   :  { %3827 = vmatpush1.bf16.msra.mxu1 %v8130_v1  ;;  %v8291_v1 = vcombine.high %v519_v59, %v527_v60  ;;  %v247_v2 = vld [vmem:[#allocation5 + $0x4b0] sm:$0xff]  ;;  %v8290_v8 = vcombine.low %v519_v59, %v527_v60  ;;  %v184_v59 = vld [vmem:[#allocation5 + $0x2b8] sm:$0xff] }
 0x1e4   :  { %3828 = vmatprep.subr.bf16.mxu1 %v8371_v4  ;;  %v255_v4 = vld [vmem:[#allocation5 + $0x4f0] sm:$0xff]  ;;  %v192_v60 = vld [vmem:[#allocation5 + $0x2f8] sm:$0xff] }
 0x1e5   :  { %3786 = vmatpush2.bf16.msra.mxu0 %v8114_v9  ;;  %v503_v5 = vld [vmem:[#allocation5 + $0xcb0] sm:$0xff]  ;;  %v8019_v9 = vcombine.high %v247_v2, %v255_v4  ;;  %v8018_v17 = vcombine.low %v247_v2, %v255_v4 }
 0x1e6   :  { %3787 = vmatprep.subr.bf16.mxu0 %v8099_v13  ;;  %v511_v6 = vld [vmem:[#allocation5 + $0xcf0] sm:$0xff] }
 0x1e7   :  { %3829 = vmatpush2.bf16.msra.mxu1 %v8370_v12  ;;  %v8275_v12 = vcombine.high %v503_v5, %v511_v6  ;;  %v231_v13 = vld [vmem:[#allocation5 + $0x430] sm:$0xff]  ;;  %v8274_v21 = vcombine.low %v503_v5, %v511_v6  ;;  %v8228_v6 = vcombine.low %v456_v47, %v464_v48 }
 0x1e8   :  { %3830 = vmatprep.subr.bf16.mxu1 %v8355_v14  ;;  %v239_v14 = vld [vmem:[#allocation5 + $0x470] sm:$0xff] }
 0x1e9   :  { %3788 = vmatpush2.bf16.msra.mxu0 %v8098_v25  ;;  %v487_v15 = vld [vmem:[#allocation5 + $0xc30] sm:$0xff]  ;;  %v8003_v25 = vcombine.high %v231_v13, %v239_v14  ;;  %v8002_v35 = vcombine.low %v231_v13, %v239_v14  ;;  %v168_v13 = vld [vmem:[#allocation5 + $0x238] sm:$0xff] }
 0x1ea   :  { %3789 = vmatprep.subr.bf16.mxu0 %v8083_v28  ;;  %v495_v16 = vld [vmem:[#allocation5 + $0xc70] sm:$0xff]  ;;  %v216_v28 = vld [vmem:[#allocation5 + $0x3b8] sm:$0xff] }
 0x1eb   :  { %3831 = vmatpush2.bf16.msra.mxu1 %v8354_v27  ;;  %v8259_v27 = vcombine.high %v487_v15, %v495_v16  ;;  %v176_v14 = vld [vmem:[#allocation5 + $0x278] sm:$0xff] }
 0x1ec   :  { %3832 = vmatprep.subr.bf16.mxu1 %v8339_v31  ;;  %v224_v31 = vld [vmem:[#allocation5 + $0x3f8] sm:$0xff] }
 0x1ed   :  { %3790 = vmatpush2.bf16.msra.mxu0 %v8082_v38  ;;  %v8258_v38 = vcombine.low %v487_v15, %v495_v16  ;;  %v424_v16 = vld [vmem:[#allocation5 + $0xa38] sm:$0xff] }
 0x1ee   :  { %3791 = vmatprep.subr.bf16.mxu0 %v8067_v41  ;;  %v8245_v41 = vcombine.high %v472_v32, %v480_v33 }
 0x1ef   :  { %3833 = vmatpush2.bf16.msra.mxu1 %v8338_v39  ;;  %v7989_v39 = vcombine.high %v216_v28, %v224_v31 }
 0x1f0   :  { %3834 = vmatprep.subr.bf16.mxu1 %v8323_v43  ;;  %v200_v43 = vld [vmem:[#allocation5 + $0x338] sm:$0xff] }
 0x1f1   :  { %3792 = vmatpush2.bf16.msra.mxu0 %v8066_v52  ;;  %v7988_v52 = vcombine.low %v216_v28, %v224_v31  ;;  %v7972_v4 = vcombine.low %v200_v43, %v208_v45  ;;  %v7941_v31 = vcombine.high %v168_v13, %v176_v14 }
 0x1f2   :  { %3793 = vmatprep.subr.bf16.mxu0 %v8051_v54  ;;  %v8244_v54 = vcombine.low %v472_v32, %v480_v33 }
 0x1f3   :  { %3835 = vmatpush2.bf16.msra.mxu1 %v8322_v53  ;;  %v9941_v53 = vpop.f32.mrf.mxu0 }
 0x1f4   :  { %3836 = vmatprep.subr.bf16.mxu1 %v8307_v55  ;;  %v7973_v55 = vcombine.high %v200_v43, %v208_v45 }
 0x1f5   :  { %3794 = vmatpush2.bf16.msra.mxu0 %v8050_v61 }
 0x1f6   :  { %3795 = vmatprep.subr.bf16.mxu0 %v8035_v0  ;;  %v448_v0 = vld [vmem:[#allocation5 + $0xaf8] sm:$0xff] }
 0x1f7   :  { %3837 = vmatpush2.bf16.msra.mxu1 %v8306_v62  ;;  %v440_v62 = vld [vmem:[#allocation5 + $0xab8] sm:$0xff] }
 0x1f8   :  { %3838 = vmatprep.subr.bf16.mxu1 %v8291_v1  ;;  %v8212_v28 = vcombine.low %v440_v62, %v448_v0 }
 0x1f9   :  { %3796 = vmatpush2.bf16.msra.mxu0 %v8034_v7  ;;  %v7957_v7 = vcombine.high %v184_v59, %v192_v60 }
 0x1fa   :  { %3797 = vmatprep.subr.bf16.mxu0 %v8019_v9 }
 0x1fb   :  { %3839 = vmatpush2.bf16.msra.mxu1 %v8290_v8 }
 0x1fc   :  { %3840 = vmatprep.subr.bf16.mxu1 %v8275_v12  ;;  %v8213_v12 = vcombine.high %v440_v62, %v448_v0 }
 0x1fd   :  { %3798 = vmatpush2.bf16.msra.mxu0 %v8018_v17  ;;  %v432_v17 = vld [vmem:[#allocation5 + $0xa78] sm:$0xff] }
 0x1fe   :  { %3799 = vmatprep.subr.bf16.mxu0 %v8003_v25  ;;  %v7956_v25 = vcombine.low %v184_v59, %v192_v60  ;;  %v8196_v45 = vcombine.low %v424_v16, %v432_v17  ;;  %v392_v59 = vld [vmem:[#allocation5 + $0x938] sm:$0xff] }
 0x1ff   :  { %3841 = vmatpush2.bf16.msra.mxu1 %v8274_v21  ;;  %v400_v60 = vld [vmem:[#allocation5 + $0x978] sm:$0xff] }
 0x200   :  { %3842 = vmatprep.subr.bf16.mxu1 %v8259_v27 }
 0x201   :  { %3800 = vmatpush2.bf16.msra.mxu0 %v8002_v35  ;;  %v8197_v35 = vcombine.high %v424_v16, %v432_v17  ;;  %v112_v16 = vld [vmem:[#allocation5 + $0x78] sm:$0xff] }
 0x202   :  { %3855 = vmatprep.subr.bf16.mxu0 %v7989_v39  ;;  %v160_v39 = vld [vmem:[#allocation5 + $0x1f8] sm:$0xff] }
 0x203   :  { %3843 = vmatpush2.bf16.msra.mxu1 %v8258_v38  ;;  %v152_v38 = vld [vmem:[#allocation5 + $0x1b8] sm:$0xff] }
 0x204   :  { %3898 = vmatprep.subr.bf16.mxu1 %v8245_v41  ;;  %v3545_v61 = vpop.f32.mrf.mxu0  ;;  %3802 = vmatmul.mubr.bf16.vlgmr.msra.gmra.mxu0 %v9863_v20  ;;  %v416_v41 = vld [vmem:[#allocation5 + $0x9f8] sm:$0xff]  ;;  %v7925_v47 = vcombine.high %v152_v38, %v160_v39 }
 0x205   :  { %v3546_v1 = vadd.f32 %v3545_v61, %v640_v51  ;;  %3856 = vmatpush1.bf16.msra.mxu0 %v7988_v52  ;;  %3887 = vmatprep.mubr.bf16.mxu0 %v9857_v58  ;;  %v408_v58 = vld [vmem:[#allocation5 + $0x9b8] sm:$0xff]  ;;  %v7924_v61 = vcombine.low %v152_v38, %v160_v39 }
 0x206   :  { %v3588_v2 = vpop.f32.mrf.mxu1  ;;  %3845 = vmatmul.mubr.bf16.vlgmr.msra.gmra.mxu1 %v9865_v23  ;;  %v9947_v5 = vpop.f32.mrf.mxu0  ;;  %3857 = vmatprep.subr.bf16.mxu0 %v7973_v55  ;;  %v8181_v52 = vcombine.high %v408_v58, %v416_v41  ;;  %v144_v55 = vld [vmem:[#allocation5 + $0x178] sm:$0xff]  ;;  %v8180_v62 = vcombine.low %v408_v58, %v416_v41 }
 0x207   :  { %3899 = vmatpush1.bf16.msra.mxu1 %v8244_v54  ;;  %v3589_v8 = vadd.f32 %v3588_v2, %v3546_v1  ;;  %3930 = vmatprep.mubr.bf16.mxu1 %v9859_v63  ;;  %v7940_v63 = vcombine.low %v168_v13, %v176_v14  ;;  %v136_v54 = vld [vmem:[#allocation5 + $0x138] sm:$0xff]  ;;  %v8165_v1 = vcombine.high %v392_v59, %v400_v60 }
 0x208   :  { %v9949_v9 = vpop.f32.mrf.mxu1  ;;  %3900 = vmatprep.subr.bf16.mxu1 %v8229_v57  ;;  %v3549_v15 = vpop.f32.mrf.mxu0  ;;  %v7909_v0 = vcombine.high %v136_v54, %v144_v55  ;;  %v120_v2 = vld [vmem:[#allocation5 + $0xb8] sm:$0xff] }
 0x209   :  { %v3550_v21 = vadd.f32 %v3549_v15, %v640_v51  ;;  %3858 = vmatpush1.bf16.msra.mxu0 %v7972_v4  ;;  %v3979_v32 = vmul.f32 0.01, %v3589_v8  ;;  %vm3947_vm6 = vcmp.gt.f32.partialorder %v3589_v8, 0.0  ;;  %v128_v4 = vld [vmem:[#allocation5 + $0xf8] sm:$0xff] }
 0x20a   :  { %v3592_v27 = vpop.f32.mrf.mxu1  ;;  %3859 = vmatprep.subr.bf16.mxu0 %v7957_v7  ;;  %v384_v7 = vld [vmem:[#allocation5 + $0x8f8] sm:$0xff]  ;;  %v7893_v13 = vcombine.high %v120_v2, %v128_v4 }
 0x20b   :  { %3901 = vmatpush1.bf16.msra.mxu1 %v8228_v6  ;;  %v3593_v33 = vadd.f32 %v3592_v27, %v3550_v21  ;;  %v4011_v48 = vsel %vm3947_vm6, %v3589_v8, %v3979_v32  ;;  %v376_v6 = vld [vmem:[#allocation5 + $0x8b8] sm:$0xff]  ;;  %v7908_v8 = vcombine.low %v136_v54, %v144_v55 }
 0x20c   :  { %3902 = vmatprep.subr.bf16.mxu1 %v8213_v12  ;;  %v8164_v12 = vcombine.low %v392_v59, %v400_v60  ;;  %v8149_v14 = vcombine.high %v376_v6, %v384_v7  ;;  %v104_v15 = vld [vmem:[#allocation5 + $0x38] sm:$0xff]  ;;  %v8148_v27 = vcombine.low %v376_v6, %v384_v7 }
 0x20d   :  { %vm3963_vm7 = vcmp.gt.f32.partialorder %v3593_v33, 0.0  ;;  %v3995_v43 = vmul.f32 0.01, %v3593_v33  ;;  %3860 = vmatpush1.bf16.msra.mxu0 %v7956_v25  ;;  %v360_v17 = vld [vmem:[#allocation5 + $0x838] sm:$0xff]  ;;  %v7892_v25 = vcombine.low %v120_v2, %v128_v4  ;;  %v7876_v39 = vcombine.low %v104_v15, %v112_v16 }
 0x20e   :  { %3861 = vmatprep.subr.bf16.mxu0 %v7941_v31  ;;  %v368_v21 = vld [vmem:[#allocation5 + $0x878] sm:$0xff] }
 0x20f   :  { %3903 = vmatpush1.bf16.msra.mxu1 %v8212_v28  ;;  %v4027_v51 = vsel %vm3963_vm7, %v3593_v33, %v3995_v43  ;;  %v7877_v28 = vcombine.high %v104_v15, %v112_v16  ;;  %v8133_v31 = vcombine.high %v360_v17, %v368_v21  ;;  %v344_v32 = vld [vmem:[#allocation5 + $0x7b8] sm:$0xff]  ;;  %v8132_v58 = vcombine.low %v360_v17, %v368_v21 }
 0x210   :  { %3904 = vmatprep.subr.bf16.mxu1 %v8197_v35  ;;  %v9953_v57 = vpack.c.bf16 %v4027_v51, %v4011_v48  ;;  %v352_v33 = vld [vmem:[#allocation5 + $0x7f8] sm:$0xff] }
 0x211   :  { %3862 = vmatpush1.bf16.msra.mxu0 %v7940_v63  ;;  %v600_v35 = vld [vmem:[#allocation5 + $0xfb8] sm:$0xff]  ;;  %v8117_v41 = vcombine.high %v344_v32, %v352_v33  ;;  %v8116_v51 = vcombine.low %v344_v32, %v352_v33  ;;  %v9956_v33 = vsub.s32 1, %v9879_v34 }
 0x212   :  { %3863 = vmatprep.subr.bf16.mxu0 %v7925_v47  ;;  %v608_v38 = vld [vmem:[#allocation5 + $0xff8] sm:$0xff] }
 0x213   :  { %3905 = vmatpush1.bf16.msra.mxu1 %v8196_v45  ;;  %v8373_v43 = vcombine.high %v600_v35, %v608_v38  ;;  %v328_v63 = vld [vmem:[#allocation5 + $0x738] sm:$0xff] }
 0x214   :  { %3906 = vmatprep.subr.bf16.mxu1 %v8181_v52  ;;  %v336_v45 = vld [vmem:[#allocation5 + $0x778] sm:$0xff]  ;;  %v8372_v52 = vcombine.low %v600_v35, %v608_v38 }
 0x215   :  { %3864 = vmatpush1.bf16.msra.mxu0 %v7924_v61  ;;  %v584_v47 = vld [vmem:[#allocation5 + $0xf38] sm:$0xff]  ;;  %v8101_v54 = vcombine.high %v328_v63, %v336_v45 }
 0x216   :  { %3865 = vmatprep.subr.bf16.mxu0 %v7909_v0  ;;  %v592_v48 = vld [vmem:[#allocation5 + $0xf78] sm:$0xff]  ;;  %v8100_v0 = vcombine.low %v328_v63, %v336_v45 }
 0x217   :  { %3907 = vmatpush1.bf16.msra.mxu1 %v8180_v62  ;;  %v8357_v55 = vcombine.high %v584_v47, %v592_v48  ;;  %v312_v59 = vld [vmem:[#allocation5 + $0x6b8] sm:$0xff] }
 0x218   :  { %3908 = vmatprep.subr.bf16.mxu1 %v8165_v1  ;;  %v320_v60 = vld [vmem:[#allocation5 + $0x6f8] sm:$0xff]  ;;  %v8356_v1 = vcombine.low %v584_v47, %v592_v48  ;;  %v620_v48 = vrot.slane %v9918_v22, %v9956_v33 }
 0x219   :  { %3866 = vmatpush1.bf16.msra.mxu0 %v7908_v8  ;;  %v568_v61 = vld [vmem:[#allocation5 + $0xeb8] sm:$0xff]  ;;  %v8085_v2 = vcombine.high %v312_v59, %v320_v60 }
 0x21a   :  { %3867 = vmatprep.subr.bf16.mxu0 %v7893_v13  ;;  %v576_v62 = vld [vmem:[#allocation5 + $0xef8] sm:$0xff]  ;;  %v8084_v13 = vcombine.low %v312_v59, %v320_v60 }
 0x21b   :  { %3909 = vmatpush1.bf16.msra.mxu1 %v8164_v12  ;;  %v8341_v4 = vcombine.high %v568_v61, %v576_v62  ;;  %v296_v6 = vld [vmem:[#allocation5 + $0x638] sm:$0xff] }
 0x21c   :  { %3910 = vmatprep.subr.bf16.mxu1 %v8149_v14  ;;  %v304_v7 = vld [vmem:[#allocation5 + $0x678] sm:$0xff]  ;;  %v8340_v14 = vcombine.low %v568_v61, %v576_v62  ;;  %v3294_v61 = vadd.f32 %v9903_v30, %v620_v48 }
 0x21d   :  { %3868 = vmatpush1.bf16.msra.mxu0 %v7892_v25  ;;  %v552_v8 = vld [vmem:[#allocation5 + $0xe38] sm:$0xff]  ;;  %v8069_v15 = vcombine.high %v296_v6, %v304_v7 }
 0x21e   :  { %3869 = vmatprep.subr.bf16.mxu0 %v7877_v28  ;;  %v560_v12 = vld [vmem:[#allocation5 + $0xe78] sm:$0xff]  ;;  %v8068_v28 = vcombine.low %v296_v6, %v304_v7  ;;  %v3337_v30 = vadd.f32 %v9905_v37, %v3294_v61  ;;  %v8904_v61 = vld [vmem:[#allocation8 + $0xc0] ss:$16 sps:$4 sm:$0xff]  }
 0x21f   :  { %3911 = vmatpush1.bf16.msra.mxu1 %v8148_v27  ;;  %v8325_v16 = vcombine.high %v552_v8, %v560_v12  ;;  %v280_v17 = vld [vmem:[#allocation5 + $0x5b8] sm:$0xff] }
 0x220   :  { %3912 = vmatprep.subr.bf16.mxu1 %v8133_v31  ;;  %v288_v21 = vld [vmem:[#allocation5 + $0x5f8] sm:$0xff]  ;;  %v8324_v31 = vcombine.low %v552_v8, %v560_v12  ;;  %vm3958_vm8 = vcmp.gt.f32.partialorder %v3337_v30, 0.0 }
 0x221   :  { %3870 = vmatpush1.bf16.msra.mxu0 %v7876_v39  ;;  %v536_v25 = vld [vmem:[#allocation5 + $0xdb8] sm:$0xff]  ;;  %v8053_v32 = vcombine.high %v280_v17, %v288_v21  ;;  %v8052_v63 = vcombine.low %v280_v17, %v288_v21 }
 0x222   :  { %3871 = vmatprep.subr.bf16.mxu0 %v8117_v41  ;;  %v544_v27 = vld [vmem:[#allocation5 + $0xdf8] sm:$0xff] }
 0x223   :  { %3913 = vmatpush1.bf16.msra.mxu1 %v8132_v58  ;;  %v8309_v35 = vcombine.high %v536_v25, %v544_v27  ;;  %v264_v38 = vld [vmem:[#allocation5 + $0x538] sm:$0xff]  ;;  %v9959_v58 = vsub.s32 3, %v9879_v34  ;;  %v8308_v45 = vcombine.low %v536_v25, %v544_v27  ;;  %v3990_v25 = vmul.f32 0.01, %v3337_v30 }
 0x224   :  { %3914 = vmatprep.subr.bf16.mxu1 %v8373_v43  ;;  %v272_v39 = vld [vmem:[#allocation5 + $0x578] sm:$0xff] }
 0x225   :  { %3872 = vmatpush2.bf16.msra.mxu0 %v8116_v51  ;;  %v520_v41 = vld [vmem:[#allocation5 + $0xd38] sm:$0xff]  ;;  %v8037_v47 = vcombine.high %v264_v38, %v272_v39  ;;  %v8036_v62 = vcombine.low %v264_v38, %v272_v39  ;;  %v4022_v38 = vsel %vm3958_vm8, %v3337_v30, %v3990_v25  ;;  %v9978_v39 = vpop.f32.mrf.mxu0  ;;  %v8927_v25 = vld [vmem:[#allocation8 + $0x264] ss:$16 sps:$4 sm:$0xff]  }
 0x226   :  { %3873 = vmatprep.subr.bf16.mxu0 %v8101_v54  ;;  %v528_v43 = vld [vmem:[#allocation5 + $0xd78] sm:$0xff] }
 0x227   :  { %3915 = vmatpush2.bf16.msra.mxu1 %v8372_v52  ;;  %v8293_v51 = vcombine.high %v520_v41, %v528_v43  ;;  %v248_v52 = vld [vmem:[#allocation5 + $0x4b8] sm:$0xff] }
 0x228   :  { %3916 = vmatprep.subr.bf16.mxu1 %v8357_v55  ;;  %v256_v54 = vld [vmem:[#allocation5 + $0x4f8] sm:$0xff]  ;;  %v628_v55 = vrot.slane %v9918_v22, %v9959_v58 }
 0x229   :  { %3874 = vmatpush2.bf16.msra.mxu0 %v8100_v0  ;;  %v504_v59 = vld [vmem:[#allocation5 + $0xcb8] sm:$0xff] }
 0x22a   :  { %3875 = vmatprep.subr.bf16.mxu0 %v8085_v2  ;;  %v512_v60 = vld [vmem:[#allocation5 + $0xcf8] sm:$0xff]  ;;  %v3380_v0 = vadd.f32 %v9923_v26, %v628_v55  ;;  %v8021_v2 = vcombine.high %v248_v52, %v256_v54  ;;  %v3376_v22 = vadd.f32 %v9909_v46, %v628_v55 }
 0x22b   :  { %3917 = vmatpush2.bf16.msra.mxu1 %v8356_v1  ;;  %v8292_v1 = vcombine.low %v520_v41, %v528_v43  ;;  %v8277_v6 = vcombine.high %v504_v59, %v512_v60  ;;  %v232_v7 = vld [vmem:[#allocation5 + $0x438] sm:$0xff]  ;;  %v8901_v41 = vld [vmem:[#allocation8 + $0x2e0] ss:$16 sps:$4 sm:$0xff]  }
 0x22c   :  { %3918 = vmatprep.subr.bf16.mxu1 %v8341_v4  ;;  %v3290_v4 = vadd.f32 %v9890_v3, %v620_v48  ;;  %v240_v8 = vld [vmem:[#allocation5 + $0x478] sm:$0xff]  ;;  %v3423_v26 = vadd.f32 %v9925_v29, %v3380_v0  ;;  %v3419_v21 = vadd.f32 %v9911_v50, %v3376_v22  ;;  %v8900_v29 = vld [vmem:[#allocation8 + $0xe4] ss:$16 sps:$4 sm:$0xff]   ;;  %v8907_v0 = vld [vmem:[#allocation8 + $0x2c0] ss:$16 sps:$4 sm:$0xff]  }
 0x22d   :  { %3876 = vmatpush2.bf16.msra.mxu0 %v8084_v13  ;;  %v488_v12 = vld [vmem:[#allocation5 + $0xc38] sm:$0xff]  ;;  %v8004_v46 = vcombine.low %v232_v7, %v240_v8  ;;  %v8913_v22 = vld [vmem:[#allocation8 + $0x2a0] ss:$16 sps:$4 sm:$0xff]  }
 0x22e   :  { %3877 = vmatprep.subr.bf16.mxu0 %v8069_v15  ;;  %v496_v13 = vld [vmem:[#allocation5 + $0xc78] sm:$0xff]  ;;  %v8276_v15 = vcombine.low %v504_v59, %v512_v60  ;;  %v3333_v3 = vadd.f32 %v9892_v10, %v3290_v4  ;;  %v3992_v27 = vmul.f32 0.01, %v3423_v26  ;;  %vm3960_vm9 = vcmp.gt.f32.partialorder %v3423_v26, 0.0  ;;  %v8915_v4 = vld [vmem:[#allocation8 + $0x2a4] ss:$16 sps:$4 sm:$0xff]  }
 0x22f   :  { %3919 = vmatpush2.bf16.msra.mxu1 %v8340_v14  ;;  %v8020_v14 = vcombine.low %v248_v52, %v256_v54  ;;  %v8261_v17 = vcombine.high %v488_v12, %v496_v13  ;;  %v8260_v37 = vcombine.low %v488_v12, %v496_v13  ;;  %v3976_v10 = vmul.f32 0.01, %v3419_v21  ;;  %v8909_v54 = vld [vmem:[#allocation8 + $0x2c4] ss:$16 sps:$4 sm:$0xff]  }
 0x230   :  { %3920 = vmatprep.subr.bf16.mxu1 %v8325_v16  ;;  %v8005_v16 = vcombine.high %v232_v7, %v240_v8  ;;  %vm3942_vm10 = vcmp.gt.f32.partialorder %v3333_v3, 0.0  ;;  %vm3944_vm11 = vcmp.gt.f32.partialorder %v3419_v21, 0.0  ;;  %v4024_v43 = vsel %vm3960_vm9, %v3423_v26, %v3992_v27  ;;  %v8910_v7 = vld [vmem:[#allocation8 + $0xa0] ss:$16 sps:$4 sm:$0xff]   ;;  %v8918_v12 = vld [vmem:[#allocation8 + $0x84] ss:$16 sps:$4 sm:$0xff]  }
 0x231   :  { %3878 = vmatpush2.bf16.msra.mxu0 %v8068_v28  ;;  %v9973_v28 = vld [vmem:[#allocation7 + $0x8] sm:$0xff]  ;;  %v4008_v52 = vsel %vm3944_vm11, %v3419_v21, %v3976_v10  ;;  %v8922_v27 = vld [vmem:[#allocation8 + $0x60] ss:$16 sps:$4 sm:$0xff]  }
 0x232   :  { %3879 = vmatprep.subr.bf16.mxu0 %v8053_v32  ;;  %v8903_v32 = vld [vmem:[#allocation8 + $0x2e4] ss:$16 sps:$4 sm:$0xff]   ;;  %v648_v50 = vrot.slane %v9973_v28, %v9884_v44  ;;  %v9987_v60 = vpack.c.bf16 %v4024_v43, %v4008_v52  ;;  %v8931_v10 = vld [vmem:[#allocation8 + $0x240] ss:$16 sps:$4 sm:$0xff]  }
 0x233   :  { %3921 = vmatpush2.bf16.msra.mxu1 %v8324_v31  ;;  %v3974_v31 = vmul.f32 0.01, %v3333_v3  ;;  %v8942_v43 = vld [vmem:[#allocation8 + $0x4] ss:$16 sps:$4 sm:$0xff]  }
 0x234   :  { %3922 = vmatprep.subr.bf16.mxu1 %v8309_v35  ;;  %v8898_v35 = vld [vmem:[#allocation8 + $0xe0] ss:$16 sps:$4 sm:$0xff]   ;;  %v8948_v52 = vld [vmem:[#allocation8 + $0x1e4] ss:$16 sps:$4 sm:$0xff]  }
 0x235   :  { %3880 = vmatpush2.bf16.msra.mxu0 %v8052_v63  ;;  %v9980_v63 = vpop.f32.mrf.mxu1 }
 0x236   :  { %3881 = vmatprep.subr.bf16.mxu0 %v8037_v47  ;;  %v8906_v47 = vld [vmem:[#allocation8 + $0xc4] ss:$16 sps:$4 sm:$0xff]  }
 0x237   :  { %3923 = vmatpush2.bf16.msra.mxu1 %v8308_v45  ;;  %v4006_v45 = vsel %vm3942_vm10, %v3333_v3, %v3974_v31  ;;  %v8924_v3 = vld [vmem:[#allocation8 + $0x64] ss:$16 sps:$4 sm:$0xff]  }
 0x238   :  { %3924 = vmatprep.subr.bf16.mxu1 %v8293_v51  ;;  %v9983_v51 = vpack.c.bf16 %v4022_v38, %v4006_v45  ;;  %v8933_v31 = vld [vmem:[#allocation8 + $0x244] ss:$16 sps:$4 sm:$0xff]   ;;  %v8934_v38 = vld [vmem:[#allocation8 + $0x20] ss:$16 sps:$4 sm:$0xff]  }
 0x239   :  { %3882 = vmatpush2.bf16.msra.mxu0 %v8036_v62  ;;  %v8945_v45 = vld [vmem:[#allocation8 + $0x204] ss:$16 sps:$4 sm:$0xff]  }
 0x23a   :  { %3883 = vmatprep.subr.bf16.mxu0 %v8021_v2 }
 0x23b   :  { %3925 = vmatpush2.bf16.msra.mxu1 %v8292_v1 }
 0x23c   :  { %3926 = vmatprep.subr.bf16.mxu1 %v8277_v6 }
 0x23d   :  { %3884 = vmatpush2.bf16.msra.mxu0 %v8020_v14  ;;  %v8921_v14 = vld [vmem:[#allocation8 + $0x284] ss:$16 sps:$4 sm:$0xff]  }
 0x23e   :  { %3885 = vmatprep.subr.bf16.mxu0 %v8005_v16  ;;  %v8919_v16 = vld [vmem:[#allocation8 + $0x280] ss:$16 sps:$4 sm:$0xff]  }
 0x23f   :  { %3927 = vmatpush2.bf16.msra.mxu1 %v8276_v15  ;;  %v8916_v15 = vld [vmem:[#allocation8 + $0x80] ss:$16 sps:$4 sm:$0xff]  }
 0x240   :  { %3928 = vmatprep.subr.bf16.mxu1 %v8261_v17 }
 0x241   :  { %3886 = vmatpush2.bf16.msra.mxu0 %v8004_v46 }
 0x242   :  { %7147 = vmatprep.subr.bf16.mxu0 %v8900_v29  ;;  %v8930_v29 = vld [vmem:[#allocation8 + $0x44] ss:$16 sps:$4 sm:$0xff]  }
 0x243   :  { %3929 = vmatpush2.bf16.msra.mxu1 %v8260_v37  ;;  %v8925_v37 = vld [vmem:[#allocation8 + $0x260] ss:$16 sps:$4 sm:$0xff]  }
 0x244   :  { %7190 = vmatprep.subr.bf16.mxu1 %v8903_v32  ;;  %v3631_v48 = vpop.f32.mrf.mxu0  ;;  %3888 = vmatmul.mubr.bf16.vlgmr.msra.gmra.mxu0 %v9863_v20  ;;  %v8912_v20 = vld [vmem:[#allocation8 + $0xa4] ss:$16 sps:$4 sm:$0xff]   ;;  %v8928_v32 = vld [vmem:[#allocation8 + $0x40] ss:$16 sps:$4 sm:$0xff]  }
 0x245   :  { %v3632_v55 = vadd.f32 %v3631_v48, %v648_v50  ;;  %7148 = vmatpush1.bf16.msra.mxu0 %v8898_v35  ;;  %7179 = vmatprep.mubr.bf16.mxu0 %v9983_v51  ;;  %v8939_v35 = vld [vmem:[#allocation8 + $0x224] ss:$16 sps:$4 sm:$0xff]   ;;  %v8943_v48 = vld [vmem:[#allocation8 + $0x200] ss:$16 sps:$4 sm:$0xff]  }
 0x246   :  { %v3674_v59 = vpop.f32.mrf.mxu1  ;;  %3931 = vmatmul.mubr.bf16.vlgmr.msra.gmra.mxu1 %v9865_v23  ;;  %v9990_v62 = vpop.f32.mrf.mxu0  ;;  %7149 = vmatprep.subr.bf16.mxu0 %v8906_v47  ;;  %v8940_v47 = vld [vmem:[#allocation8] ss:$16 sps:$4 sm:$0xff]  }
 0x247   :  { %7191 = vmatpush1.bf16.msra.mxu1 %v8901_v41  ;;  %v3675_v1 = vadd.f32 %v3674_v59, %v3632_v55  ;;  %7222 = vmatprep.mubr.bf16.mxu1 %v9987_v60  ;;  %v8937_v41 = vld [vmem:[#allocation8 + $0x220] ss:$16 sps:$4 sm:$0xff]  }
 0x248   :  { %v9993_v2 = vpop.f32.mrf.mxu1  ;;  %v3635_v6 = vpop.f32.mrf.mxu0  ;;  %7192 = vmatprep.subr.bf16.mxu1 %v8909_v54  ;;  %v8951_v54 = vld [vmem:[#allocation8 + $0x3e4] ss:$16 sps:$4 sm:$0xff]   ;;  %v8946_v55 = vld [vmem:[#allocation8 + $0x1e0] ss:$16 sps:$4 sm:$0xff]  }
 0x249   :  { %v3636_v23 = vadd.f32 %v3635_v6, %v648_v50  ;;  %7150 = vmatpush1.bf16.msra.mxu0 %v8904_v61  ;;  %v3981_v13 = vmul.f32 0.01, %v3675_v1  ;;  %vm3949_vm12 = vcmp.gt.f32.partialorder %v3675_v1, 0.0  ;;  %v8936_v50 = vld [vmem:[#allocation8 + $0x24] ss:$16 sps:$4 sm:$0xff]  }
 0x24a   :  { %v3678_v8 = vpop.f32.mrf.mxu1  ;;  %7151 = vmatprep.subr.bf16.mxu0 %v8912_v20  ;;  %v8949_v59 = vld [vmem:[#allocation8 + $0x3e0] ss:$16 sps:$4 sm:$0xff]   ;;  %v8954_v61 = vld [vmem:[#allocation8 + $0x1c4] ss:$16 sps:$4 sm:$0xff]  }
 0x24b   :  { %7193 = vmatpush1.bf16.msra.mxu1 %v8907_v0  ;;  %v3679_v30 = vadd.f32 %v3678_v8, %v3636_v23  ;;  %v4013_v17 = vsel %vm3949_vm12, %v3675_v1, %v3981_v13  ;;  %v8957_v0 = vld [vmem:[#allocation8 + $0x3c4] ss:$16 sps:$4 sm:$0xff]   ;;  %v8952_v20 = vld [vmem:[#allocation8 + $0x1c0] ss:$16 sps:$4 sm:$0xff]  }
 0x24c   :  { %7194 = vmatprep.subr.bf16.mxu1 %v8915_v4  ;;  %v8955_v1 = vld [vmem:[#allocation8 + $0x3c0] ss:$16 sps:$4 sm:$0xff]   ;;  %v8960_v4 = vld [vmem:[#allocation8 + $0x1a4] ss:$16 sps:$4 sm:$0xff]  }
 0x24d   :  { %vm3965_vm13 = vcmp.gt.f32.partialorder %v3679_v30, 0.0  ;;  %v3997_v26 = vmul.f32 0.01, %v3679_v30  ;;  %7152 = vmatpush1.bf16.msra.mxu0 %v8910_v7  ;;  %v8963_v6 = vld [vmem:[#allocation8 + $0x3a4] ss:$16 sps:$4 sm:$0xff]  }
 0x24e   :  { %7153 = vmatprep.subr.bf16.mxu0 %v8918_v12  ;;  %v8958_v23 = vld [vmem:[#allocation8 + $0x1a0] ss:$16 sps:$4 sm:$0xff]   ;;  %v8966_v8 = vld [vmem:[#allocation8 + $0x184] ss:$16 sps:$4 sm:$0xff]  }
 0x24f   :  { %7195 = vmatpush1.bf16.msra.mxu1 %v8913_v22  ;;  %v4029_v21 = vsel %vm3965_vm13, %v3679_v30, %v3997_v26  ;;  %v8961_v7 = vld [vmem:[#allocation8 + $0x3a0] ss:$16 sps:$4 sm:$0xff]   ;;  %v8969_v22 = vld [vmem:[#allocation8 + $0x384] ss:$16 sps:$4 sm:$0xff]  }
 0x250   :  { %7196 = vmatprep.subr.bf16.mxu1 %v8921_v14  ;;  %v9995_v46 = vpack.c.bf16 %v4029_v21, %v4013_v17  ;;  %v8964_v12 = vld [vmem:[#allocation8 + $0x180] ss:$16 sps:$4 sm:$0xff]   ;;  %v8972_v30 = vld [vmem:[#allocation8 + $0x164] ss:$16 sps:$4 sm:$0xff]   ;;  %v635_v14 = vsub.s32 5, %v9879_v34 }
 0x251   :  { %7154 = vmatpush1.bf16.msra.mxu0 %v8916_v15  ;;  %v8967_v13 = vld [vmem:[#allocation8 + $0x380] ss:$16 sps:$4 sm:$0xff]   ;;  %v8975_v26 = vld [vmem:[#allocation8 + $0x364] ss:$16 sps:$4 sm:$0xff]   ;;  %v643_v15 = vsub.s32 7, %v9879_v34 }
 0x252   :  { %7155 = vmatprep.subr.bf16.mxu0 %v8924_v3  ;;  %v8973_v3 = vld [vmem:[#allocation8 + $0x360] ss:$16 sps:$4 sm:$0xff]   ;;  %v8978_v17 = vld [vmem:[#allocation8 + $0x144] ss:$16 sps:$4 sm:$0xff]  }
 0x253   :  { %7197 = vmatpush1.bf16.msra.mxu1 %v8919_v16  ;;  %v8970_v16 = vld [vmem:[#allocation8 + $0x160] ss:$16 sps:$4 sm:$0xff]   ;;  %v9275_v34 = vld [vmem:[#allocation8 + $0xf24] ss:$16 sps:$4 sm:$0xff]  }
 0x254   :  { %7198 = vmatprep.subr.bf16.mxu1 %v8927_v25  ;;  %v9667_v21 = vld [vmem:[#allocation7] sm:$0xff] }
 0x255   :  { %7156 = vmatpush1.bf16.msra.mxu0 %v8922_v27  ;;  %v636_v25 = vrot.slane %v9667_v21, %v635_v14  ;;  %v8981_v27 = vld [vmem:[#allocation8 + $0x344] ss:$16 sps:$4 sm:$0xff]  }
 0x256   :  { %7157 = vmatprep.subr.bf16.mxu0 %v8930_v29 }
 0x257   :  { %7199 = vmatpush1.bf16.msra.mxu1 %v8925_v37  ;;  %v644_v37 = vrot.slane %v9667_v21, %v643_v15  ;;  %v3466_v29 = vadd.f32 %v9941_v53, %v636_v25 }
 0x258   :  { %7200 = vmatprep.subr.bf16.mxu1 %v8933_v31  ;;  %v8976_v31 = vld [vmem:[#allocation8 + $0x140] ss:$16 sps:$4 sm:$0xff]  }
 0x259   :  { %7158 = vmatpush1.bf16.msra.mxu0 %v8928_v32  ;;  %v3552_v32 = vadd.f32 %v9978_v39, %v644_v37  ;;  %v8990_v39 = vld [vmem:[#allocation8 + $0x104] ss:$16 sps:$4 sm:$0xff]  }
 0x25a   :  { %7159 = vmatprep.subr.bf16.mxu0 %v8936_v50  ;;  %v8984_v50 = vld [vmem:[#allocation8 + $0x124] ss:$16 sps:$4 sm:$0xff]  }
 0x25b   :  { %7201 = vmatpush1.bf16.msra.mxu1 %v8931_v10  ;;  %v8979_v10 = vld [vmem:[#allocation8 + $0x340] ss:$16 sps:$4 sm:$0xff]   ;;  %v3595_v53 = vadd.f32 %v9980_v63, %v3552_v32 }
 0x25c   :  { %7202 = vmatprep.subr.bf16.mxu1 %v8939_v35  ;;  %v3462_v35 = vadd.f32 %v9929_v42, %v636_v25  ;;  %v9003_v25 = vld [vmem:[#allocation8 + $0x6c0] ss:$16 sps:$4 sm:$0xff]  }
 0x25d   :  { %7160 = vmatpush1.bf16.msra.mxu0 %v8934_v38  ;;  %v8987_v38 = vld [vmem:[#allocation8 + $0x324] ss:$16 sps:$4 sm:$0xff]   ;;  %vm3964_vm15 = vcmp.gt.f32.partialorder %v3595_v53, 0.0 }
 0x25e   :  { %7161 = vmatprep.subr.bf16.mxu0 %v8942_v43  ;;  %v3509_v43 = vadd.f32 %v9943_v56, %v3466_v29  ;;  %v8991_v56 = vld [vmem:[#allocation8 + $0x300] ss:$16 sps:$4 sm:$0xff]  }
 0x25f   :  { %7203 = vmatpush1.bf16.msra.mxu1 %v8937_v41  ;;  %v3548_v41 = vadd.f32 %v9947_v5, %v644_v37  ;;  %v8988_v5 = vld [vmem:[#allocation8 + $0x100] ss:$16 sps:$4 sm:$0xff]  }
 0x260   :  { %7204 = vmatprep.subr.bf16.mxu1 %v8945_v45  ;;  %v8982_v45 = vld [vmem:[#allocation8 + $0x120] ss:$16 sps:$4 sm:$0xff]   ;;  %vm3962_vm14 = vcmp.gt.f32.partialorder %v3509_v43, 0.0 }
 0x261   :  { %7162 = vmatpush1.bf16.msra.mxu0 %v8940_v47  ;;  %v8985_v47 = vld [vmem:[#allocation8 + $0x320] ss:$16 sps:$4 sm:$0xff]   ;;  %v3591_v42 = vadd.f32 %v9949_v9, %v3548_v41  ;;  %v9014_v41 = vld [vmem:[#allocation8 + $0x484] ss:$16 sps:$4 sm:$0xff]  }
 0x262   :  { %7163 = vmatprep.subr.bf16.mxu0 %v8948_v52  ;;  %v8993_v52 = vld [vmem:[#allocation8 + $0x304] ss:$16 sps:$4 sm:$0xff]   ;;  %v8994_v9 = vld [vmem:[#allocation8 + $0x4e0] ss:$16 sps:$4 sm:$0xff]  }
 0x263   :  { %7205 = vmatpush1.bf16.msra.mxu1 %v8943_v48  ;;  %v3505_v48 = vadd.f32 %v9931_v49, %v3462_v35  ;;  %vm3948_vm1 = vcmp.gt.f32.partialorder %v3591_v42, 0.0  ;;  %v656_v49 = vrot.slane %v9973_v28, %v9899_v18 }
 0x264   :  { %7206 = vmatprep.subr.bf16.mxu1 %v8951_v54  ;;  %v3994_v54 = vmul.f32 0.01, %v3509_v43 }
 0x265   :  { %7164 = vmatpush2.bf16.msra.mxu0 %v8946_v55  ;;  %v3996_v55 = vmul.f32 0.01, %v3595_v53  ;;  %v3978_v63 = vmul.f32 0.01, %v3505_v48  ;;  %vm3946_vm0 = vcmp.gt.f32.partialorder %v3505_v48, 0.0 }
 0x266   :  { %7165 = vmatprep.subr.bf16.mxu0 %v8954_v61  ;;  %v8999_v61 = vld [vmem:[#allocation8 + $0x6e4] ss:$16 sps:$4 sm:$0xff]  }
 0x267   :  { %7207 = vmatpush2.bf16.msra.mxu1 %v8949_v59  ;;  %v8996_v59 = vld [vmem:[#allocation8 + $0x4e4] ss:$16 sps:$4 sm:$0xff]  }
 0x268   :  { %7208 = vmatprep.subr.bf16.mxu1 %v8957_v0  ;;  %v3980_v0 = vmul.f32 0.01, %v3591_v42 }
 0x269   :  { %7166 = vmatpush2.bf16.msra.mxu0 %v8952_v20  ;;  %v4026_v20 = vsel %vm3962_vm14, %v3509_v43, %v3994_v54 }
 0x26a   :  { %7167 = vmatprep.subr.bf16.mxu0 %v8960_v4  ;;  %v8997_v4 = vld [vmem:[#allocation8 + $0x6e0] ss:$16 sps:$4 sm:$0xff]  }
 0x26b   :  { %7209 = vmatpush2.bf16.msra.mxu1 %v8955_v1  ;;  %v10014_v1 = vpop.f32.mrf.mxu0 }
 0x26c   :  { %7210 = vmatprep.subr.bf16.mxu1 %v8963_v6  ;;  %v4028_v6 = vsel %vm3964_vm15, %v3595_v53, %v3996_v55  ;;  %v9017_v53 = vld [vmem:[#allocation8 + $0x684] ss:$16 sps:$4 sm:$0xff]  }
 0x26d   :  { %7168 = vmatpush2.bf16.msra.mxu0 %v8958_v23  ;;  %v10016_v23 = vpop.f32.mrf.mxu1 }
 0x26e   :  { %7169 = vmatprep.subr.bf16.mxu0 %v8966_v8  ;;  %v9002_v8 = vld [vmem:[#allocation8 + $0x4c4] ss:$16 sps:$4 sm:$0xff]  }
 0x26f   :  { %7211 = vmatpush2.bf16.msra.mxu1 %v8961_v7  ;;  %v4010_v7 = vsel %vm3946_vm0, %v3505_v48, %v3978_v63  ;;  %v9015_v48 = vld [vmem:[#allocation8 + $0x680] ss:$16 sps:$4 sm:$0xff]   ;;  %v9026_v63 = vld [vmem:[#allocation8 + $0x444] ss:$16 sps:$4 sm:$0xff]  }
 0x270   :  { %7212 = vmatprep.subr.bf16.mxu1 %v8969_v22 }
 0x271   :  { %7170 = vmatpush2.bf16.msra.mxu0 %v8964_v12  ;;  %v10019_v12 = vpack.c.bf16 %v4026_v20, %v4010_v7  ;;  %v9035_v20 = vld [vmem:[#allocation8 + $0x624] ss:$16 sps:$4 sm:$0xff]  }
 0x272   :  { %7171 = vmatprep.subr.bf16.mxu0 %v8972_v30  ;;  %v9005_v30 = vld [vmem:[#allocation8 + $0x6c4] ss:$16 sps:$4 sm:$0xff]  }
 0x273   :  { %7213 = vmatpush2.bf16.msra.mxu1 %v8967_v13  ;;  %v4012_v13 = vsel %vm3948_vm1, %v3591_v42, %v3980_v0  ;;  %v9024_v0 = vld [vmem:[#allocation8 + $0x440] ss:$16 sps:$4 sm:$0xff]   ;;  %v9038_v7 = vld [vmem:[#allocation8 + $0x404] ss:$16 sps:$4 sm:$0xff]  }
 0x274   :  { %7214 = vmatprep.subr.bf16.mxu1 %v8975_v26 }
 0x275   :  { %7172 = vmatpush2.bf16.msra.mxu0 %v8970_v16 }
 0x276   :  { %7173 = vmatprep.subr.bf16.mxu0 %v8978_v17  ;;  %v9000_v17 = vld [vmem:[#allocation8 + $0x4c0] ss:$16 sps:$4 sm:$0xff]  }
 0x277   :  { %7215 = vmatpush2.bf16.msra.mxu1 %v8973_v3  ;;  %v10023_v3 = vpack.c.bf16 %v4028_v6, %v4012_v13  ;;  %v9033_v6 = vld [vmem:[#allocation8 + $0x620] ss:$16 sps:$4 sm:$0xff]  }
 0x278   :  { %7216 = vmatprep.subr.bf16.mxu1 %v8981_v27  ;;  %v9008_v27 = vld [vmem:[#allocation8 + $0x4a4] ss:$16 sps:$4 sm:$0xff]   ;;  %v9039_v13 = vld [vmem:[#allocation8 + $0x600] ss:$16 sps:$4 sm:$0xff]  }
 0x279   :  { %7174 = vmatpush2.bf16.msra.mxu0 %v8976_v31  ;;  %v9011_v31 = vld [vmem:[#allocation8 + $0x6a4] ss:$16 sps:$4 sm:$0xff]  }
 0x27a   :  { %7175 = vmatprep.subr.bf16.mxu0 %v8984_v50  ;;  %v9006_v50 = vld [vmem:[#allocation8 + $0x4a0] ss:$16 sps:$4 sm:$0xff]  }
 0x27b   :  { %7217 = vmatpush2.bf16.msra.mxu1 %v8979_v10 }
 0x27c   :  { %7218 = vmatprep.subr.bf16.mxu1 %v8987_v38  ;;  %v9009_v38 = vld [vmem:[#allocation8 + $0x6a0] ss:$16 sps:$4 sm:$0xff]  }
 0x27d   :  { %7176 = vmatpush2.bf16.msra.mxu0 %v8982_v45 }
 0x27e   :  { %7177 = vmatprep.subr.bf16.mxu0 %v8990_v39  ;;  %v9012_v39 = vld [vmem:[#allocation8 + $0x480] ss:$16 sps:$4 sm:$0xff]  }
 0x27f   :  { %7219 = vmatpush2.bf16.msra.mxu1 %v8985_v47 }
 0x280   :  { %7220 = vmatprep.subr.bf16.mxu1 %v8993_v52  ;;  %v9020_v52 = vld [vmem:[#allocation8 + $0x464] ss:$16 sps:$4 sm:$0xff]  }
 0x281   :  { %7178 = vmatpush2.bf16.msra.mxu0 %v8988_v5  ;;  %v9023_v5 = vld [vmem:[#allocation8 + $0x664] ss:$16 sps:$4 sm:$0xff]  }
 0x282   :  { %7233 = vmatprep.subr.bf16.mxu0 %v8996_v59  ;;  %v9021_v59 = vld [vmem:[#allocation8 + $0x660] ss:$16 sps:$4 sm:$0xff]  }
 0x283   :  { %7221 = vmatpush2.bf16.msra.mxu1 %v8991_v56  ;;  %v9018_v56 = vld [vmem:[#allocation8 + $0x460] ss:$16 sps:$4 sm:$0xff]  }
 0x284   :  { %7276 = vmatprep.subr.bf16.mxu1 %v8999_v61  ;;  %v3717_v22 = vpop.f32.mrf.mxu0  ;;  %7180 = vmatmul.mubr.bf16.vlgmr.msra.gmra.mxu0 %v9896_v40  ;;  %v9029_v61 = vld [vmem:[#allocation8 + $0x644] ss:$16 sps:$4 sm:$0xff]  }
 0x285   :  { %v3718_v26 = vadd.f32 %v3717_v22, %v656_v49  ;;  %7234 = vmatpush1.bf16.msra.mxu0 %v8994_v9  ;;  %7265 = vmatprep.mubr.bf16.mxu0 %v10019_v12  ;;  %v9032_v9 = vld [vmem:[#allocation8 + $0x424] ss:$16 sps:$4 sm:$0xff]   ;;  %v9036_v22 = vld [vmem:[#allocation8 + $0x400] ss:$16 sps:$4 sm:$0xff]  }
 0x286   :  { %v3760_v16 = vpop.f32.mrf.mxu1  ;;  %7223 = vmatmul.mubr.bf16.vlgmr.msra.gmra.mxu1 %v9915_v19  ;;  %v10026_v21 = vpop.f32.mrf.mxu0  ;;  %7235 = vmatprep.subr.bf16.mxu0 %v9002_v8  ;;  %v9041_v8 = vld [vmem:[#allocation8 + $0x604] ss:$16 sps:$4 sm:$0xff]  }
 0x287   :  { %7277 = vmatpush1.bf16.msra.mxu1 %v8997_v4  ;;  %v3761_v37 = vadd.f32 %v3760_v16, %v3718_v26  ;;  %7308 = vmatprep.mubr.bf16.mxu1 %v10023_v3  ;;  %v9030_v4 = vld [vmem:[#allocation8 + $0x420] ss:$16 sps:$4 sm:$0xff]   ;;  %v9047_v26 = vld [vmem:[#allocation8 + $0x7e4] ss:$16 sps:$4 sm:$0xff]  }
 0x288   :  { %v10029_v29 = vpop.f32.mrf.mxu1  ;;  %v3721_v32 = vpop.f32.mrf.mxu0  ;;  %7278 = vmatprep.subr.bf16.mxu1 %v9005_v30  ;;  %v9044_v30 = vld [vmem:[#allocation8 + $0x5e4] ss:$16 sps:$4 sm:$0xff]   ;;  %v9042_v16 = vld [vmem:[#allocation8 + $0x5e0] ss:$16 sps:$4 sm:$0xff]  }
 0x289   :  { %v3722_v10 = vadd.f32 %v3721_v32, %v656_v49  ;;  %7236 = vmatpush1.bf16.msra.mxu0 %v9000_v17  ;;  %v3983_v43 = vmul.f32 0.01, %v3761_v37  ;;  %vm3951_vm2 = vcmp.gt.f32.partialorder %v3761_v37, 0.0  ;;  %v9027_v49 = vld [vmem:[#allocation8 + $0x640] ss:$16 sps:$4 sm:$0xff]  }
 0x28a   :  { %v3764_v35 = vpop.f32.mrf.mxu1  ;;  %7237 = vmatprep.subr.bf16.mxu0 %v9008_v27  ;;  %v9045_v17 = vld [vmem:[#allocation8 + $0x7e0] ss:$16 sps:$4 sm:$0xff]   ;;  %v9053_v27 = vld [vmem:[#allocation8 + $0x7c4] ss:$16 sps:$4 sm:$0xff]  }
 0x28b   :  { %7279 = vmatpush1.bf16.msra.mxu1 %v9003_v25  ;;  %v3765_v45 = vadd.f32 %v3764_v35, %v3722_v10  ;;  %v4015_v42 = vsel %vm3951_vm2, %v3761_v37, %v3983_v43  ;;  %v9050_v25 = vld [vmem:[#allocation8 + $0x5c4] ss:$16 sps:$4 sm:$0xff]   ;;  %v9048_v37 = vld [vmem:[#allocation8 + $0x5c0] ss:$16 sps:$4 sm:$0xff]  }
 0x28c   :  { %7280 = vmatprep.subr.bf16.mxu1 %v9011_v31  ;;  %v9051_v31 = vld [vmem:[#allocation8 + $0x7c0] ss:$16 sps:$4 sm:$0xff]   ;;  %v9056_v32 = vld [vmem:[#allocation8 + $0x5a4] ss:$16 sps:$4 sm:$0xff]  }
 0x28d   :  { %vm3967_vm3 = vcmp.gt.f32.partialorder %v3765_v45, 0.0  ;;  %v3999_v47 = vmul.f32 0.01, %v3765_v45  ;;  %7238 = vmatpush1.bf16.msra.mxu0 %v9006_v50  ;;  %v9059_v10 = vld [vmem:[#allocation8 + $0x7a4] ss:$16 sps:$4 sm:$0xff]  }
 0x28e   :  { %7239 = vmatprep.subr.bf16.mxu0 %v9014_v41  ;;  %v9054_v50 = vld [vmem:[#allocation8 + $0x5a0] ss:$16 sps:$4 sm:$0xff]   ;;  %v9065_v41 = vld [vmem:[#allocation8 + $0x784] ss:$16 sps:$4 sm:$0xff]  }
 0x28f   :  { %7281 = vmatpush1.bf16.msra.mxu1 %v9009_v38  ;;  %v4031_v54 = vsel %vm3967_vm3, %v3765_v45, %v3999_v47  ;;  %v9057_v35 = vld [vmem:[#allocation8 + $0x7a0] ss:$16 sps:$4 sm:$0xff]   ;;  %v9062_v38 = vld [vmem:[#allocation8 + $0x584] ss:$16 sps:$4 sm:$0xff]  }
 0x290   :  { %7282 = vmatprep.subr.bf16.mxu1 %v9017_v53  ;;  %v10031_v55 = vpack.c.bf16 %v4031_v54, %v4015_v42  ;;  %v9060_v43 = vld [vmem:[#allocation8 + $0x580] ss:$16 sps:$4 sm:$0xff]   ;;  %v9068_v53 = vld [vmem:[#allocation8 + $0x564] ss:$16 sps:$4 sm:$0xff]   ;;  %v652_v42 = vrot.slane %v9973_v28, %v9956_v33  ;;  %v3723_v54 = vpop.f32.mrf.mxu0 }
 0x291   :  { %7240 = vmatpush1.bf16.msra.mxu0 %v9012_v39  ;;  %v9063_v45 = vld [vmem:[#allocation8 + $0x780] ss:$16 sps:$4 sm:$0xff]   ;;  %v9071_v47 = vld [vmem:[#allocation8 + $0x764] ss:$16 sps:$4 sm:$0xff]  }
 0x292   :  { %7241 = vmatprep.subr.bf16.mxu0 %v9020_v52  ;;  %v9066_v39 = vld [vmem:[#allocation8 + $0x560] ss:$16 sps:$4 sm:$0xff]   ;;  %v9074_v52 = vld [vmem:[#allocation8 + $0x544] ss:$16 sps:$4 sm:$0xff]  }
 0x293   :  { %7283 = vmatpush1.bf16.msra.mxu1 %v9015_v48  ;;  %v9069_v48 = vld [vmem:[#allocation8 + $0x760] ss:$16 sps:$4 sm:$0xff]  }
 0x294   :  { %7284 = vmatprep.subr.bf16.mxu1 %v9023_v5  ;;  %v9077_v5 = vld [vmem:[#allocation8 + $0x744] ss:$16 sps:$4 sm:$0xff]  }
 0x295   :  { %7242 = vmatpush1.bf16.msra.mxu0 %v9018_v56  ;;  %v660_v56 = vrot.slane %v9973_v28, %v9959_v58 }
 0x296   :  { %7243 = vmatprep.subr.bf16.mxu0 %v9026_v63  ;;  %v9072_v63 = vld [vmem:[#allocation8 + $0x540] ss:$16 sps:$4 sm:$0xff]  }
 0x297   :  { %7285 = vmatpush1.bf16.msra.mxu1 %v9021_v59  ;;  %v3638_v59 = vadd.f32 %v10014_v1, %v652_v42  ;;  %v9081_v1 = vld [vmem:[#allocation8 + $0x720] ss:$16 sps:$4 sm:$0xff]  }
 0x298   :  { %7286 = vmatprep.subr.bf16.mxu1 %v9029_v61  ;;  %v3724_v61 = vadd.f32 %v3723_v54, %v660_v56  ;;  %v9104_v54 = vld [vmem:[#allocation8 + $0x8a4] ss:$16 sps:$4 sm:$0xff]  }
 0x299   :  { %7244 = vmatpush1.bf16.msra.mxu0 %v9024_v0  ;;  %v9075_v0 = vld [vmem:[#allocation8 + $0x740] ss:$16 sps:$4 sm:$0xff]  }
 0x29a   :  { %7245 = vmatprep.subr.bf16.mxu0 %v9032_v9  ;;  %v3634_v9 = vadd.f32 %v9990_v62, %v652_v42  ;;  %v9099_v42 = vld [vmem:[#allocation8 + $0xac0] ss:$16 sps:$4 sm:$0xff]  }
 0x29b   :  { %7287 = vmatpush1.bf16.msra.mxu1 %v9027_v49  ;;  %v9080_v49 = vld [vmem:[#allocation8 + $0x524] ss:$16 sps:$4 sm:$0xff]  }
 0x29c   :  { %7288 = vmatprep.subr.bf16.mxu1 %v9035_v20  ;;  %v9083_v20 = vld [vmem:[#allocation8 + $0x724] ss:$16 sps:$4 sm:$0xff]  }
 0x29d   :  { %7246 = vmatpush1.bf16.msra.mxu0 %v9030_v4  ;;  %v3720_v4 = vadd.f32 %v10026_v21, %v660_v56  ;;  %v9087_v21 = vld [vmem:[#allocation8 + $0x700] ss:$16 sps:$4 sm:$0xff]  }
 0x29e   :  { %7247 = vmatprep.subr.bf16.mxu0 %v9038_v7  ;;  %v3766_v7 = vpop.f32.mrf.mxu1 }
 0x29f   :  { %7289 = vmatpush1.bf16.msra.mxu1 %v9033_v6  ;;  %v3681_v6 = vadd.f32 %v10016_v23, %v3638_v59  ;;  %v3763_v62 = vadd.f32 %v10029_v29, %v3720_v4  ;;  %v9090_v29 = vld [vmem:[#allocation8 + $0x8e0] ss:$16 sps:$4 sm:$0xff]   ;;  %v9107_v59 = vld [vmem:[#allocation8 + $0xaa4] ss:$16 sps:$4 sm:$0xff]  }
 0x2a0   :  { %7290 = vmatprep.subr.bf16.mxu1 %v9041_v8  ;;  %v9078_v8 = vld [vmem:[#allocation8 + $0x520] ss:$16 sps:$4 sm:$0xff]  }
 0x2a1   :  { %7248 = vmatpush1.bf16.msra.mxu0 %v9036_v22  ;;  %v3767_v22 = vadd.f32 %v3766_v7, %v3724_v61  ;;  %vm3966_vm4 = vcmp.gt.f32.partialorder %v3681_v6, 0.0  ;;  %vm3952_vm7 = vcmp.gt.f32.partialorder %v3763_v62, 0.0  ;;  %v9113_v7 = vld [vmem:[#allocation8 + $0xa84] ss:$16 sps:$4 sm:$0xff]  }
 0x2a2   :  { %7249 = vmatprep.subr.bf16.mxu0 %v9044_v30  ;;  %v3677_v30 = vadd.f32 %v9993_v2, %v3634_v9  ;;  %v664_v2 = vrot.slane %v9973_v28, %v631_v11  ;;  %v9105_v9 = vld [vmem:[#allocation8 + $0xaa0] ss:$16 sps:$4 sm:$0xff]  }
 0x2a3   :  { %7291 = vmatpush1.bf16.msra.mxu1 %v9039_v13  ;;  %v9086_v13 = vld [vmem:[#allocation8 + $0x504] ss:$16 sps:$4 sm:$0xff]   ;;  %v4000_v23 = vmul.f32 0.01, %v3767_v22  ;;  %vm3968_vm5 = vcmp.gt.f32.partialorder %v3767_v22, 0.0 }
 0x2a4   :  { %7292 = vmatprep.subr.bf16.mxu1 %v9047_v26  ;;  %v9089_v26 = vld [vmem:[#allocation8 + $0x704] ss:$16 sps:$4 sm:$0xff]   ;;  %vm3950_vm6 = vcmp.gt.f32.partialorder %v3677_v30, 0.0 }
 0x2a5   :  { %7250 = vmatpush2.bf16.msra.mxu0 %v9042_v16  ;;  %v3998_v16 = vmul.f32 0.01, %v3681_v6 }
 0x2a6   :  { %7251 = vmatprep.subr.bf16.mxu0 %v9050_v25  ;;  %v9092_v25 = vld [vmem:[#allocation8 + $0x8e4] ss:$16 sps:$4 sm:$0xff]  }
 0x2a7   :  { %7293 = vmatpush2.bf16.msra.mxu1 %v9045_v17  ;;  %v9084_v17 = vld [vmem:[#allocation8 + $0x500] ss:$16 sps:$4 sm:$0xff]  }
 0x2a8   :  { %7294 = vmatprep.subr.bf16.mxu1 %v9053_v27  ;;  %v3982_v27 = vmul.f32 0.01, %v3677_v30 }
 0x2a9   :  { %7252 = vmatpush2.bf16.msra.mxu0 %v9048_v37  ;;  %v9095_v37 = vld [vmem:[#allocation8 + $0xae4] ss:$16 sps:$4 sm:$0xff]  }
 0x2aa   :  { %7253 = vmatprep.subr.bf16.mxu0 %v9056_v32  ;;  %v4030_v32 = vsel %vm3966_vm4, %v3681_v6, %v3998_v16 }
 0x2ab   :  { %7295 = vmatpush2.bf16.msra.mxu1 %v9051_v31  ;;  %v3984_v31 = vmul.f32 0.01, %v3763_v62 }
 0x2ac   :  { %7296 = vmatprep.subr.bf16.mxu1 %v9059_v10  ;;  %v9093_v10 = vld [vmem:[#allocation8 + $0xae0] ss:$16 sps:$4 sm:$0xff]  }
 0x2ad   :  { %7254 = vmatpush2.bf16.msra.mxu0 %v9054_v50  ;;  %v4032_v50 = vsel %vm3968_vm5, %v3767_v22, %v4000_v23  ;;  %v9108_v22 = vld [vmem:[#allocation8 + $0x880] ss:$16 sps:$4 sm:$0xff]   ;;  %v9122_v23 = vld [vmem:[#allocation8 + $0x844] ss:$16 sps:$4 sm:$0xff]  }
 0x2ae   :  { %7255 = vmatprep.subr.bf16.mxu0 %v9062_v38  ;;  %v9098_v38 = vld [vmem:[#allocation8 + $0x8c4] ss:$16 sps:$4 sm:$0xff]  }
 0x2af   :  { %7297 = vmatpush2.bf16.msra.mxu1 %v9057_v35  ;;  %v4014_v35 = vsel %vm3950_vm6, %v3677_v30, %v3982_v27  ;;  %v9120_v27 = vld [vmem:[#allocation8 + $0x840] ss:$16 sps:$4 sm:$0xff]  }
 0x2b0   :  { %7298 = vmatprep.subr.bf16.mxu1 %v9065_v41 }
 0x2b1   :  { %7256 = vmatpush2.bf16.msra.mxu0 %v9060_v43  ;;  %v10047_v43 = vpack.c.bf16 %v4030_v32, %v4014_v35  ;;  %v9129_v32 = vld [vmem:[#allocation8 + $0xa20] ss:$16 sps:$4 sm:$0xff]  }
 0x2b2   :  { %7257 = vmatprep.subr.bf16.mxu0 %v9068_v53  ;;  %v9101_v53 = vld [vmem:[#allocation8 + $0xac4] ss:$16 sps:$4 sm:$0xff]   ;;  %v9132_v35 = vld [vmem:[#allocation8 + $0x800] ss:$16 sps:$4 sm:$0xff]  }
 0x2b3   :  { %7299 = vmatpush2.bf16.msra.mxu1 %v9063_v45  ;;  %v4016_v45 = vsel %vm3952_vm7, %v3763_v62, %v3984_v31  ;;  %v9119_v62 = vld [vmem:[#allocation8 + $0xa64] ss:$16 sps:$4 sm:$0xff]  }
 0x2b4   :  { %7300 = vmatprep.subr.bf16.mxu1 %v9071_v47  ;;  %v10050_v11 = vpack.c.bf16 %v4032_v50, %v4016_v45  ;;  %v9128_v31 = vld [vmem:[#allocation8 + $0x824] ss:$16 sps:$4 sm:$0xff]  }
 0x2b5   :  { %7258 = vmatpush2.bf16.msra.mxu0 %v9066_v39  ;;  %v9137_v50 = vld [vmem:[#allocation8 + $0xa04] ss:$16 sps:$4 sm:$0xff]  }
 0x2b6   :  { %7259 = vmatprep.subr.bf16.mxu0 %v9074_v52  ;;  %v9143_v45 = vld [vmem:[#allocation8 + $0xbe4] ss:$16 sps:$4 sm:$0xff]  }
 0x2b7   :  { %7301 = vmatpush2.bf16.msra.mxu1 %v9069_v48  ;;  %v9096_v48 = vld [vmem:[#allocation8 + $0x8c0] ss:$16 sps:$4 sm:$0xff]  }
 0x2b8   :  { %7302 = vmatprep.subr.bf16.mxu1 %v9077_v5 }
 0x2b9   :  { %7260 = vmatpush2.bf16.msra.mxu0 %v9072_v63 }
 0x2ba   :  { %7261 = vmatprep.subr.bf16.mxu0 %v9080_v49 }
 0x2bb   :  { %7303 = vmatpush2.bf16.msra.mxu1 %v9075_v0  ;;  %v9102_v0 = vld [vmem:[#allocation8 + $0x8a0] ss:$16 sps:$4 sm:$0xff]  }
 0x2bc   :  { %7304 = vmatprep.subr.bf16.mxu1 %v9083_v20  ;;  %v9110_v20 = vld [vmem:[#allocation8 + $0x884] ss:$16 sps:$4 sm:$0xff]  }
 0x2bd   :  { %7262 = vmatpush2.bf16.msra.mxu0 %v9078_v8 }
 0x2be   :  { %7263 = vmatprep.subr.bf16.mxu0 %v9086_v13  ;;  %v9116_v13 = vld [vmem:[#allocation8 + $0x864] ss:$16 sps:$4 sm:$0xff]  }
 0x2bf   :  { %7305 = vmatpush2.bf16.msra.mxu1 %v9081_v1  ;;  %v9111_v1 = vld [vmem:[#allocation8 + $0xa80] ss:$16 sps:$4 sm:$0xff]  }
 0x2c0   :  { %7306 = vmatprep.subr.bf16.mxu1 %v9089_v26 }
 0x2c1   :  { %7264 = vmatpush2.bf16.msra.mxu0 %v9084_v17  ;;  %v9114_v17 = vld [vmem:[#allocation8 + $0x860] ss:$16 sps:$4 sm:$0xff]  }
 0x2c2   :  { %7319 = vmatprep.subr.bf16.mxu0 %v9092_v25  ;;  %v9125_v25 = vld [vmem:[#allocation8 + $0xa44] ss:$16 sps:$4 sm:$0xff]  }
 0x2c3   :  { %7307 = vmatpush2.bf16.msra.mxu1 %v9087_v21  ;;  %v9117_v21 = vld [vmem:[#allocation8 + $0xa60] ss:$16 sps:$4 sm:$0xff]  }
 0x2c4   :  { %7362 = vmatprep.subr.bf16.mxu1 %v9095_v37  ;;  %v3803_v41 = vpop.f32.mrf.mxu0  ;;  %7266 = vmatmul.mubr.bf16.vlgmr.msra.gmra.mxu0 %v9935_v24  ;;  %v9123_v37 = vld [vmem:[#allocation8 + $0xa40] ss:$16 sps:$4 sm:$0xff]  }
 0x2c5   :  { %v3804_v47 = vadd.f32 %v3803_v41, %v664_v2  ;;  %7320 = vmatpush1.bf16.msra.mxu0 %v9090_v29  ;;  %7351 = vmatprep.mubr.bf16.mxu0 %v10047_v43  ;;  %v9126_v29 = vld [vmem:[#allocation8 + $0x820] ss:$16 sps:$4 sm:$0xff]   ;;  %v9140_v41 = vld [vmem:[#allocation8 + $0x9e4] ss:$16 sps:$4 sm:$0xff]  }
 0x2c6   :  { %v3846_v39 = vpop.f32.mrf.mxu1  ;;  %7309 = vmatmul.mubr.bf16.vlgmr.msra.gmra.mxu1 %v9953_v57  ;;  %v10053_v52 = vpop.f32.mrf.mxu0  ;;  %7321 = vmatprep.subr.bf16.mxu0 %v9098_v38  ;;  %v9135_v38 = vld [vmem:[#allocation8 + $0xa00] ss:$16 sps:$4 sm:$0xff]  }
 0x2c7   :  { %7363 = vmatpush1.bf16.msra.mxu1 %v9093_v10  ;;  %v3847_v5 = vadd.f32 %v3846_v39, %v3804_v47  ;;  %7394 = vmatprep.mubr.bf16.mxu1 %v10050_v11  ;;  %v9134_v10 = vld [vmem:[#allocation8 + $0x804] ss:$16 sps:$4 sm:$0xff]   ;;  %v9141_v47 = vld [vmem:[#allocation8 + $0xbe0] ss:$16 sps:$4 sm:$0xff]  }
 0x2c8   :  { %v10056_v56 = vpop.f32.mrf.mxu1  ;;  %v3807_v63 = vpop.f32.mrf.mxu0  ;;  %7364 = vmatprep.subr.bf16.mxu1 %v9101_v53  ;;  %v9138_v53 = vld [vmem:[#allocation8 + $0x9e0] ss:$16 sps:$4 sm:$0xff]   ;;  %v9146_v39 = vld [vmem:[#allocation8 + $0x9c4] ss:$16 sps:$4 sm:$0xff]  }
 0x2c9   :  { %v3808_v61 = vadd.f32 %v3807_v63, %v664_v2  ;;  %7322 = vmatpush1.bf16.msra.mxu0 %v9096_v48  ;;  %v3985_v4 = vmul.f32 0.01, %v3847_v5  ;;  %vm3953_vm8 = vcmp.gt.f32.partialorder %v3847_v5, 0.0  ;;  %v9131_v2 = vld [vmem:[#allocation8 + $0xa24] ss:$16 sps:$4 sm:$0xff]  }
 0x2ca   :  { %v3850_v49 = vpop.f32.mrf.mxu1  ;;  %7323 = vmatprep.subr.bf16.mxu0 %v9104_v54  ;;  %v9149_v48 = vld [vmem:[#allocation8 + $0xbc4] ss:$16 sps:$4 sm:$0xff]   ;;  %v9147_v54 = vld [vmem:[#allocation8 + $0xbc0] ss:$16 sps:$4 sm:$0xff]  }
 0x2cb   :  { %7365 = vmatpush1.bf16.msra.mxu1 %v9099_v42  ;;  %v3851_v6 = vadd.f32 %v3850_v49, %v3808_v61  ;;  %v4017_v30 = vsel %vm3953_vm8, %v3847_v5, %v3985_v4  ;;  %v9144_v42 = vld [vmem:[#allocation8 + $0x9c0] ss:$16 sps:$4 sm:$0xff]   ;;  %v9152_v5 = vld [vmem:[#allocation8 + $0x9a4] ss:$16 sps:$4 sm:$0xff]  }
 0x2cc   :  { %7366 = vmatprep.subr.bf16.mxu1 %v9107_v59  ;;  %v9155_v59 = vld [vmem:[#allocation8 + $0xba4] ss:$16 sps:$4 sm:$0xff]   ;;  %v9150_v63 = vld [vmem:[#allocation8 + $0x9a0] ss:$16 sps:$4 sm:$0xff]  }
 0x2cd   :  { %vm3969_vm9 = vcmp.gt.f32.partialorder %v3851_v6, 0.0  ;;  %v4001_v8 = vmul.f32 0.01, %v3851_v6  ;;  %7324 = vmatpush1.bf16.msra.mxu0 %v9102_v0  ;;  %v9153_v61 = vld [vmem:[#allocation8 + $0xba0] ss:$16 sps:$4 sm:$0xff]  }
 0x2ce   :  { %7325 = vmatprep.subr.bf16.mxu0 %v9110_v20  ;;  %v9158_v0 = vld [vmem:[#allocation8 + $0x984] ss:$16 sps:$4 sm:$0xff]   ;;  %v9159_v20 = vld [vmem:[#allocation8 + $0xb80] ss:$16 sps:$4 sm:$0xff]  }
 0x2cf   :  { %7367 = vmatpush1.bf16.msra.mxu1 %v9105_v9  ;;  %v4033_v26 = vsel %vm3969_vm9, %v3851_v6, %v4001_v8  ;;  %v9161_v49 = vld [vmem:[#allocation8 + $0xb84] ss:$16 sps:$4 sm:$0xff]   ;;  %v9156_v9 = vld [vmem:[#allocation8 + $0x980] ss:$16 sps:$4 sm:$0xff]   ;;  %v3809_v8 = vpop.f32.mrf.mxu0 }
 0x2d0   :  { %7368 = vmatprep.subr.bf16.mxu1 %v9113_v7  ;;  %v10058_v16 = vpack.c.bf16 %v4033_v26, %v4017_v30  ;;  %v9164_v4 = vld [vmem:[#allocation8 + $0x964] ss:$16 sps:$4 sm:$0xff]   ;;  %v9162_v7 = vld [vmem:[#allocation8 + $0x960] ss:$16 sps:$4 sm:$0xff]  }
 0x2d1   :  { %7326 = vmatpush1.bf16.msra.mxu0 %v9108_v22  ;;  %v9167_v6 = vld [vmem:[#allocation8 + $0xb64] ss:$16 sps:$4 sm:$0xff]   ;;  %v9165_v22 = vld [vmem:[#allocation8 + $0xb60] ss:$16 sps:$4 sm:$0xff]  }
 0x2d2   :  { %7327 = vmatprep.subr.bf16.mxu0 %v9116_v13  ;;  %v668_v13 = vrot.slane %v9973_v28, %v635_v14  ;;  %v9173_v30 = vld [vmem:[#allocation8 + $0xb44] ss:$16 sps:$4 sm:$0xff]   ;;  %v9177_v28 = vld [vmem:[#allocation8 + $0xb20] ss:$16 sps:$4 sm:$0xff]  }
 0x2d3   :  { %7369 = vmatpush1.bf16.msra.mxu1 %v9111_v1  ;;  %v9170_v1 = vld [vmem:[#allocation8 + $0x944] ss:$16 sps:$4 sm:$0xff]  }
 0x2d4   :  { %7370 = vmatprep.subr.bf16.mxu1 %v9119_v62  ;;  %v3810_v26 = vadd.f32 %v3809_v8, %v668_v13  ;;  %v9168_v62 = vld [vmem:[#allocation8 + $0x940] ss:$16 sps:$4 sm:$0xff]   ;;  %v9182_v14 = vld [vmem:[#allocation8 + $0x904] ss:$16 sps:$4 sm:$0xff]  }
 0x2d5   :  { %7328 = vmatpush1.bf16.msra.mxu0 %v9114_v17  ;;  %v9171_v17 = vld [vmem:[#allocation8 + $0xb40] ss:$16 sps:$4 sm:$0xff]  }
 0x2d6   :  { %7329 = vmatprep.subr.bf16.mxu0 %v9122_v23  ;;  %v3806_v23 = vadd.f32 %v10053_v52, %v668_v13  ;;  %v9183_v52 = vld [vmem:[#allocation8 + $0xb00] ss:$16 sps:$4 sm:$0xff]   ;;  %v9206_v13 = vld [vmem:[#allocation8 + $0xc84] ss:$16 sps:$4 sm:$0xff]  }
 0x2d7   :  { %7371 = vmatpush1.bf16.msra.mxu1 %v9117_v21  ;;  %v9176_v21 = vld [vmem:[#allocation8 + $0x924] ss:$16 sps:$4 sm:$0xff]  }
 0x2d8   :  { %7372 = vmatprep.subr.bf16.mxu1 %v9125_v25  ;;  %v9179_v25 = vld [vmem:[#allocation8 + $0xb24] ss:$16 sps:$4 sm:$0xff]  }
 0x2d9   :  { %7330 = vmatpush1.bf16.msra.mxu0 %v9120_v27  ;;  %v3852_v27 = vpop.f32.mrf.mxu1 }
 0x2da   :  { %7331 = vmatprep.subr.bf16.mxu0 %v9128_v31  ;;  %v9174_v31 = vld [vmem:[#allocation8 + $0x920] ss:$16 sps:$4 sm:$0xff]  }
 0x2db   :  { %7373 = vmatpush1.bf16.msra.mxu1 %v9123_v37  ;;  %v3853_v37 = vadd.f32 %v3852_v27, %v3810_v26  ;;  %v9212_v27 = vld [vmem:[#allocation8 + $0xc64] ss:$16 sps:$4 sm:$0xff]  }
 0x2dc   :  { %7374 = vmatprep.subr.bf16.mxu1 %v9131_v2  ;;  %v3849_v2 = vadd.f32 %v10056_v56, %v3806_v23  ;;  %v9189_v56 = vld [vmem:[#allocation8 + $0xee0] ss:$16 sps:$4 sm:$0xff]  }
 0x2dd   :  { %7332 = vmatpush1.bf16.msra.mxu0 %v9126_v29  ;;  %v9185_v29 = vld [vmem:[#allocation8 + $0xb04] ss:$16 sps:$4 sm:$0xff]   ;;  %vm3970_vm10 = vcmp.gt.f32.partialorder %v3853_v37, 0.0 }
 0x2de   :  { %7333 = vmatprep.subr.bf16.mxu0 %v9134_v10  ;;  %v9180_v10 = vld [vmem:[#allocation8 + $0x900] ss:$16 sps:$4 sm:$0xff]   ;;  %vm3954_vm11 = vcmp.gt.f32.partialorder %v3849_v2, 0.0 }
 0x2df   :  { %7375 = vmatpush1.bf16.msra.mxu1 %v9129_v32  ;;  %v4002_v32 = vmul.f32 0.01, %v3853_v37 }
 0x2e0   :  { %7376 = vmatprep.subr.bf16.mxu1 %v9137_v50  ;;  %v9188_v50 = vld [vmem:[#allocation8 + $0xce4] ss:$16 sps:$4 sm:$0xff]  }
 0x2e1   :  { %7334 = vmatpush1.bf16.msra.mxu0 %v9132_v35  ;;  %v3986_v35 = vmul.f32 0.01, %v3849_v2 }
 0x2e2   :  { %7335 = vmatprep.subr.bf16.mxu0 %v9140_v41  ;;  %v9186_v41 = vld [vmem:[#allocation8 + $0xce0] ss:$16 sps:$4 sm:$0xff]  }
 0x2e3   :  { %7377 = vmatpush1.bf16.msra.mxu1 %v9135_v38  ;;  %v9191_v38 = vld [vmem:[#allocation8 + $0xee4] ss:$16 sps:$4 sm:$0xff]  }
 0x2e4   :  { %7378 = vmatprep.subr.bf16.mxu1 %v9143_v45  ;;  %v4034_v45 = vsel %vm3970_vm10, %v3853_v37, %v4002_v32  ;;  %v9215_v37 = vld [vmem:[#allocation8 + $0xe64] ss:$16 sps:$4 sm:$0xff]  }
 0x2e5   :  { %7336 = vmatpush2.bf16.msra.mxu0 %v9138_v53  ;;  %v4018_v53 = vsel %vm3954_vm11, %v3849_v2, %v3986_v35  ;;  %v9218_v32 = vld [vmem:[#allocation8 + $0xc44] ss:$16 sps:$4 sm:$0xff]   ;;  %v9219_v35 = vld [vmem:[#allocation8 + $0xe40] ss:$16 sps:$4 sm:$0xff]  }
 0x2e6   :  { %7337 = vmatprep.subr.bf16.mxu0 %v9146_v39 }
 0x2e7   :  { %7379 = vmatpush2.bf16.msra.mxu1 %v9141_v47  ;;  %v10065_v47 = vld [vmem:[#allocation7 + $0x8] sm:$0xff] }
 0x2e8   :  { %7380 = vmatprep.subr.bf16.mxu1 %v9149_v48  ;;  %v676_v39 = vrot.slane %v10065_v47, %v643_v15  ;;  %v9194_v48 = vld [vmem:[#allocation8 + $0xcc4] ss:$16 sps:$4 sm:$0xff]  }
 0x2e9   :  { %7338 = vmatpush2.bf16.msra.mxu0 %v9144_v42  ;;  %v9197_v42 = vld [vmem:[#allocation8 + $0xec4] ss:$16 sps:$4 sm:$0xff]  }
 0x2ea   :  { %7339 = vmatprep.subr.bf16.mxu0 %v9152_v5  ;;  %v10073_v5 = vpack.c.bf16 %v4034_v45, %v4018_v53  ;;  %v9200_v15 = vld [vmem:[#allocation8 + $0xca4] ss:$16 sps:$4 sm:$0xff]   ;;  %v9222_v45 = vld [vmem:[#allocation8 + $0xc20] ss:$16 sps:$4 sm:$0xff]  }
 0x2eb   :  { %7381 = vmatpush2.bf16.msra.mxu1 %v9147_v54  ;;  %v9230_v53 = vld [vmem:[#allocation8 + $0xc04] ss:$16 sps:$4 sm:$0xff]  }
 0x2ec   :  { %7382 = vmatprep.subr.bf16.mxu1 %v9155_v59 }
 0x2ed   :  { %7340 = vmatpush2.bf16.msra.mxu0 %v9150_v63  ;;  %v9192_v63 = vld [vmem:[#allocation8 + $0xcc0] ss:$16 sps:$4 sm:$0xff]  }
 0x2ee   :  { %7341 = vmatprep.subr.bf16.mxu0 %v9158_v0  ;;  %v9195_v0 = vld [vmem:[#allocation8 + $0xec0] ss:$16 sps:$4 sm:$0xff]  }
 0x2ef   :  { %7383 = vmatpush2.bf16.msra.mxu1 %v9153_v61 }
 0x2f0   :  { %7384 = vmatprep.subr.bf16.mxu1 %v9161_v49 }
 0x2f1   :  { %7342 = vmatpush2.bf16.msra.mxu0 %v9156_v9 }
 0x2f2   :  { %7343 = vmatprep.subr.bf16.mxu0 %v9164_v4 }
 0x2f3   :  { %7385 = vmatpush2.bf16.msra.mxu1 %v9159_v20  ;;  %v9203_v20 = vld [vmem:[#allocation8 + $0xea4] ss:$16 sps:$4 sm:$0xff]  }
 0x2f4   :  { %7386 = vmatprep.subr.bf16.mxu1 %v9167_v6 }
 0x2f5   :  { %7344 = vmatpush2.bf16.msra.mxu0 %v9162_v7  ;;  %v9198_v7 = vld [vmem:[#allocation8 + $0xca0] ss:$16 sps:$4 sm:$0xff]  }
 0x2f6   :  { %7345 = vmatprep.subr.bf16.mxu0 %v9170_v1  ;;  %v9201_v1 = vld [vmem:[#allocation8 + $0xea0] ss:$16 sps:$4 sm:$0xff]  }
 0x2f7   :  { %7387 = vmatpush2.bf16.msra.mxu1 %v9165_v22 }
 0x2f8   :  { %7388 = vmatprep.subr.bf16.mxu1 %v9173_v30  ;;  %v9209_v30 = vld [vmem:[#allocation8 + $0xe84] ss:$16 sps:$4 sm:$0xff]  }
 0x2f9   :  { %7346 = vmatpush2.bf16.msra.mxu0 %v9168_v62 }
 0x2fa   :  { %7347 = vmatprep.subr.bf16.mxu0 %v9176_v21 }
 0x2fb   :  { %7389 = vmatpush2.bf16.msra.mxu1 %v9171_v17  ;;  %v9204_v17 = vld [vmem:[#allocation8 + $0xc80] ss:$16 sps:$4 sm:$0xff]  }
 0x2fc   :  { %7390 = vmatprep.subr.bf16.mxu1 %v9179_v25  ;;  %v9207_v25 = vld [vmem:[#allocation8 + $0xe80] ss:$16 sps:$4 sm:$0xff]  }
 0x2fd   :  { %7348 = vmatpush2.bf16.msra.mxu0 %v9174_v31 }
 0x2fe   :  { %7349 = vmatprep.subr.bf16.mxu0 %v9182_v14  ;;  %v9213_v14 = vld [vmem:[#allocation8 + $0xe60] ss:$16 sps:$4 sm:$0xff]  }
 0x2ff   :  { %7391 = vmatpush2.bf16.msra.mxu1 %v9177_v28  ;;  %v9210_v28 = vld [vmem:[#allocation8 + $0xc60] ss:$16 sps:$4 sm:$0xff]  }
 0x300   :  { %7392 = vmatprep.subr.bf16.mxu1 %v9185_v29 }
 0x301   :  { %7350 = vmatpush2.bf16.msra.mxu0 %v9180_v10 }
 0x302   :  { %7405 = vmatprep.subr.bf16.mxu0 %v9188_v50  ;;  %v9216_v50 = vld [vmem:[#allocation8 + $0xc40] ss:$16 sps:$4 sm:$0xff]  }
 0x303   :  { %7393 = vmatpush2.bf16.msra.mxu1 %v9183_v52  ;;  %v9221_v52 = vld [vmem:[#allocation8 + $0xe44] ss:$16 sps:$4 sm:$0xff]  }
 0x304   :  { %7448 = vmatprep.subr.bf16.mxu1 %v9191_v38  ;;  %v10070_v54 = vpop.f32.mrf.mxu0  ;;  %7352 = vmatmul.mubr.bf16.vlgmr.msra.gmra.mxu0 %v9995_v46  ;;  %v9224_v38 = vld [vmem:[#allocation8 + $0xc24] ss:$16 sps:$4 sm:$0xff]  }
 0x305   :  { %7406 = vmatpush1.bf16.msra.mxu0 %v9186_v41  ;;  %7437 = vmatprep.mubr.bf16.mxu0 %v10073_v5  ;;  %v9227_v41 = vld [vmem:[#allocation8 + $0xe24] ss:$16 sps:$4 sm:$0xff]  }
 0x306   :  { %v10075_v59 = vpop.f32.mrf.mxu1  ;;  %7395 = vmatmul.mubr.bf16.vlgmr.msra.gmra.mxu1 %v10031_v55  ;;  %v3891_v61 = vpop.f32.mrf.mxu0  ;;  %7407 = vmatprep.subr.bf16.mxu0 %v9194_v48  ;;  %v9228_v48 = vld [vmem:[#allocation8 + $0xc00] ss:$16 sps:$4 sm:$0xff]  }
 0x307   :  { %7449 = vmatpush1.bf16.msra.mxu1 %v9189_v56  ;;  %v3892_v49 = vadd.f32 %v3891_v61, %v676_v39  ;;  %v9225_v56 = vld [vmem:[#allocation8 + $0xe20] ss:$16 sps:$4 sm:$0xff]   ;;  %v9239_v61 = vld [vmem:[#allocation8 + $0xfe4] ss:$16 sps:$4 sm:$0xff]  }
 0x308   :  { %v3934_v9 = vpop.f32.mrf.mxu1  ;;  %7450 = vmatprep.subr.bf16.mxu1 %v9197_v42  ;;  %v10079_v4 = vpop.f32.mrf.mxu0  ;;  %v9231_v42 = vld [vmem:[#allocation8 + $0xe00] ss:$16 sps:$4 sm:$0xff]  }
 0x309   :  { %7408 = vmatpush1.bf16.msra.mxu0 %v9192_v63  ;;  %v3935_v8 = vadd.f32 %v3934_v9, %v3892_v49  ;;  %v9236_v63 = vld [vmem:[#allocation8 + $0xde4] ss:$16 sps:$4 sm:$0xff]  }
 0x30a   :  { %v10081_v6 = vpop.f32.mrf.mxu1  ;;  %v3895_v22 = vpop.f32.mrf.mxu0  ;;  %7409 = vmatprep.subr.bf16.mxu0 %v9200_v15  ;;  %v9237_v15 = vld [vmem:[#allocation8 + $0xfe0] ss:$16 sps:$4 sm:$0xff]   ;;  %v9242_v49 = vld [vmem:[#allocation8 + $0xdc4] ss:$16 sps:$4 sm:$0xff]  }
 0x30b   :  { %7451 = vmatpush1.bf16.msra.mxu1 %v9195_v0  ;;  %v3896_v26 = vadd.f32 %v3895_v22, %v676_v39  ;;  %v3988_v21 = vmul.f32 0.01, %v3935_v8  ;;  %vm3956_vm12 = vcmp.gt.f32.partialorder %v3935_v8, 0.0  ;;  %v9233_v39 = vld [vmem:[#allocation8 + $0xe04] ss:$16 sps:$4 sm:$0xff]  }
 0x30c   :  { %7452 = vmatprep.subr.bf16.mxu1 %v9203_v20  ;;  %v3938_v62 = vpop.f32.mrf.mxu1  ;;  %v9234_v0 = vld [vmem:[#allocation8 + $0xde0] ss:$16 sps:$4 sm:$0xff]   ;;  %v9245_v9 = vld [vmem:[#allocation8 + $0xfc4] ss:$16 sps:$4 sm:$0xff]  }
 0x30d   :  { %7410 = vmatpush1.bf16.msra.mxu0 %v9198_v7  ;;  %v3939_v23 = vadd.f32 %v3938_v62, %v3896_v26  ;;  %v4020_v2 = vsel %vm3956_vm12, %v3935_v8, %v3988_v21  ;;  %v9240_v20 = vld [vmem:[#allocation8 + $0xdc0] ss:$16 sps:$4 sm:$0xff]   ;;  %v9248_v8 = vld [vmem:[#allocation8 + $0xda4] ss:$16 sps:$4 sm:$0xff]  }
 0x30e   :  { %7411 = vmatprep.subr.bf16.mxu0 %v9206_v13  ;;  %v9243_v7 = vld [vmem:[#allocation8 + $0xfc0] ss:$16 sps:$4 sm:$0xff]   ;;  %v9251_v22 = vld [vmem:[#allocation8 + $0xfa4] ss:$16 sps:$4 sm:$0xff]  }
 0x30f   :  { %7453 = vmatpush1.bf16.msra.mxu1 %v9201_v1  ;;  %vm3972_vm13 = vcmp.gt.f32.partialorder %v3939_v23, 0.0  ;;  %v4004_v31 = vmul.f32 0.01, %v3939_v23  ;;  %v9246_v1 = vld [vmem:[#allocation8 + $0xda0] ss:$16 sps:$4 sm:$0xff]  }
 0x310   :  { %7454 = vmatprep.subr.bf16.mxu1 %v9209_v30  ;;  %v9249_v13 = vld [vmem:[#allocation8 + $0xfa0] ss:$16 sps:$4 sm:$0xff]   ;;  %v9254_v30 = vld [vmem:[#allocation8 + $0xd84] ss:$16 sps:$4 sm:$0xff]  }
 0x311   :  { %7412 = vmatpush1.bf16.msra.mxu0 %v9204_v17  ;;  %v4036_v29 = vsel %vm3972_vm13, %v3939_v23, %v4004_v31  ;;  %v9257_v26 = vld [vmem:[#allocation8 + $0xf84] ss:$16 sps:$4 sm:$0xff]   ;;  %v9252_v62 = vld [vmem:[#allocation8 + $0xd80] ss:$16 sps:$4 sm:$0xff]  }
 0x312   :  { %7413 = vmatprep.subr.bf16.mxu0 %v9212_v27  ;;  %v10083_v10 = vpack.c.bf16 %v4036_v29, %v4020_v2  ;;  %v9255_v17 = vld [vmem:[#allocation8 + $0xf80] ss:$16 sps:$4 sm:$0xff]   ;;  %v9260_v21 = vld [vmem:[#allocation8 + $0xd64] ss:$16 sps:$4 sm:$0xff]   ;;  %v672_v27 = vrot.slane %v10065_v47, %v639_v36 }
 0x313   :  { %7455 = vmatpush1.bf16.msra.mxu1 %v9207_v25  ;;  %v9263_v23 = vld [vmem:[#allocation8 + $0xf64] ss:$16 sps:$4 sm:$0xff]   ;;  %v9258_v25 = vld [vmem:[#allocation8 + $0xd60] ss:$16 sps:$4 sm:$0xff]  }
 0x314   :  { %7456 = vmatprep.subr.bf16.mxu1 %v9215_v37  ;;  %7480 = vmatprep.mubr.bf16.mxu1 %v10083_v10  ;;  %v9261_v37 = vld [vmem:[#allocation8 + $0xf60] ss:$16 sps:$4 sm:$0xff]   ;;  %v9266_v31 = vld [vmem:[#allocation8 + $0xd44] ss:$16 sps:$4 sm:$0xff]   ;;  %v3890_v29 = vadd.f32 %v10070_v54, %v672_v27 }
 0x315   :  { %7414 = vmatpush1.bf16.msra.mxu0 %v9210_v28  ;;  %v9269_v28 = vld [vmem:[#allocation8 + $0xf44] ss:$16 sps:$4 sm:$0xff]   ;;  %v9264_v2 = vld [vmem:[#allocation8 + $0xd40] ss:$16 sps:$4 sm:$0xff]  }
 0x316   :  { %7415 = vmatprep.subr.bf16.mxu0 %v9218_v32  ;;  %v9267_v32 = vld [vmem:[#allocation8 + $0xf40] ss:$16 sps:$4 sm:$0xff]  }
 0x317   :  { %7457 = vmatpush1.bf16.msra.mxu1 %v9213_v14  ;;  %v3894_v14 = vadd.f32 %v10079_v4, %v672_v27  ;;  %v9270_v47 = vld [vmem:[#allocation8 + $0xd20] ss:$16 sps:$4 sm:$0xff]   ;;  %v9278_v4 = vld [vmem:[#allocation8 + $0xd04] ss:$16 sps:$4 sm:$0xff]   ;;  %v9320_v27 = vld [vmem:[#allocation8 + $0x2c] ss:$16 sps:$4 sm:$0xff]  }
 0x318   :  { %7458 = vmatprep.subr.bf16.mxu1 %v9221_v52  ;;  %v9272_v52 = vld [vmem:[#allocation8 + $0xd24] ss:$16 sps:$4 sm:$0xff]   ;;  %v9276_v54 = vld [vmem:[#allocation8 + $0xd00] ss:$16 sps:$4 sm:$0xff]  }
 0x319   :  { %7416 = vmatpush1.bf16.msra.mxu0 %v9216_v50  ;;  %v3937_v36 = vadd.f32 %v10081_v6, %v3894_v14  ;;  %v3933_v50 = vadd.f32 %v10075_v59, %v3890_v29  ;;  %v9287_v6 = vld [vmem:[#allocation8 + $0x2ec] ss:$16 sps:$4 sm:$0xff]   ;;  %v9282_v59 = vld [vmem:[#allocation8 + $0xe8] ss:$16 sps:$4 sm:$0xff]  }
 0x31a   :  { %7417 = vmatprep.subr.bf16.mxu0 %v9224_v38  ;;  %v9281_v38 = vld [vmem:[#allocation8 + $0xf04] ss:$16 sps:$4 sm:$0xff]   ;;  %v9326_v14 = vld [vmem:[#allocation8 + $0xc] ss:$16 sps:$4 sm:$0xff]   ;;  %v9324_v29 = vld [vmem:[#allocation8 + $0x8] ss:$16 sps:$4 sm:$0xff]  }
 0x31b   :  { %7459 = vmatpush1.bf16.msra.mxu1 %v9219_v35  ;;  %v9273_v35 = vld [vmem:[#allocation8 + $0xf20] ss:$16 sps:$4 sm:$0xff]   ;;  %vm3971_vm14 = vcmp.gt.f32.partialorder %v3937_v36, 0.0  ;;  %vm3955_vm15 = vcmp.gt.f32.partialorder %v3933_v50, 0.0 }
 0x31c   :  { %7460 = vmatprep.subr.bf16.mxu1 %v9227_v41  ;;  %v4003_v41 = vmul.f32 0.01, %v3937_v36 }
 0x31d   :  { %7418 = vmatpush1.bf16.msra.mxu0 %v9222_v45  ;;  %v3987_v45 = vmul.f32 0.01, %v3933_v50 }
 0x31e   :  { %7419 = vmatprep.subr.bf16.mxu0 %v9230_v53  ;;  %v9284_v53 = vld [vmem:[#allocation8 + $0xec] ss:$16 sps:$4 sm:$0xff]  }
 0x31f   :  { %7461 = vmatpush1.bf16.msra.mxu1 %v9225_v56  ;;  %v9279_v56 = vld [vmem:[#allocation8 + $0xf00] ss:$16 sps:$4 sm:$0xff]  }
 0x320   :  { %7462 = vmatprep.subr.bf16.mxu1 %v9233_v39  ;;  %v4035_v39 = vsel %vm3971_vm14, %v3937_v36, %v4003_v41  ;;  %v9330_v36 = vld [vmem:[#allocation8 + $0x1e8] ss:$16 sps:$4 sm:$0xff]   ;;  %v9344_v41 = vld [vmem:[#allocation8 + $0x1ac] ss:$16 sps:$4 sm:$0xff]  }
 0x321   :  { %7420 = vmatpush1.bf16.msra.mxu0 %v9228_v48  ;;  %v4019_v48 = vsel %vm3955_vm15, %v3933_v50, %v3987_v45  ;;  %v9338_v50 = vld [vmem:[#allocation8 + $0x1cc] ss:$16 sps:$4 sm:$0xff]   ;;  %v9342_v45 = vld [vmem:[#allocation8 + $0x1a8] ss:$16 sps:$4 sm:$0xff]  }
 0x322   :  { %7421 = vmatprep.subr.bf16.mxu0 %v9236_v63  ;;  %v10093_v63 = vpack.c.bf16 %v4035_v39, %v4019_v48  ;;  %v9348_v39 = vld [vmem:[#allocation8 + $0x188] ss:$16 sps:$4 sm:$0xff]   ;;  %v9356_v48 = vld [vmem:[#allocation8 + $0x16c] ss:$16 sps:$4 sm:$0xff]  }
 0x323   :  { %7463 = vmatpush1.bf16.msra.mxu1 %v9231_v42  ;;  %v9285_v42 = vld [vmem:[#allocation8 + $0x2e8] ss:$16 sps:$4 sm:$0xff]  }
 0x324   :  { %7464 = vmatprep.subr.bf16.mxu1 %v9239_v61  ;;  %v9290_v61 = vld [vmem:[#allocation8 + $0xcc] ss:$16 sps:$4 sm:$0xff]  }
 0x325   :  { %7422 = vmatpush2.bf16.msra.mxu0 %v9234_v0  ;;  %v9293_v0 = vld [vmem:[#allocation8 + $0x2cc] ss:$16 sps:$4 sm:$0xff]  }
 0x326   :  { %7423 = vmatprep.subr.bf16.mxu0 %v9242_v49  ;;  %v9291_v49 = vld [vmem:[#allocation8 + $0x2c8] ss:$16 sps:$4 sm:$0xff]  }
 0x327   :  { %7465 = vmatpush2.bf16.msra.mxu1 %v9237_v15  ;;  %v9288_v15 = vld [vmem:[#allocation8 + $0xc8] ss:$16 sps:$4 sm:$0xff]  }
 0x328   :  { %7466 = vmatprep.subr.bf16.mxu1 %v9245_v9  ;;  %v9296_v9 = vld [vmem:[#allocation8 + $0xac] ss:$16 sps:$4 sm:$0xff]  }
 0x329   :  { %7424 = vmatpush2.bf16.msra.mxu0 %v9240_v20  ;;  %v9299_v20 = vld [vmem:[#allocation8 + $0x2ac] ss:$16 sps:$4 sm:$0xff]  }
 0x32a   :  { %7425 = vmatprep.subr.bf16.mxu0 %v9248_v8  ;;  %v9297_v8 = vld [vmem:[#allocation8 + $0x2a8] ss:$16 sps:$4 sm:$0xff]  }
 0x32b   :  { %7467 = vmatpush2.bf16.msra.mxu1 %v9243_v7  ;;  %v9294_v7 = vld [vmem:[#allocation8 + $0xa8] ss:$16 sps:$4 sm:$0xff]  }
 0x32c   :  { %7468 = vmatprep.subr.bf16.mxu1 %v9251_v22  ;;  %v9302_v22 = vld [vmem:[#allocation8 + $0x8c] ss:$16 sps:$4 sm:$0xff]  }
 0x32d   :  { %7426 = vmatpush2.bf16.msra.mxu0 %v9246_v1  ;;  %v9305_v1 = vld [vmem:[#allocation8 + $0x28c] ss:$16 sps:$4 sm:$0xff]  }
 0x32e   :  { %7427 = vmatprep.subr.bf16.mxu0 %v9254_v30  ;;  %v9308_v30 = vld [vmem:[#allocation8 + $0x6c] ss:$16 sps:$4 sm:$0xff]  }
 0x32f   :  { %7469 = vmatpush2.bf16.msra.mxu1 %v9249_v13  ;;  %v9300_v13 = vld [vmem:[#allocation8 + $0x88] ss:$16 sps:$4 sm:$0xff]  }
 0x330   :  { %7470 = vmatprep.subr.bf16.mxu1 %v9257_v26  ;;  %v9311_v26 = vld [vmem:[#allocation8 + $0x26c] ss:$16 sps:$4 sm:$0xff]  }
 0x331   :  { %7428 = vmatpush2.bf16.msra.mxu0 %v9252_v62  ;;  %v9309_v62 = vld [vmem:[#allocation8 + $0x268] ss:$16 sps:$4 sm:$0xff]  }
 0x332   :  { %7429 = vmatprep.subr.bf16.mxu0 %v9260_v21  ;;  %v9317_v21 = vld [vmem:[#allocation8 + $0x24c] ss:$16 sps:$4 sm:$0xff]  }
 0x333   :  { %7471 = vmatpush2.bf16.msra.mxu1 %v9255_v17  ;;  %v9314_v17 = vld [vmem:[#allocation8 + $0x4c] ss:$16 sps:$4 sm:$0xff]  }
 0x334   :  { %7472 = vmatprep.subr.bf16.mxu1 %v9263_v23  ;;  %v9312_v23 = vld [vmem:[#allocation8 + $0x48] ss:$16 sps:$4 sm:$0xff]  }
 0x335   :  { %7430 = vmatpush2.bf16.msra.mxu0 %v9258_v25  ;;  %v9315_v25 = vld [vmem:[#allocation8 + $0x248] ss:$16 sps:$4 sm:$0xff]  }
 0x336   :  { %7431 = vmatprep.subr.bf16.mxu0 %v9266_v31  ;;  %v9318_v31 = vld [vmem:[#allocation8 + $0x28] ss:$16 sps:$4 sm:$0xff]  }
 0x337   :  { %7473 = vmatpush2.bf16.msra.mxu1 %v9261_v37  ;;  %v9323_v37 = vld [vmem:[#allocation8 + $0x22c] ss:$16 sps:$4 sm:$0xff]  }
 0x338   :  { %7474 = vmatprep.subr.bf16.mxu1 %v9269_v28  ;;  %v9321_v28 = vld [vmem:[#allocation8 + $0x228] ss:$16 sps:$4 sm:$0xff]  }
 0x339   :  { %7432 = vmatpush2.bf16.msra.mxu0 %v9264_v2  ;;  %v9329_v2 = vld [vmem:[#allocation8 + $0x20c] ss:$16 sps:$4 sm:$0xff]  }
 0x33a   :  { %7433 = vmatprep.subr.bf16.mxu0 %v9272_v52  ;;  %v9332_v52 = vld [vmem:[#allocation8 + $0x1ec] ss:$16 sps:$4 sm:$0xff]  }
 0x33b   :  { %7475 = vmatpush2.bf16.msra.mxu1 %v9267_v32  ;;  %v9327_v32 = vld [vmem:[#allocation8 + $0x208] ss:$16 sps:$4 sm:$0xff]  }
 0x33c   :  { %7476 = vmatprep.subr.bf16.mxu1 %v9275_v34  ;;  %v9335_v34 = vld [vmem:[#allocation8 + $0x3ec] ss:$16 sps:$4 sm:$0xff]  }
 0x33d   :  { %7434 = vmatpush2.bf16.msra.mxu0 %v9270_v47  ;;  %v9333_v47 = vld [vmem:[#allocation8 + $0x3e8] ss:$16 sps:$4 sm:$0xff]  }
 0x33e   :  { %7435 = vmatprep.subr.bf16.mxu0 %v9278_v4  ;;  %v9336_v4 = vld [vmem:[#allocation8 + $0x1c8] ss:$16 sps:$4 sm:$0xff]  }
 0x33f   :  { %7477 = vmatpush2.bf16.msra.mxu1 %v9273_v35  ;;  %v9341_v35 = vld [vmem:[#allocation8 + $0x3cc] ss:$16 sps:$4 sm:$0xff]  }
 0x340   :  { %7478 = vmatprep.subr.bf16.mxu1 %v9281_v38  ;;  %v9339_v38 = vld [vmem:[#allocation8 + $0x3c8] ss:$16 sps:$4 sm:$0xff]  }
 0x341   :  { %7436 = vmatpush2.bf16.msra.mxu0 %v9276_v54  ;;  %v9347_v54 = vld [vmem:[#allocation8 + $0x3ac] ss:$16 sps:$4 sm:$0xff]  }
 0x342   :  { %7491 = vmatprep.subr.bf16.mxu0 %v9284_v53  ;;  %v9350_v53 = vld [vmem:[#allocation8 + $0x18c] ss:$16 sps:$4 sm:$0xff]  }
 0x343   :  { %7479 = vmatpush2.bf16.msra.mxu1 %v9279_v56  ;;  %v9345_v56 = vld [vmem:[#allocation8 + $0x3a8] ss:$16 sps:$4 sm:$0xff]  }
 0x344   :  { %7534 = vmatprep.subr.bf16.mxu1 %v9287_v6  ;;  %7438 = vmatmul.mubr.bf16.vlgmr.msra.gmra.mxu0 %v10058_v16  ;;  %v9353_v6 = vld [vmem:[#allocation8 + $0x38c] ss:$16 sps:$4 sm:$0xff]  }
 0x345   :  { %7492 = vmatpush1.bf16.msra.mxu0 %v9282_v59  ;;  %7523 = vmatprep.mubr.bf16.mxu0 %v9983_v51  ;;  %v9303_v51 = vld [vmem:[#allocation8 + $0x288] ss:$16 sps:$4 sm:$0xff]  }
 0x346   :  { %7481 = vmatmul.mubr.bf16.vlgmr.msra.gmra.mxu1 %v10093_v63  ;;  %7493 = vmatprep.subr.bf16.mxu0 %v9290_v61  ;;  %v9351_v59 = vld [vmem:[#allocation8 + $0x388] ss:$16 sps:$4 sm:$0xff]  }
 0x347   :  { %7535 = vmatpush1.bf16.msra.mxu1 %v9285_v42  ;;  %7566 = vmatprep.mubr.bf16.mxu1 %v9987_v60  ;;  %v9306_v60 = vld [vmem:[#allocation8 + $0x68] ss:$16 sps:$4 sm:$0xff]   ;;  %v9359_v42 = vld [vmem:[#allocation8 + $0x36c] ss:$16 sps:$4 sm:$0xff]  }
 0x348   :  { %7536 = vmatprep.subr.bf16.mxu1 %v9293_v0  ;;  %v9354_v61 = vld [vmem:[#allocation8 + $0x168] ss:$16 sps:$4 sm:$0xff]  }
 0x349   :  { %7494 = vmatpush1.bf16.msra.mxu0 %v9288_v15  ;;  %v9357_v0 = vld [vmem:[#allocation8 + $0x368] ss:$16 sps:$4 sm:$0xff]   ;;  %v9362_v15 = vld [vmem:[#allocation8 + $0x14c] ss:$16 sps:$4 sm:$0xff]  }
 0x34a   :  { %7495 = vmatprep.subr.bf16.mxu0 %v9296_v9  ;;  %v9360_v9 = vld [vmem:[#allocation8 + $0x148] ss:$16 sps:$4 sm:$0xff]  }
 0x34b   :  { %7537 = vmatpush1.bf16.msra.mxu1 %v9291_v49  ;;  %v9365_v49 = vld [vmem:[#allocation8 + $0x34c] ss:$16 sps:$4 sm:$0xff]  }
 0x34c   :  { %7538 = vmatprep.subr.bf16.mxu1 %v9299_v20  ;;  %v9363_v20 = vld [vmem:[#allocation8 + $0x348] ss:$16 sps:$4 sm:$0xff]  }
 0x34d   :  { %7496 = vmatpush1.bf16.msra.mxu0 %v9294_v7  ;;  %v9368_v7 = vld [vmem:[#allocation8 + $0x12c] ss:$16 sps:$4 sm:$0xff]  }
 0x34e   :  { %7497 = vmatprep.subr.bf16.mxu0 %v9302_v22  ;;  %v9366_v22 = vld [vmem:[#allocation8 + $0x128] ss:$16 sps:$4 sm:$0xff]  }
 0x34f   :  { %7539 = vmatpush1.bf16.msra.mxu1 %v9297_v8  ;;  %v9371_v8 = vld [vmem:[#allocation8 + $0x32c] ss:$16 sps:$4 sm:$0xff]  }
 0x350   :  { %7540 = vmatprep.subr.bf16.mxu1 %v9305_v1  ;;  %v9369_v1 = vld [vmem:[#allocation8 + $0x328] ss:$16 sps:$4 sm:$0xff]  }
 0x351   :  { %7498 = vmatpush1.bf16.msra.mxu0 %v9300_v13  ;;  %v9374_v13 = vld [vmem:[#allocation8 + $0x10c] ss:$16 sps:$4 sm:$0xff]  }
 0x352   :  { %7499 = vmatprep.subr.bf16.mxu0 %v9308_v30  ;;  %v9372_v30 = vld [vmem:[#allocation8 + $0x108] ss:$16 sps:$4 sm:$0xff]  }
 0x353   :  { %7541 = vmatpush1.bf16.msra.mxu1 %v9303_v51  ;;  %v9377_v51 = vld [vmem:[#allocation8 + $0x30c] ss:$16 sps:$4 sm:$0xff]  }
 0x354   :  { %7542 = vmatprep.subr.bf16.mxu1 %v9311_v26  ;;  %v9375_v26 = vld [vmem:[#allocation8 + $0x308] ss:$16 sps:$4 sm:$0xff]  }
 0x355   :  { %7500 = vmatpush1.bf16.msra.mxu0 %v9306_v60  ;;  %v9380_v60 = vld [vmem:[#allocation8 + $0x4ec] ss:$16 sps:$4 sm:$0xff]  }
 0x356   :  { %7501 = vmatprep.subr.bf16.mxu0 %v9314_v17  ;;  %v9378_v17 = vld [vmem:[#allocation8 + $0x4e8] ss:$16 sps:$4 sm:$0xff]  }
 0x357   :  { %7543 = vmatpush1.bf16.msra.mxu1 %v9309_v62  ;;  %v9383_v62 = vld [vmem:[#allocation8 + $0x6ec] ss:$16 sps:$4 sm:$0xff]  }
 0x358   :  { %7544 = vmatprep.subr.bf16.mxu1 %v9317_v21  ;;  %v9381_v21 = vld [vmem:[#allocation8 + $0x6e8] ss:$16 sps:$4 sm:$0xff]  }
 0x359   :  { %7502 = vmatpush1.bf16.msra.mxu0 %v9312_v23  ;;  %v9386_v23 = vld [vmem:[#allocation8 + $0x4cc] ss:$16 sps:$4 sm:$0xff]  }
 0x35a   :  { %7503 = vmatprep.subr.bf16.mxu0 %v9320_v27  ;;  %v9384_v27 = vld [vmem:[#allocation8 + $0x4c8] ss:$16 sps:$4 sm:$0xff]  }
 0x35b   :  { %7545 = vmatpush1.bf16.msra.mxu1 %v9315_v25  ;;  %v9389_v25 = vld [vmem:[#allocation8 + $0x6cc] ss:$16 sps:$4 sm:$0xff]  }
 0x35c   :  { %7546 = vmatprep.subr.bf16.mxu1 %v9323_v37  ;;  %v9387_v37 = vld [vmem:[#allocation8 + $0x6c8] ss:$16 sps:$4 sm:$0xff]  }
 0x35d   :  { %7504 = vmatpush1.bf16.msra.mxu0 %v9318_v31  ;;  %v9392_v31 = vld [vmem:[#allocation8 + $0x4ac] ss:$16 sps:$4 sm:$0xff]  }
 0x35e   :  { %7505 = vmatprep.subr.bf16.mxu0 %v9326_v14  ;;  %v9390_v14 = vld [vmem:[#allocation8 + $0x4a8] ss:$16 sps:$4 sm:$0xff]  }
 0x35f   :  { %7547 = vmatpush1.bf16.msra.mxu1 %v9321_v28  ;;  %v9395_v28 = vld [vmem:[#allocation8 + $0x6ac] ss:$16 sps:$4 sm:$0xff]  }
 0x360   :  { %7548 = vmatprep.subr.bf16.mxu1 %v9329_v2  ;;  %v9398_v2 = vld [vmem:[#allocation8 + $0x48c] ss:$16 sps:$4 sm:$0xff]  }
 0x361   :  { %7506 = vmatpush1.bf16.msra.mxu0 %v9324_v29  ;;  %v9396_v29 = vld [vmem:[#allocation8 + $0x488] ss:$16 sps:$4 sm:$0xff]  }
 0x362   :  { %7507 = vmatprep.subr.bf16.mxu0 %v9332_v52  ;;  %v9407_v52 = vld [vmem:[#allocation8 + $0x66c] ss:$16 sps:$4 sm:$0xff]  }
 0x363   :  { %7549 = vmatpush1.bf16.msra.mxu1 %v9327_v32  ;;  %v9404_v32 = vld [vmem:[#allocation8 + $0x46c] ss:$16 sps:$4 sm:$0xff]  }
 0x364   :  { %7550 = vmatprep.subr.bf16.mxu1 %v9335_v34  ;;  %v9405_v34 = vld [vmem:[#allocation8 + $0x668] ss:$16 sps:$4 sm:$0xff]  }
 0x365   :  { %7508 = vmatpush2.bf16.msra.mxu0 %v9330_v36  ;;  %v9410_v36 = vld [vmem:[#allocation8 + $0x44c] ss:$16 sps:$4 sm:$0xff]  }
 0x366   :  { %7509 = vmatprep.subr.bf16.mxu0 %v9338_v50  ;;  %v9408_v50 = vld [vmem:[#allocation8 + $0x448] ss:$16 sps:$4 sm:$0xff]  }
 0x367   :  { %7551 = vmatpush2.bf16.msra.mxu1 %v9333_v47  ;;  %v9413_v47 = vld [vmem:[#allocation8 + $0x64c] ss:$16 sps:$4 sm:$0xff]  }
 0x368   :  { %7552 = vmatprep.subr.bf16.mxu1 %v9341_v35  ;;  %v9411_v35 = vld [vmem:[#allocation8 + $0x648] ss:$16 sps:$4 sm:$0xff]  }
 0x369   :  { %7510 = vmatpush2.bf16.msra.mxu0 %v9336_v4  ;;  %v9416_v4 = vld [vmem:[#allocation8 + $0x42c] ss:$16 sps:$4 sm:$0xff]  }
 0x36a   :  { %7511 = vmatprep.subr.bf16.mxu0 %v9344_v41  ;;  %v9414_v41 = vld [vmem:[#allocation8 + $0x428] ss:$16 sps:$4 sm:$0xff]  }
 0x36b   :  { %7553 = vmatpush2.bf16.msra.mxu1 %v9339_v38  ;;  %v9419_v38 = vld [vmem:[#allocation8 + $0x62c] ss:$16 sps:$4 sm:$0xff]  }
 0x36c   :  { %7554 = vmatprep.subr.bf16.mxu1 %v9347_v54  ;;  %v9417_v54 = vld [vmem:[#allocation8 + $0x628] ss:$16 sps:$4 sm:$0xff]  }
 0x36d   :  { %7512 = vmatpush2.bf16.msra.mxu0 %v9342_v45  ;;  %v9422_v45 = vld [vmem:[#allocation8 + $0x40c] ss:$16 sps:$4 sm:$0xff]  }
 0x36e   :  { %7513 = vmatprep.subr.bf16.mxu0 %v9350_v53  ;;  %v9420_v53 = vld [vmem:[#allocation8 + $0x408] ss:$16 sps:$4 sm:$0xff]  }
 0x36f   :  { %7555 = vmatpush2.bf16.msra.mxu1 %v9345_v56  ;;  %v9425_v56 = vld [vmem:[#allocation8 + $0x60c] ss:$16 sps:$4 sm:$0xff]  }
 0x370   :  { %7556 = vmatprep.subr.bf16.mxu1 %v9353_v6  ;;  %v9423_v6 = vld [vmem:[#allocation8 + $0x608] ss:$16 sps:$4 sm:$0xff]  }
 0x371   :  { %7514 = vmatpush2.bf16.msra.mxu0 %v9348_v39  ;;  %v9428_v39 = vld [vmem:[#allocation8 + $0x5ec] ss:$16 sps:$4 sm:$0xff]  }
 0x372   :  { %7515 = vmatprep.subr.bf16.mxu0 %v9356_v48  ;;  %v9426_v48 = vld [vmem:[#allocation8 + $0x5e8] ss:$16 sps:$4 sm:$0xff]  }
 0x373   :  { %7557 = vmatpush2.bf16.msra.mxu1 %v9351_v59  ;;  %v9431_v59 = vld [vmem:[#allocation8 + $0x7ec] ss:$16 sps:$4 sm:$0xff]  }
 0x374   :  { %7558 = vmatprep.subr.bf16.mxu1 %v9359_v42  ;;  %v9429_v42 = vld [vmem:[#allocation8 + $0x7e8] ss:$16 sps:$4 sm:$0xff]  }
 0x375   :  { %7516 = vmatpush2.bf16.msra.mxu0 %v9354_v61  ;;  %v9434_v61 = vld [vmem:[#allocation8 + $0x5cc] ss:$16 sps:$4 sm:$0xff]  }
 0x376   :  { %7517 = vmatprep.subr.bf16.mxu0 %v9362_v15  ;;  %v9432_v15 = vld [vmem:[#allocation8 + $0x5c8] ss:$16 sps:$4 sm:$0xff]  }
 0x377   :  { %7559 = vmatpush2.bf16.msra.mxu1 %v9357_v0  ;;  %v9437_v0 = vld [vmem:[#allocation8 + $0x7cc] ss:$16 sps:$4 sm:$0xff]  }
 0x378   :  { %7560 = vmatprep.subr.bf16.mxu1 %v9365_v49  ;;  %v9435_v49 = vld [vmem:[#allocation8 + $0x7c8] ss:$16 sps:$4 sm:$0xff]  }
 0x379   :  { %7518 = vmatpush2.bf16.msra.mxu0 %v9360_v9  ;;  %v9440_v9 = vld [vmem:[#allocation8 + $0x5ac] ss:$16 sps:$4 sm:$0xff]  }
 0x37a   :  { %7519 = vmatprep.subr.bf16.mxu0 %v9368_v7  ;;  %v9438_v7 = vld [vmem:[#allocation8 + $0x5a8] ss:$16 sps:$4 sm:$0xff]  }
 0x37b   :  { %7561 = vmatpush2.bf16.msra.mxu1 %v9363_v20  ;;  %v9443_v20 = vld [vmem:[#allocation8 + $0x7ac] ss:$16 sps:$4 sm:$0xff]  }
 0x37c   :  { %7562 = vmatprep.subr.bf16.mxu1 %v9371_v8  ;;  %v9441_v8 = vld [vmem:[#allocation8 + $0x7a8] ss:$16 sps:$4 sm:$0xff]  }
 0x37d   :  { %7520 = vmatpush2.bf16.msra.mxu0 %v9366_v22  ;;  %v9446_v22 = vld [vmem:[#allocation8 + $0x58c] ss:$16 sps:$4 sm:$0xff]  }
 0x37e   :  { %7521 = vmatprep.subr.bf16.mxu0 %v9374_v13  ;;  %v9444_v13 = vld [vmem:[#allocation8 + $0x588] ss:$16 sps:$4 sm:$0xff]  }
 0x37f   :  { %7563 = vmatpush2.bf16.msra.mxu1 %v9369_v1  ;;  %v9449_v1 = vld [vmem:[#allocation8 + $0x78c] ss:$16 sps:$4 sm:$0xff]  }
 0x380   :  { %7564 = vmatprep.subr.bf16.mxu1 %v9377_v51  ;;  %v9447_v51 = vld [vmem:[#allocation8 + $0x788] ss:$16 sps:$4 sm:$0xff]  }
 0x381   :  { %7522 = vmatpush2.bf16.msra.mxu0 %v9372_v30  ;;  %v9452_v30 = vld [vmem:[#allocation8 + $0x56c] ss:$16 sps:$4 sm:$0xff]  }
 0x382   :  { %7577 = vmatprep.subr.bf16.mxu0 %v9380_v60  ;;  %v9450_v60 = vld [vmem:[#allocation8 + $0x568] ss:$16 sps:$4 sm:$0xff]  }
 0x383   :  { %7565 = vmatpush2.bf16.msra.mxu1 %v9375_v26  ;;  %v9455_v26 = vld [vmem:[#allocation8 + $0x76c] ss:$16 sps:$4 sm:$0xff]  }
 0x384   :  { %7620 = vmatprep.subr.bf16.mxu1 %v9383_v62  ;;  %7524 = vmatmul.mubr.bf16.vlgmr.msra.gmra.mxu0 %v9896_v40  ;;  %v9393_v40 = vld [vmem:[#allocation8 + $0x6a8] ss:$16 sps:$4 sm:$0xff]  }
 0x385   :  { %7578 = vmatpush1.bf16.msra.mxu0 %v9378_v17  ;;  %7609 = vmatprep.mubr.bf16.mxu0 %v10019_v12  ;;  %v9399_v12 = vld [vmem:[#allocation8 + $0x688] ss:$16 sps:$4 sm:$0xff]   ;;  %v9458_v17 = vld [vmem:[#allocation8 + $0x54c] ss:$16 sps:$4 sm:$0xff]  }
 0x386   :  { %7567 = vmatmul.mubr.bf16.vlgmr.msra.gmra.mxu1 %v9915_v19  ;;  %7579 = vmatprep.subr.bf16.mxu0 %v9386_v23  ;;  %v9401_v19 = vld [vmem:[#allocation8 + $0x68c] ss:$16 sps:$4 sm:$0xff]   ;;  %v9453_v62 = vld [vmem:[#allocation8 + $0x768] ss:$16 sps:$4 sm:$0xff]  }
 0x387   :  { %7621 = vmatpush1.bf16.msra.mxu1 %v9381_v21  ;;  %7652 = vmatprep.mubr.bf16.mxu1 %v10023_v3  ;;  %v9402_v3 = vld [vmem:[#allocation8 + $0x468] ss:$16 sps:$4 sm:$0xff]   ;;  %v9461_v21 = vld [vmem:[#allocation8 + $0x74c] ss:$16 sps:$4 sm:$0xff]  }
 0x388   :  { %7622 = vmatprep.subr.bf16.mxu1 %v9389_v25  ;;  %v9456_v23 = vld [vmem:[#allocation8 + $0x548] ss:$16 sps:$4 sm:$0xff]  }
 0x389   :  { %7580 = vmatpush1.bf16.msra.mxu0 %v9384_v27  ;;  %v9459_v25 = vld [vmem:[#allocation8 + $0x748] ss:$16 sps:$4 sm:$0xff]   ;;  %v9464_v27 = vld [vmem:[#allocation8 + $0x52c] ss:$16 sps:$4 sm:$0xff]  }
 0x38a   :  { %7581 = vmatprep.subr.bf16.mxu0 %v9392_v31  ;;  %v9462_v31 = vld [vmem:[#allocation8 + $0x528] ss:$16 sps:$4 sm:$0xff]  }
 0x38b   :  { %7623 = vmatpush1.bf16.msra.mxu1 %v9387_v37  ;;  %v9467_v37 = vld [vmem:[#allocation8 + $0x72c] ss:$16 sps:$4 sm:$0xff]  }
 0x38c   :  { %7624 = vmatprep.subr.bf16.mxu1 %v9395_v28  ;;  %v9465_v28 = vld [vmem:[#allocation8 + $0x728] ss:$16 sps:$4 sm:$0xff]  }
 0x38d   :  { %7582 = vmatpush1.bf16.msra.mxu0 %v9390_v14  ;;  %v9470_v14 = vld [vmem:[#allocation8 + $0x50c] ss:$16 sps:$4 sm:$0xff]  }
 0x38e   :  { %7583 = vmatprep.subr.bf16.mxu0 %v9398_v2  ;;  %v9468_v2 = vld [vmem:[#allocation8 + $0x508] ss:$16 sps:$4 sm:$0xff]  }
 0x38f   :  { %7625 = vmatpush1.bf16.msra.mxu1 %v9393_v40  ;;  %v9473_v40 = vld [vmem:[#allocation8 + $0x70c] ss:$16 sps:$4 sm:$0xff]  }
 0x390   :  { %7626 = vmatprep.subr.bf16.mxu1 %v9401_v19  ;;  %v9471_v19 = vld [vmem:[#allocation8 + $0x708] ss:$16 sps:$4 sm:$0xff]  }
 0x391   :  { %7584 = vmatpush1.bf16.msra.mxu0 %v9396_v29  ;;  %v9476_v29 = vld [vmem:[#allocation8 + $0x8ec] ss:$16 sps:$4 sm:$0xff]  }
 0x392   :  { %7585 = vmatprep.subr.bf16.mxu0 %v9404_v32  ;;  %v9474_v32 = vld [vmem:[#allocation8 + $0x8e8] ss:$16 sps:$4 sm:$0xff]  }
 0x393   :  { %7627 = vmatpush1.bf16.msra.mxu1 %v9399_v12  ;;  %v9479_v12 = vld [vmem:[#allocation8 + $0xaec] ss:$16 sps:$4 sm:$0xff]  }
 0x394   :  { %7628 = vmatprep.subr.bf16.mxu1 %v9407_v52  ;;  %v9477_v52 = vld [vmem:[#allocation8 + $0xae8] ss:$16 sps:$4 sm:$0xff]  }
 0x395   :  { %7586 = vmatpush1.bf16.msra.mxu0 %v9402_v3  ;;  %v9482_v3 = vld [vmem:[#allocation8 + $0x8cc] ss:$16 sps:$4 sm:$0xff]  }
 0x396   :  { %7587 = vmatprep.subr.bf16.mxu0 %v9410_v36  ;;  %v9480_v36 = vld [vmem:[#allocation8 + $0x8c8] ss:$16 sps:$4 sm:$0xff]  }
 0x397   :  { %7629 = vmatpush1.bf16.msra.mxu1 %v9405_v34  ;;  %v9485_v34 = vld [vmem:[#allocation8 + $0xacc] ss:$16 sps:$4 sm:$0xff]  }
 0x398   :  { %7630 = vmatprep.subr.bf16.mxu1 %v9413_v47  ;;  %v9483_v47 = vld [vmem:[#allocation8 + $0xac8] ss:$16 sps:$4 sm:$0xff]  }
 0x399   :  { %7588 = vmatpush1.bf16.msra.mxu0 %v9408_v50  ;;  %v9488_v50 = vld [vmem:[#allocation8 + $0x8ac] ss:$16 sps:$4 sm:$0xff]  }
 0x39a   :  { %7589 = vmatprep.subr.bf16.mxu0 %v9416_v4  ;;  %v9486_v4 = vld [vmem:[#allocation8 + $0x8a8] ss:$16 sps:$4 sm:$0xff]  }
 0x39b   :  { %7631 = vmatpush1.bf16.msra.mxu1 %v9411_v35  ;;  %v9491_v35 = vld [vmem:[#allocation8 + $0xaac] ss:$16 sps:$4 sm:$0xff]  }
 0x39c   :  { %7632 = vmatprep.subr.bf16.mxu1 %v9419_v38  ;;  %v9494_v38 = vld [vmem:[#allocation8 + $0x88c] ss:$16 sps:$4 sm:$0xff]  }
 0x39d   :  { %7590 = vmatpush1.bf16.msra.mxu0 %v9414_v41  ;;  %v9492_v41 = vld [vmem:[#allocation8 + $0x888] ss:$16 sps:$4 sm:$0xff]  }
 0x39e   :  { %7591 = vmatprep.subr.bf16.mxu0 %v9422_v45  ;;  %v9503_v45 = vld [vmem:[#allocation8 + $0xa6c] ss:$16 sps:$4 sm:$0xff]  }
 0x39f   :  { %7633 = vmatpush1.bf16.msra.mxu1 %v9417_v54  ;;  %v9500_v54 = vld [vmem:[#allocation8 + $0x86c] ss:$16 sps:$4 sm:$0xff]  }
 0x3a0   :  { %7634 = vmatprep.subr.bf16.mxu1 %v9425_v56  ;;  %v9501_v56 = vld [vmem:[#allocation8 + $0xa68] ss:$16 sps:$4 sm:$0xff]  }
 0x3a1   :  { %7592 = vmatpush1.bf16.msra.mxu0 %v9420_v53  ;;  %v9506_v53 = vld [vmem:[#allocation8 + $0x84c] ss:$16 sps:$4 sm:$0xff]  }
 0x3a2   :  { %7593 = vmatprep.subr.bf16.mxu0 %v9428_v39  ;;  %v9504_v39 = vld [vmem:[#allocation8 + $0x848] ss:$16 sps:$4 sm:$0xff]  }
 0x3a3   :  { %7635 = vmatpush1.bf16.msra.mxu1 %v9423_v6  ;;  %v9509_v6 = vld [vmem:[#allocation8 + $0xa4c] ss:$16 sps:$4 sm:$0xff]  }
 0x3a4   :  { %7636 = vmatprep.subr.bf16.mxu1 %v9431_v59  ;;  %v9507_v59 = vld [vmem:[#allocation8 + $0xa48] ss:$16 sps:$4 sm:$0xff]  }
 0x3a5   :  { %7594 = vmatpush2.bf16.msra.mxu0 %v9426_v48  ;;  %v9512_v48 = vld [vmem:[#allocation8 + $0x82c] ss:$16 sps:$4 sm:$0xff]  }
 0x3a6   :  { %7595 = vmatprep.subr.bf16.mxu0 %v9434_v61  ;;  %v9510_v61 = vld [vmem:[#allocation8 + $0x828] ss:$16 sps:$4 sm:$0xff]  }
 0x3a7   :  { %7637 = vmatpush2.bf16.msra.mxu1 %v9429_v42  ;;  %v9515_v42 = vld [vmem:[#allocation8 + $0xa2c] ss:$16 sps:$4 sm:$0xff]  }
 0x3a8   :  { %7638 = vmatprep.subr.bf16.mxu1 %v9437_v0  ;;  %v10107_v0 = vpop.f32.mrf.mxu0 }
 0x3a9   :  { %7596 = vmatpush2.bf16.msra.mxu0 %v9432_v15  ;;  %v9513_v15 = vld [vmem:[#allocation8 + $0xa28] ss:$16 sps:$4 sm:$0xff]  }
 0x3aa   :  { %7597 = vmatprep.subr.bf16.mxu0 %v9440_v9  ;;  %v10109_v9 = vpop.f32.mrf.mxu1 }
 0x3ab   :  { %7639 = vmatpush2.bf16.msra.mxu1 %v9435_v49  ;;  %v9518_v49 = vld [vmem:[#allocation8 + $0x80c] ss:$16 sps:$4 sm:$0xff]  }
 0x3ac   :  { %7640 = vmatprep.subr.bf16.mxu1 %v9443_v20  ;;  %v9521_v20 = vld [vmem:[#allocation8 + $0xa0c] ss:$16 sps:$4 sm:$0xff]  }
 0x3ad   :  { %7598 = vmatpush2.bf16.msra.mxu0 %v9438_v7  ;;  %v9516_v7 = vld [vmem:[#allocation8 + $0x808] ss:$16 sps:$4 sm:$0xff]  }
 0x3ae   :  { %7599 = vmatprep.subr.bf16.mxu0 %v9446_v22  ;;  %v9519_v22 = vld [vmem:[#allocation8 + $0xa08] ss:$16 sps:$4 sm:$0xff]  }
 0x3af   :  { %7641 = vmatpush2.bf16.msra.mxu1 %v9441_v8  ;;  %v10111_v8 = vpop.f32.mrf.mxu0 }
 0x3b0   :  { %7642 = vmatprep.subr.bf16.mxu1 %v9449_v1  ;;  %v9524_v1 = vld [vmem:[#allocation8 + $0x9ec] ss:$16 sps:$4 sm:$0xff]  }
 0x3b1   :  { %7600 = vmatpush2.bf16.msra.mxu0 %v9444_v13  ;;  %v10113_v13 = vpop.f32.mrf.mxu1 }
 0x3b2   :  { %7601 = vmatprep.subr.bf16.mxu0 %v9452_v30  ;;  %v9522_v30 = vld [vmem:[#allocation8 + $0x9e8] ss:$16 sps:$4 sm:$0xff]  }
 0x3b3   :  { %7643 = vmatpush2.bf16.msra.mxu1 %v9447_v51  ;;  %v9527_v51 = vld [vmem:[#allocation8 + $0xbec] ss:$16 sps:$4 sm:$0xff]  }
 0x3b4   :  { %7644 = vmatprep.subr.bf16.mxu1 %v9455_v26  ;;  %v10115_v26 = vpop.f32.mrf.mxu0 }
 0x3b5   :  { %7602 = vmatpush2.bf16.msra.mxu0 %v9450_v60  ;;  %v9525_v60 = vld [vmem:[#allocation8 + $0xbe8] ss:$16 sps:$4 sm:$0xff]  }
 0x3b6   :  { %7603 = vmatprep.subr.bf16.mxu0 %v9458_v17  ;;  %v10117_v17 = vpop.f32.mrf.mxu1 }
 0x3b7   :  { %7645 = vmatpush2.bf16.msra.mxu1 %v9453_v62  ;;  %v9530_v62 = vld [vmem:[#allocation8 + $0x9cc] ss:$16 sps:$4 sm:$0xff]  }
 0x3b8   :  { %7646 = vmatprep.subr.bf16.mxu1 %v9461_v21  ;;  %v9533_v21 = vld [vmem:[#allocation8 + $0xbcc] ss:$16 sps:$4 sm:$0xff]  }
 0x3b9   :  { %7604 = vmatpush2.bf16.msra.mxu0 %v9456_v23  ;;  %v9528_v23 = vld [vmem:[#allocation8 + $0x9c8] ss:$16 sps:$4 sm:$0xff]  }
 0x3ba   :  { %7605 = vmatprep.subr.bf16.mxu0 %v9464_v27  ;;  %v9531_v27 = vld [vmem:[#allocation8 + $0xbc8] ss:$16 sps:$4 sm:$0xff]  }
 0x3bb   :  { %7647 = vmatpush2.bf16.msra.mxu1 %v9459_v25  ;;  %v7187_v25 = vpop.f32.mrf.mxu0 }
 0x3bc   :  { %7648 = vmatprep.subr.bf16.mxu1 %v9467_v37  ;;  %v9536_v37 = vld [vmem:[#allocation8 + $0x9ac] ss:$16 sps:$4 sm:$0xff]  }
 0x3bd   :  { %7606 = vmatpush2.bf16.msra.mxu0 %v9462_v31  ;;  %v10119_v31 = vpop.f32.mrf.mxu1 }
 0x3be   :  { %7607 = vmatprep.subr.bf16.mxu0 %v9470_v14  ;;  %v7267_v14 = vpop.f32.mrf.mxu0 }
 0x3bf   :  { %7649 = vmatpush2.bf16.msra.mxu1 %v9465_v28  ;;  %v9539_v28 = vld [vmem:[#allocation8 + $0xbac] ss:$16 sps:$4 sm:$0xff]  }
 0x3c0   :  { %7650 = vmatprep.subr.bf16.mxu1 %v9473_v40  ;;  %v10121_v40 = vpop.f32.mrf.mxu1 }
 0x3c1   :  { %7608 = vmatpush2.bf16.msra.mxu0 %v9468_v2  ;;  %v9534_v2 = vld [vmem:[#allocation8 + $0x9a8] ss:$16 sps:$4 sm:$0xff]  }
 0x3c2   :  { %7663 = vmatprep.subr.bf16.mxu0 %v9476_v29  ;;  %v9542_v29 = vld [vmem:[#allocation8 + $0x98c] ss:$16 sps:$4 sm:$0xff]  }
 0x3c3   :  { %7651 = vmatpush2.bf16.msra.mxu1 %v9471_v19  ;;  %v9537_v19 = vld [vmem:[#allocation8 + $0xba8] ss:$16 sps:$4 sm:$0xff]  }
 0x3c4   :  { %7706 = vmatprep.subr.bf16.mxu1 %v9479_v12  ;;  %7610 = vmatmul.mubr.bf16.vlgmr.msra.gmra.mxu0 %v9935_v24  ;;  %v9489_v24 = vld [vmem:[#allocation8 + $0xaa8] ss:$16 sps:$4 sm:$0xff]   ;;  %v9545_v12 = vld [vmem:[#allocation8 + $0xb8c] ss:$16 sps:$4 sm:$0xff]  }
 0x3c5   :  { %7664 = vmatpush1.bf16.msra.mxu0 %v9474_v32  ;;  %7695 = vmatprep.mubr.bf16.mxu0 %v10047_v43  ;;  %v9495_v43 = vld [vmem:[#allocation8 + $0xa88] ss:$16 sps:$4 sm:$0xff]   ;;  %v10123_v32 = vld [vmem:[#allocation10] sm:$0xf] }
 0x3c6   :  { %7653 = vmatmul.mubr.bf16.vlgmr.msra.gmra.mxu1 %v9953_v57  ;;  %7665 = vmatprep.subr.bf16.mxu0 %v9482_v3  ;;  %v9497_v57 = vld [vmem:[#allocation8 + $0xa8c] ss:$16 sps:$4 sm:$0xff]   ;;  %v7312_v3 = vpop.f32.mrf.mxu1 }
 0x3c7   :  { %7707 = vmatpush1.bf16.msra.mxu1 %v9477_v52  ;;  %7738 = vmatprep.mubr.bf16.mxu1 %v10050_v11  ;;  %v9498_v11 = vld [vmem:[#allocation8 + $0x868] ss:$16 sps:$4 sm:$0xff]   ;;  %v7269_v52 = vpop.f32.mrf.mxu0 }
 0x3c8   :  { %7708 = vmatprep.subr.bf16.mxu1 %v9485_v34  ;;  %v9540_v34 = vld [vmem:[#allocation8 + $0x988] ss:$16 sps:$4 sm:$0xff]  }
 0x3c9   :  { %7666 = vmatpush1.bf16.msra.mxu0 %v9480_v36  ;;  %v9543_v36 = vld [vmem:[#allocation8 + $0xb88] ss:$16 sps:$4 sm:$0xff]  }
 0x3ca   :  { %7667 = vmatprep.subr.bf16.mxu0 %v9488_v50  ;;  %v4570_v50 = vrot.slane %v10123_v32, %v9884_v44 }
 0x3cb   :  { %7709 = vmatpush1.bf16.msra.mxu1 %v9483_v47  ;;  %v9548_v47 = vld [vmem:[#allocation8 + $0x96c] ss:$16 sps:$4 sm:$0xff]  }
 0x3cc   :  { %7710 = vmatprep.subr.bf16.mxu1 %v9491_v35  ;;  %v9551_v35 = vld [vmem:[#allocation8 + $0xb6c] ss:$16 sps:$4 sm:$0xff]  }
 0x3cd   :  { %7668 = vmatpush1.bf16.msra.mxu0 %v9486_v4  ;;  %v7271_v4 = vpop.f32.mrf.mxu0 }
 0x3ce   :  { %7669 = vmatprep.subr.bf16.mxu0 %v9494_v38  ;;  %v7314_v38 = vpop.f32.mrf.mxu1 }
 0x3cf   :  { %7711 = vmatpush1.bf16.msra.mxu1 %v9489_v24  ;;  %v4574_v24 = vrot.slane %v10123_v32, %v9956_v33  ;;  %v9555_v33 = vld [vmem:[#allocation8 + $0xb48] ss:$16 sps:$4 sm:$0xff]  }
 0x3d0   :  { %7712 = vmatprep.subr.bf16.mxu1 %v9497_v57  ;;  %v9546_v57 = vld [vmem:[#allocation8 + $0x968] ss:$16 sps:$4 sm:$0xff]  }
 0x3d1   :  { %7670 = vmatpush1.bf16.msra.mxu0 %v9492_v41  ;;  %v9549_v41 = vld [vmem:[#allocation8 + $0xb68] ss:$16 sps:$4 sm:$0xff]   ;;  %v7184_v44 = vadd.f32 %v10111_v8, %v4574_v24 }
 0x3d2   :  { %7671 = vmatprep.subr.bf16.mxu0 %v9500_v54  ;;  %v7182_v54 = vadd.f32 %v10107_v0, %v4570_v50  ;;  %v9561_v8 = vld [vmem:[#allocation8 + $0xb28] ss:$16 sps:$4 sm:$0xff]  }
 0x3d3   :  { %7713 = vmatpush1.bf16.msra.mxu1 %v9495_v43  ;;  %v9554_v43 = vld [vmem:[#allocation8 + $0x94c] ss:$16 sps:$4 sm:$0xff]   ;;  %v7227_v0 = vadd.f32 %v10113_v13, %v7184_v44 }
 0x3d4   :  { %7714 = vmatprep.subr.bf16.mxu1 %v9503_v45  ;;  %v9557_v45 = vld [vmem:[#allocation8 + $0xb4c] ss:$16 sps:$4 sm:$0xff]  }
 0x3d5   :  { %7672 = vmatpush1.bf16.msra.mxu0 %v9498_v11  ;;  %v7273_v11 = vpop.f32.mrf.mxu0 }
 0x3d6   :  { %7673 = vmatprep.subr.bf16.mxu0 %v9506_v53  ;;  %v9552_v53 = vld [vmem:[#allocation8 + $0x948] ss:$16 sps:$4 sm:$0xff]  }
 0x3d7   :  { %7715 = vmatpush1.bf16.msra.mxu1 %v9501_v56  ;;  %v7316_v56 = vpop.f32.mrf.mxu1 }
 0x3d8   :  { %7716 = vmatprep.subr.bf16.mxu1 %v9509_v6  ;;  %v7353_v6 = vpop.f32.mrf.mxu0 }
 0x3d9   :  { %7674 = vmatpush1.bf16.msra.mxu0 %v9504_v39  ;;  %v9560_v39 = vld [vmem:[#allocation8 + $0x92c] ss:$16 sps:$4 sm:$0xff]  }
 0x3da   :  { %7675 = vmatprep.subr.bf16.mxu0 %v9512_v48  ;;  %v7186_v48 = vadd.f32 %v10115_v26, %v4570_v50  ;;  %v9581_v50 = vld [vmem:[#allocation8 + $0xecc] ss:$16 sps:$4 sm:$0xff]  }
 0x3db   :  { %7717 = vmatpush1.bf16.msra.mxu1 %v9507_v59  ;;  %v7225_v59 = vadd.f32 %v10109_v9, %v7182_v54  ;;  %v9584_v54 = vld [vmem:[#allocation8 + $0xcac] ss:$16 sps:$4 sm:$0xff]  }
 0x3dc   :  { %7718 = vmatprep.subr.bf16.mxu1 %v9515_v42  ;;  %v7396_v42 = vpop.f32.mrf.mxu1 }
 0x3dd   :  { %7676 = vmatpush1.bf16.msra.mxu0 %v9510_v61  ;;  %v9563_v61 = vld [vmem:[#allocation8 + $0xb2c] ss:$16 sps:$4 sm:$0xff]  }
 0x3de   :  { %7677 = vmatprep.subr.bf16.mxu0 %v9518_v49  ;;  %v7268_v49 = vadd.f32 %v7267_v14, %v7225_v59  ;;  %v7398_v9 = vpop.f32.mrf.mxu1  ;;  %v9575_v14 = vld [vmem:[#allocation8 + $0xeec] ss:$16 sps:$4 sm:$0xff]  }
 0x3df   :  { %7719 = vmatpush1.bf16.msra.mxu1 %v9513_v15  ;;  %v7188_v15 = vadd.f32 %v7187_v25, %v4574_v24  ;;  %v9572_v25 = vld [vmem:[#allocation8 + $0xcec] ss:$16 sps:$4 sm:$0xff]  }
 0x3e0   :  { %7720 = vmatprep.subr.bf16.mxu1 %v9521_v20  ;;  %v9558_v20 = vld [vmem:[#allocation8 + $0x928] ss:$16 sps:$4 sm:$0xff]  }
 0x3e1   :  { %7678 = vmatpush1.bf16.msra.mxu0 %v9516_v7  ;;  %v7355_v7 = vpop.f32.mrf.mxu0  ;;  %v7231_v26 = vadd.f32 %v10119_v31, %v7188_v15  ;;  %v9570_v31 = vld [vmem:[#allocation8 + $0xce8] ss:$16 sps:$4 sm:$0xff]  }
 0x3e2   :  { %7679 = vmatprep.subr.bf16.mxu0 %v9524_v1  ;;  %v7229_v1 = vadd.f32 %v10117_v17, %v7186_v48  ;;  %v7400_v17 = vpop.f32.mrf.mxu1  ;;  %v9585_v48 = vld [vmem:[#allocation8 + $0xea8] ss:$16 sps:$4 sm:$0xff]  }
 0x3e3   :  { %7721 = vmatpush1.bf16.msra.mxu1 %v9519_v22  ;;  %v9566_v22 = vld [vmem:[#allocation8 + $0x90c] ss:$16 sps:$4 sm:$0xff]  }
 0x3e4   :  { %7722 = vmatprep.subr.bf16.mxu1 %v9527_v51  ;;  %v7270_v51 = vadd.f32 %v7269_v52, %v7227_v0  ;;  %v7272_v13 = vadd.f32 %v7271_v4, %v7229_v1  ;;  %v9593_v0 = vld [vmem:[#allocation8 + $0xe8c] ss:$16 sps:$4 sm:$0xff]   ;;  %v9594_v1 = vld [vmem:[#allocation8 + $0xc68] ss:$16 sps:$4 sm:$0xff]  }
 0x3e5   :  { %7680 = vmatpush2.bf16.msra.mxu0 %v9522_v30  ;;  %v9569_v30 = vld [vmem:[#allocation8 + $0xb0c] ss:$16 sps:$4 sm:$0xff]  }
 0x3e6   :  { %7681 = vmatprep.subr.bf16.mxu0 %v9530_v62  ;;  %v9564_v62 = vld [vmem:[#allocation8 + $0x908] ss:$16 sps:$4 sm:$0xff]  }
 0x3e7   :  { %7723 = vmatpush2.bf16.msra.mxu1 %v9525_v60  ;;  %v7311_v60 = vadd.f32 %v10121_v40, %v7268_v49  ;;  %v9573_v40 = vld [vmem:[#allocation8 + $0xee8] ss:$16 sps:$4 sm:$0xff]  }
 0x3e8   :  { %7724 = vmatprep.subr.bf16.mxu1 %v9533_v21  ;;  %v7357_v21 = vpop.f32.mrf.mxu0 }
 0x3e9   :  { %7682 = vmatpush2.bf16.msra.mxu0 %v9528_v23  ;;  %v9567_v23 = vld [vmem:[#allocation8 + $0xb08] ss:$16 sps:$4 sm:$0xff]  }
 0x3ea   :  { %7683 = vmatprep.subr.bf16.mxu0 %v9536_v37  ;;  %v7274_v37 = vadd.f32 %v7273_v11, %v7231_v26  ;;  %v9600_v26 = vld [vmem:[#allocation8 + $0xc48] ss:$16 sps:$4 sm:$0xff]  }
 0x3eb   :  { %7725 = vmatpush2.bf16.msra.mxu1 %v9531_v27  ;;  %v7313_v27 = vadd.f32 %v7312_v3, %v7270_v51  ;;  %v9597_v51 = vld [vmem:[#allocation8 + $0xe68] ss:$16 sps:$4 sm:$0xff]  }
 0x3ec   :  { %7726 = vmatprep.subr.bf16.mxu1 %v9539_v28  ;;  %v7354_v28 = vadd.f32 %v7353_v6, %v7311_v60  ;;  %v9603_v60 = vld [vmem:[#allocation8 + $0xe48] ss:$16 sps:$4 sm:$0xff]  }
 0x3ed   :  { %7684 = vmatpush2.bf16.msra.mxu0 %v9534_v2  ;;  %v7315_v2 = vadd.f32 %v7314_v38, %v7272_v13  ;;  %v9608_v13 = vld [vmem:[#allocation8 + $0xc2c] ss:$16 sps:$4 sm:$0xff]  }
 0x3ee   :  { %7685 = vmatprep.subr.bf16.mxu0 %v9542_v29  ;;  %v7359_v29 = vpop.f32.mrf.mxu0  ;;  %v7397_v52 = vadd.f32 %v7396_v42, %v7354_v28  ;;  %v9590_v42 = vld [vmem:[#allocation8 + $0xc8c] ss:$16 sps:$4 sm:$0xff]   ;;  %v9615_v28 = vld [vmem:[#allocation8 + $0xe08] ss:$16 sps:$4 sm:$0xff]  }
 0x3ef   :  { %7727 = vmatpush2.bf16.msra.mxu1 %v9537_v19  ;;  %v7356_v19 = vadd.f32 %v7355_v7, %v7313_v27  ;;  %v9591_v7 = vld [vmem:[#allocation8 + $0xe88] ss:$16 sps:$4 sm:$0xff]   ;;  %v9617_v27 = vld [vmem:[#allocation8 + $0xe0c] ss:$16 sps:$4 sm:$0xff]  }
 0x3f0   :  { %7728 = vmatprep.subr.bf16.mxu1 %v9545_v12  ;;  %v7317_v12 = vadd.f32 %v7316_v56, %v7274_v37  ;;  %v9587_v56 = vld [vmem:[#allocation8 + $0xeac] ss:$16 sps:$4 sm:$0xff]   ;;  %v9612_v37 = vld [vmem:[#allocation8 + $0xc08] ss:$16 sps:$4 sm:$0xff]  }
 0x3f1   :  { %7686 = vmatpush2.bf16.msra.mxu0 %v9540_v34  ;;  %v7358_v34 = vadd.f32 %v7357_v21, %v7315_v2  ;;  %v9606_v21 = vld [vmem:[#allocation8 + $0xc28] ss:$16 sps:$4 sm:$0xff]  }
 0x3f2   :  { %7687 = vmatprep.subr.bf16.mxu0 %v9548_v47  ;;  %v9578_v47 = vld [vmem:[#allocation8 + $0xccc] ss:$16 sps:$4 sm:$0xff]   ;;  %v7360_v4 = vadd.f32 %v7359_v29, %v7317_v12  ;;  %v9618_v2 = vld [vmem:[#allocation8 + $0xde8] ss:$16 sps:$4 sm:$0xff]  }
 0x3f3   :  { %7729 = vmatpush2.bf16.msra.mxu1 %v9543_v36  ;;  %v7402_v36 = vpop.f32.mrf.mxu1  ;;  %v9629_v29 = vld [vmem:[#allocation8 + $0xfcc] ss:$16 sps:$4 sm:$0xff]   ;;  %v9627_v12 = vld [vmem:[#allocation8 + $0xfc8] ss:$16 sps:$4 sm:$0xff]  }
 0x3f4   :  { %7730 = vmatprep.subr.bf16.mxu1 %v9551_v35  ;;  %v7399_v35 = vadd.f32 %v7398_v9, %v7356_v19  ;;  %v7403_v6 = vadd.f32 %v7402_v36, %v7360_v4  ;;  %v9602_v9 = vld [vmem:[#allocation8 + $0xc4c] ss:$16 sps:$4 sm:$0xff]   ;;  %v9621_v19 = vld [vmem:[#allocation8 + $0xfe8] ss:$16 sps:$4 sm:$0xff]  }
 0x3f5   :  { %7688 = vmatpush2.bf16.msra.mxu0 %v9546_v57  ;;  %v9576_v57 = vld [vmem:[#allocation8 + $0xcc8] ss:$16 sps:$4 sm:$0xff]  }
 0x3f6   :  { %7689 = vmatprep.subr.bf16.mxu0 %v9554_v43  ;;  %v9579_v43 = vld [vmem:[#allocation8 + $0xec8] ss:$16 sps:$4 sm:$0xff]  }
 0x3f7   :  { %7731 = vmatpush2.bf16.msra.mxu1 %v9549_v41  ;;  %v9630_v36 = vld [vmem:[#allocation8 + $0xda8] ss:$16 sps:$4 sm:$0xff]  }
 0x3f8   :  { %7732 = vmatprep.subr.bf16.mxu1 %v9557_v45  ;;  %v7401_v45 = vadd.f32 %v7400_v17, %v7358_v34  ;;  %v9620_v17 = vld [vmem:[#allocation8 + $0xdec] ss:$16 sps:$4 sm:$0xff]   ;;  %v9639_v4 = vld [vmem:[#allocation8 + $0xf88] ss:$16 sps:$4 sm:$0xff]  }
 0x3f9   :  { %7690 = vmatpush2.bf16.msra.mxu0 %v9552_v53  ;;  %v9635_v34 = vld [vmem:[#allocation8 + $0xfac] ss:$16 sps:$4 sm:$0xff]  }
 0x3fa   :  { %7691 = vmatprep.subr.bf16.mxu0 %v9560_v39 }
 0x3fb   :  { %7733 = vmatpush2.bf16.msra.mxu1 %v9555_v33 }
 0x3fc   :  { %7734 = vmatprep.subr.bf16.mxu1 %v9563_v61 }
 0x3fd   :  { %7692 = vmatpush2.bf16.msra.mxu0 %v9558_v20  ;;  %v9588_v20 = vld [vmem:[#allocation8 + $0xc88] ss:$16 sps:$4 sm:$0xff]  }
 0x3fe   :  { %7693 = vmatprep.subr.bf16.mxu0 %v9566_v22  ;;  %v9599_v22 = vld [vmem:[#allocation8 + $0xe6c] ss:$16 sps:$4 sm:$0xff]  }
 0x3ff   :  { %7735 = vmatpush2.bf16.msra.mxu1 %v9561_v8  ;;  %v9596_v8 = vld [vmem:[#allocation8 + $0xc6c] ss:$16 sps:$4 sm:$0xff]  }
 0x400   :  { %7736 = vmatprep.subr.bf16.mxu1 %v9569_v30  ;;  %v9605_v30 = vld [vmem:[#allocation8 + $0xe4c] ss:$16 sps:$4 sm:$0xff]  }
 0x401   :  { %7694 = vmatpush2.bf16.msra.mxu0 %v9564_v62  ;;  %v9611_v62 = vld [vmem:[#allocation8 + $0xe2c] ss:$16 sps:$4 sm:$0xff]  }
 0x402   :  { %7749 = vmatprep.subr.bf16.mxu0 %v9572_v25  ;;  %v9614_v25 = vld [vmem:[#allocation8 + $0xc0c] ss:$16 sps:$4 sm:$0xff]  }
 0x403   :  { %7737 = vmatpush2.bf16.msra.mxu1 %v9567_v23  ;;  %v9609_v23 = vld [vmem:[#allocation8 + $0xe28] ss:$16 sps:$4 sm:$0xff]  }
 0x404   :  { %7792 = vmatprep.subr.bf16.mxu1 %v9575_v14  ;;  %v7439_v3 = vpop.f32.mrf.mxu0  ;;  %7696 = vmatmul.mubr.bf16.vlgmr.msra.gmra.mxu0 %v9995_v46  ;;  %v9623_v14 = vld [vmem:[#allocation8 + $0xfec] ss:$16 sps:$4 sm:$0xff]  }
 0x405   :  { %v7440_v24 = vadd.f32 %v7439_v3, %v7397_v52  ;;  %7750 = vmatpush1.bf16.msra.mxu0 %v9570_v31  ;;  %7781 = vmatprep.mubr.bf16.mxu0 %v10073_v5  ;;  %v9582_v5 = vld [vmem:[#allocation8 + $0xca8] ss:$16 sps:$4 sm:$0xff]   ;;  %v9626_v31 = vld [vmem:[#allocation8 + $0xdcc] ss:$16 sps:$4 sm:$0xff]  }
 0x406   :  { %v7482_v38 = vpop.f32.mrf.mxu1  ;;  %7739 = vmatmul.mubr.bf16.vlgmr.msra.gmra.mxu1 %v10031_v55  ;;  %v7441_v41 = vpop.f32.mrf.mxu0  ;;  %7751 = vmatprep.subr.bf16.mxu0 %v9578_v47  ;;  %v9632_v52 = vld [vmem:[#allocation8 + $0xdac] ss:$16 sps:$4 sm:$0xff]   ;;  %v9633_v47 = vld [vmem:[#allocation8 + $0xfa8] ss:$16 sps:$4 sm:$0xff]  }
 0x407   :  { %7793 = vmatpush1.bf16.msra.mxu1 %v9573_v40  ;;  %v7483_v11 = vadd.f32 %v7482_v38, %v7440_v24  ;;  %7824 = vmatprep.mubr.bf16.mxu1 %v10083_v10  ;;  %v7442_v46 = vadd.f32 %v7441_v41, %v7399_v35  ;;  %v9624_v40 = vld [vmem:[#allocation8 + $0xdc8] ss:$16 sps:$4 sm:$0xff]   ;;  %v9638_v3 = vld [vmem:[#allocation8 + $0xd8c] ss:$16 sps:$4 sm:$0xff]  }
 0x408   :  { %v7484_v44 = vpop.f32.mrf.mxu1  ;;  %v7443_v53 = vpop.f32.mrf.mxu0  ;;  %7794 = vmatprep.subr.bf16.mxu1 %v9581_v50  ;;  %v9641_v50 = vld [vmem:[#allocation8 + $0xf8c] ss:$16 sps:$4 sm:$0xff]   ;;  %v9636_v35 = vld [vmem:[#allocation8 + $0xd88] ss:$16 sps:$4 sm:$0xff]  }
 0x409   :  { %7835 = vst [vmem:[#allocation11] sm:$0xff] %v7483_v11  ;;  %v7485_v55 = vadd.f32 %v7484_v44, %v7442_v46  ;;  %v7444_v33 = vadd.f32 %v7443_v53, %v7401_v45  ;;  %7752 = vmatpush1.bf16.msra.mxu0 %v9576_v57  ;;  %v9644_v24 = vld [vmem:[#allocation8 + $0xd6c] ss:$16 sps:$4 sm:$0xff]   ;;  %v9642_v57 = vld [vmem:[#allocation8 + $0xd68] ss:$16 sps:$4 sm:$0xff]  }
 0x40a   :  { %v7486_v39 = vpop.f32.mrf.mxu1  ;;  %v7445_v59 = vpop.f32.mrf.mxu0  ;;  %7753 = vmatprep.subr.bf16.mxu0 %v9584_v54  ;;  %v9647_v38 = vld [vmem:[#allocation8 + $0xf6c] ss:$16 sps:$4 sm:$0xff]   ;;  %v9645_v41 = vld [vmem:[#allocation8 + $0xf68] ss:$16 sps:$4 sm:$0xff]  }
 0x40b   :  { %7795 = vmatpush1.bf16.msra.mxu1 %v9579_v43  ;;  %7836 = vst [vmem:[#allocation11 + $0x8] sm:$0xff] %v7485_v55  ;;  %v7487_v10 = vadd.f32 %v7486_v39, %v7444_v33  ;;  %v7446_v61 = vadd.f32 %v7445_v59, %v7403_v6  ;;  %v9650_v43 = vld [vmem:[#allocation8 + $0xd4c] ss:$16 sps:$4 sm:$0xff]   ;;  %v9648_v45 = vld [vmem:[#allocation8 + $0xd48] ss:$16 sps:$4 sm:$0xff]  }
 0x40c   :  { %7796 = vmatprep.subr.bf16.mxu1 %v9587_v56  ;;  %v7488_v15 = vpop.f32.mrf.mxu1  ;;  %v9653_v54 = vld [vmem:[#allocation8 + $0xf4c] ss:$16 sps:$4 sm:$0xff]   ;;  %v9651_v11 = vld [vmem:[#allocation8 + $0xf48] ss:$16 sps:$4 sm:$0xff]  }
 0x40d   :  { %7839 = vst [vmem:[#allocation11 + $0x20] sm:$0xff] %v7487_v10  ;;  %v7489_v49 = vadd.f32 %v7488_v15, %v7446_v61  ;;  %7754 = vmatpush1.bf16.msra.mxu0 %v9582_v5  ;;  %v9656_v46 = vld [vmem:[#allocation8 + $0xd2c] ss:$16 sps:$4 sm:$0xff]   ;;  %v9654_v56 = vld [vmem:[#allocation8 + $0xd28] ss:$16 sps:$4 sm:$0xff]  }
 0x40e   :  { %7755 = vmatprep.subr.bf16.mxu0 %v9590_v42  ;;  %v9659_v44 = vld [vmem:[#allocation8 + $0xf2c] ss:$16 sps:$4 sm:$0xff]   ;;  %v9657_v53 = vld [vmem:[#allocation8 + $0xf28] ss:$16 sps:$4 sm:$0xff]  }
 0x40f   :  { %7797 = vmatpush1.bf16.msra.mxu1 %v9585_v48  ;;  %7840 = vst [vmem:[#allocation11 + $0x28] sm:$0xff] %v7489_v49  ;;  %v9662_v6 = vld [vmem:[#allocation8 + $0xd0c] ss:$16 sps:$4 sm:$0xff]   ;;  %v9660_v33 = vld [vmem:[#allocation8 + $0xd08] ss:$16 sps:$4 sm:$0xff]  }
 0x410   :  { %7798 = vmatprep.subr.bf16.mxu1 %v9593_v0  ;;  %v9665_v55 = vld [vmem:[#allocation8 + $0xf0c] ss:$16 sps:$4 sm:$0xff]   ;;  %v9663_v39 = vld [vmem:[#allocation8 + $0xf08] ss:$16 sps:$4 sm:$0xff]  }
 0x411   :  { %7756 = vmatpush1.bf16.msra.mxu0 %v9588_v20 }
 0x412   :  { %7757 = vmatprep.subr.bf16.mxu0 %v9596_v8 }
 0x413   :  { %7799 = vmatpush1.bf16.msra.mxu1 %v9591_v7 }
 0x414   :  { %7800 = vmatprep.subr.bf16.mxu1 %v9599_v22  ;;  %v4578_v22 = vrot.slane %v10123_v32, %v9899_v18 }
 0x415   :  { %7758 = vmatpush1.bf16.msra.mxu0 %v9594_v1 }
 0x416   :  { %7759 = vmatprep.subr.bf16.mxu0 %v9602_v9 }
 0x417   :  { %7801 = vmatpush1.bf16.msra.mxu1 %v9597_v51 }
 0x418   :  { %7802 = vmatprep.subr.bf16.mxu1 %v9605_v30 }
 0x419   :  { %7760 = vmatpush1.bf16.msra.mxu0 %v9600_v26 }
 0x41a   :  { %7761 = vmatprep.subr.bf16.mxu0 %v9608_v13 }
 0x41b   :  { %7803 = vmatpush1.bf16.msra.mxu1 %v9603_v60 }
 0x41c   :  { %7804 = vmatprep.subr.bf16.mxu1 %v9611_v62 }
 0x41d   :  { %7762 = vmatpush1.bf16.msra.mxu0 %v9606_v21 }
 0x41e   :  { %7763 = vmatprep.subr.bf16.mxu0 %v9614_v25 }
 0x41f   :  { %7805 = vmatpush1.bf16.msra.mxu1 %v9609_v23 }
 0x420   :  { %7806 = vmatprep.subr.bf16.mxu1 %v9617_v27 }
 0x421   :  { %7764 = vmatpush1.bf16.msra.mxu0 %v9612_v37 }
 0x422   :  { %7765 = vmatprep.subr.bf16.mxu0 %v9620_v17 }
 0x423   :  { %7807 = vmatpush1.bf16.msra.mxu1 %v9615_v28 }
 0x424   :  { %7808 = vmatprep.subr.bf16.mxu1 %v9623_v14 }
 0x425   :  { %7766 = vmatpush2.bf16.msra.mxu0 %v9618_v2 }
 0x426   :  { %7767 = vmatprep.subr.bf16.mxu0 %v9626_v31 }
 0x427   :  { %7809 = vmatpush2.bf16.msra.mxu1 %v9621_v19 }
 0x428   :  { %7810 = vmatprep.subr.bf16.mxu1 %v9629_v29 }
 0x429   :  { %7768 = vmatpush2.bf16.msra.mxu0 %v9624_v40 }
 0x42a   :  { %7769 = vmatprep.subr.bf16.mxu0 %v9632_v52 }
 0x42b   :  { %7811 = vmatpush2.bf16.msra.mxu1 %v9627_v12 }
 0x42c   :  { %7812 = vmatprep.subr.bf16.mxu1 %v9635_v34 }
 0x42d   :  { %7770 = vmatpush2.bf16.msra.mxu0 %v9630_v36 }
 0x42e   :  { %7771 = vmatprep.subr.bf16.mxu0 %v9638_v3 }
 0x42f   :  { %7813 = vmatpush2.bf16.msra.mxu1 %v9633_v47 }
 0x430   :  { %7814 = vmatprep.subr.bf16.mxu1 %v9641_v50 }
 0x431   :  { %7772 = vmatpush2.bf16.msra.mxu0 %v9636_v35 }
 0x432   :  { %7773 = vmatprep.subr.bf16.mxu0 %v9644_v24 }
 0x433   :  { %7815 = vmatpush2.bf16.msra.mxu1 %v9639_v4 }
 0x434   :  { %7816 = vmatprep.subr.bf16.mxu1 %v9647_v38 }
 0x435   :  { %7774 = vmatpush2.bf16.msra.mxu0 %v9642_v57 }
 0x436   :  { %7775 = vmatprep.subr.bf16.mxu0 %v9650_v43 }
 0x437   :  { %7817 = vmatpush2.bf16.msra.mxu1 %v9645_v41 }
 0x438   :  { %7818 = vmatprep.subr.bf16.mxu1 %v9653_v54 }
 0x439   :  { %7776 = vmatpush2.bf16.msra.mxu0 %v9648_v45 }
 0x43a   :  { %7777 = vmatprep.subr.bf16.mxu0 %v9656_v46 }
 0x43b   :  { %7819 = vmatpush2.bf16.msra.mxu1 %v9651_v11 }
 0x43c   :  { %7820 = vmatprep.subr.bf16.mxu1 %v9659_v44 }
 0x43d   :  { %7778 = vmatpush2.bf16.msra.mxu0 %v9654_v56 }
 0x43e   :  { %7779 = vmatprep.subr.bf16.mxu0 %v9662_v6 }
 0x43f   :  { %7821 = vmatpush2.bf16.msra.mxu1 %v9657_v53 }
 0x440   :  { %7822 = vmatprep.subr.bf16.mxu1 %v9665_v55 }
 0x441   :  { %7780 = vmatpush2.bf16.msra.mxu0 %v9660_v33 }
 0x443   :  { %7823 = vmatpush2.bf16.msra.mxu1 %v9663_v39 }
 0x444   :  { %7782 = vmatmul.mubr.bf16.vlgmr.msra.gmra.mxu0 %v10058_v16  ;;  %v7525_v5 = vpop.f32.mrf.mxu0  ;;  %v4582_v16 = vrot.slane %v10123_v32, %v9959_v58 }
 0x445   :  { %v7526_v51 = vadd.f32 %v7525_v5, %v4578_v22 }
 0x446   :  { %7825 = vmatmul.mubr.bf16.vlgmr.msra.gmra.mxu1 %v10093_v63  ;;  %v7568_v59 = vpop.f32.mrf.mxu1  ;;  %v7527_v48 = vpop.f32.mrf.mxu0 }
 0x447   :  { %v7528_v30 = vadd.f32 %v7527_v48, %v4582_v16  ;;  %v7569_v13 = vadd.f32 %v7568_v59, %v7526_v51 }
 0x448   :  { %v7570_v42 = vpop.f32.mrf.mxu1  ;;  %v7529_v10 = vpop.f32.mrf.mxu0 }
 0x449   :  { %v7530_v62 = vadd.f32 %v7529_v10, %v4578_v22  ;;  %v7571_v23 = vadd.f32 %v7570_v42, %v7528_v30 }
 0x44a   :  { %v7572_v61 = vpop.f32.mrf.mxu1  ;;  %v7531_v0 = vpop.f32.mrf.mxu0 }
 0x44b   :  { %v7532_v25 = vadd.f32 %v7531_v0, %v4582_v16  ;;  %v7573_v28 = vadd.f32 %v7572_v61, %v7530_v62 }
 0x44c   :  { %v7574_v15 = vpop.f32.mrf.mxu1 }
 0x44d   :  { %v7575_v14 = vadd.f32 %v7574_v15, %v7532_v25 }
 0x484   :  { %v7611_v49 = vpop.f32.mrf.mxu0 }
 0x485   :  { %v7612_v27 = vadd.f32 %v7611_v49, %v7569_v13 }
 0x486   :  { %v7654_v20 = vpop.f32.mrf.mxu1  ;;  %v7613_v7 = vpop.f32.mrf.mxu0 }
 0x487   :  { %v7614_v17 = vadd.f32 %v7613_v7, %v7571_v23  ;;  %v7655_v2 = vadd.f32 %v7654_v20, %v7612_v27 }
 0x488   :  { %v7656_v8 = vpop.f32.mrf.mxu1  ;;  %v7615_v1 = vpop.f32.mrf.mxu0 }
 0x489   :  { %v7616_v19 = vadd.f32 %v7615_v1, %v7573_v28  ;;  %v7657_v32 = vadd.f32 %v7656_v8, %v7614_v17 }
 0x48a   :  { %v7658_v63 = vpop.f32.mrf.mxu1  ;;  %v7617_v9 = vpop.f32.mrf.mxu0 }
 0x48b   :  { %v7618_v31 = vadd.f32 %v7617_v9, %v7575_v14  ;;  %v7659_v12 = vadd.f32 %v7658_v63, %v7616_v19 }
 0x48c   :  { %v7660_v26 = vpop.f32.mrf.mxu1 }
 0x48d   :  { %v7661_v36 = vadd.f32 %v7660_v26, %v7618_v31 }
 0x4c4   :  { %v7697_v60 = vpop.f32.mrf.mxu0 }
 0x4c5   :  { %v7698_v29 = vadd.f32 %v7697_v60, %v7655_v2 }
 0x4c6   :  { %v7740_v21 = vpop.f32.mrf.mxu1  ;;  %v7699_v37 = vpop.f32.mrf.mxu0 }
 0x4c7   :  { %v7700_v52 = vadd.f32 %v7699_v37, %v7657_v32  ;;  %v7741_v47 = vadd.f32 %v7740_v21, %v7698_v29 }
 0x4c8   :  { %v7742_v18 = vpop.f32.mrf.mxu1  ;;  %v7701_v58 = vpop.f32.mrf.mxu0 }
 0x4c9   :  { %v7702_v3 = vadd.f32 %v7701_v58, %v7659_v12  ;;  %v7743_v4 = vadd.f32 %v7742_v18, %v7700_v52 }
 0x4ca   :  { %v7744_v40 = vpop.f32.mrf.mxu1  ;;  %v7703_v34 = vpop.f32.mrf.mxu0 }
 0x4cb   :  { %v7704_v24 = vadd.f32 %v7703_v34, %v7661_v36  ;;  %v7745_v43 = vadd.f32 %v7744_v40, %v7702_v3 }
 0x4cc   :  { %v7746_v50 = vpop.f32.mrf.mxu1 }
 0x4cd   :  { %v7747_v44 = vadd.f32 %v7746_v50, %v7704_v24 }
 0x504   :  { %v7783_v35 = vpop.f32.mrf.mxu0 }
 0x505   :  { %v7784_v38 = vadd.f32 %v7783_v35, %v7741_v47 }
 0x506   :  { %v7826_v57 = vpop.f32.mrf.mxu1  ;;  %v7785_v41 = vpop.f32.mrf.mxu0 }
 0x507   :  { %v7827_v54 = vadd.f32 %v7826_v57, %v7784_v38  ;;  %v7786_v45 = vadd.f32 %v7785_v41, %v7743_v4 }
 0x508   :  { %v7828_v11 = vpop.f32.mrf.mxu1  ;;  %v7787_v46 = vpop.f32.mrf.mxu0 }
 0x509   :  { %7837 = vst [vmem:[#allocation11 + $0x10] sm:$0xff] %v7827_v54  ;;  %v7829_v56 = vadd.f32 %v7828_v11, %v7786_v45  ;;  %v7788_v53 = vadd.f32 %v7787_v46, %v7745_v43 }
 0x50a   :  { %v7830_v6 = vpop.f32.mrf.mxu1  ;;  %v7789_v55 = vpop.f32.mrf.mxu0 }
 0x50b   :  { %7838 = vst [vmem:[#allocation11 + $0x18] sm:$0xff] %v7829_v56  ;;  %v7831_v33 = vadd.f32 %v7830_v6, %v7788_v53  ;;  %v7790_v39 = vadd.f32 %v7789_v55, %v7747_v44 }
 0x50c   :  { %v7832_v5 = vpop.f32.mrf.mxu1 }
 0x50d   :  { %7841 = vst [vmem:[#allocation11 + $0x30] sm:$0xff] %v7831_v33  ;;  %v7833_v59 = vadd.f32 %v7832_v5, %v7790_v39 }
 0x50f   :  { %7842 = vst [vmem:[#allocation11 + $0x38] sm:$0xff] %v7833_v59 }
 0x510   :  { %9780 = shalt.err (!%p9777_p1)
}
 0x511   :  { %7854 = dma.vmem_to_hbm [thread:$0]  %s7849_s4, 1024, %s10158_s5, [#allocation4], %s9804_s9, %s9804_s9, %s9805_s10  }
 0x512   :  { %9795 = dma.done.wait [#allocation4], 1024  }
 0x513   :  { %9796 = vsyncadd [#allocation4], 4294966272 }
 0x514   :  { %7858 = vsyncpa [#allocation3], 1 }
 0x515   :  { %7859 = vsyncpa [#allocation6], 1 }
 0x516   :  { %7860 = vsyncpa [#allocation9], 1 }
 0x517   :  { %7861 = vsyncpa [#allocation4], 1 }

</bundles_post_ra>
